<compile_context>
chip_gen: v6e
topology: v6e:2x2x1
jax: 0.10.0
libtpu: 0.0.40
codegen_flags: <defaults>
</compile_context>

<pallas_src>
import math
import jax
import jax.numpy as jnp
from jax import lax
from jax.experimental import pallas as pl
from jax.experimental.pallas import tpu as pltpu

D_MODEL = 128
N_HEADS = 4
HEAD_DIM = D_MODEL // N_HEADS   # 32
D_FF = 256
N_LAYERS = 2
LN_EPS = 1e-5

_VMEM_BUDGET = 40 * 1024 * 1024   # conservative: headroom under v7x's 64 MiB physical VMEM


# ---------------------------------------------------------------------------
# Kernel
# ---------------------------------------------------------------------------
def _layer_norm(x, w, b):
    mean = jnp.mean(x, axis=-1, keepdims=True)
    var = jnp.mean((x - mean) ** 2, axis=-1, keepdims=True)
    return (x - mean) * lax.rsqrt(var + LN_EPS) * w + b


def _make_fused_kernel(batch_tile, seq_len):
    BT, S = batch_tile, seq_len
    T = BT * S

    def kernel(x_ref, pe_ref,
               wqkv_ref, wo_ref, w1_ref, w2_ref,
               bqkv_ref, b1_ref,
               bo_ref, ln1w_ref, ln1b_ref, b2_ref, ln2w_ref, ln2b_ref,
               o_ref):
        # x_ref: (BT, S, D) f32   pe_ref: (S, D) f32
        # matmul weights bf16 (layer-stacked, resident); bias/LN vectors f32 (L, 1, D).
        x = (x_ref[...] + pe_ref[...]).reshape(T, D_MODEL)      # token tile (T, D) f32

        for l in range(N_LAYERS):                               # static unroll
            wqkv = wqkv_ref[l]        # (D, 3D) bf16  (attn scale folded into Q cols)
            wo = wo_ref[l]            # (D, D)  bf16
            w1 = w1_ref[l]            # (D, Dff) bf16
            w2 = w2_ref[l]            # (Dff, D) bf16
            bqkv = bqkv_ref[l]        # (1, 3D) f32   (scale folded into Q part)
            b1 = b1_ref[l]            # (1, Dff) f32
            bo = bo_ref[l]            # (1, D) f32
            ln1w, ln1b = ln1w_ref[l], ln1b_ref[l]
            b2, ln2w, ln2b = b2_ref[l], ln2w_ref[l], ln2b_ref[l]

            # ---- multi-head self-attention ----
            qkv = jnp.dot(x.astype(jnp.bfloat16), wqkv,
                          preferred_element_type=jnp.float32) + bqkv      # (T, 3D) f32

            # 128-lane-aligned Q/K/V slabs; leading-dim-only reshape (no lane relayout).
            q = qkv[:, 0:D_MODEL].reshape(BT, S, D_MODEL).astype(jnp.bfloat16)
            k = qkv[:, D_MODEL:2 * D_MODEL].reshape(BT, S, D_MODEL).astype(jnp.bfloat16)
            v = qkv[:, 2 * D_MODEL:3 * D_MODEL].reshape(BT, S, D_MODEL).astype(jnp.bfloat16)

            # Static per-head loop (N_HEADS=4, independent of batch_tile): batched
            # einsums over the batch dim, bf16 MXU inputs, f32 accumulation/softmax.
            head_outs = []
            for h in range(N_HEADS):
                lo, hi = h * HEAD_DIM, (h + 1) * HEAD_DIM
                qh, kh, vh = q[..., lo:hi], k[..., lo:hi], v[..., lo:hi]   # (BT,S,Hd) bf16
                s = jnp.einsum('bqd,bkd->bqk', qh, kh,
                               preferred_element_type=jnp.float32)        # (BT,S,S) f32
                s = s - jnp.max(s, axis=-1, keepdims=True)
                p = jnp.exp(s)
                p = p * pl.reciprocal(jnp.sum(p, axis=-1, keepdims=True), approx=True)
                head_outs.append(
                    jnp.einsum('bqk,bkd->bqd', p.astype(jnp.bfloat16), vh,
                               preferred_element_type=jnp.float32))       # (BT,S,Hd) f32
            attn = jnp.concatenate(head_outs, axis=-1).reshape(T, D_MODEL)  # (T, D) f32
            attn = jnp.dot(attn.astype(jnp.bfloat16), wo,
                           preferred_element_type=jnp.float32) + bo

            x = _layer_norm(x + attn, ln1w, ln1b)

            # ---- feed-forward (ReLU) ----
            h1 = jnp.maximum(
                jnp.dot(x.astype(jnp.bfloat16), w1,
                        preferred_element_type=jnp.float32) + b1, 0.0)    # (T, Dff)
            ff = jnp.dot(h1.astype(jnp.bfloat16), w2,
                         preferred_element_type=jnp.float32) + b2         # (T, D)

            x = _layer_norm(x + ff, ln2w, ln2b)

        o_ref[...] = x.reshape(BT, S, D_MODEL)

    return kernel


# ---------------------------------------------------------------------------
# Tiling / VMEM heuristics
# ---------------------------------------------------------------------------
def _vmem_bytes_estimate(bt, s):
    """Rough per-grid-step VMEM usage (activations + intermediates + weights)."""
    t = bt * s
    io = 2 * 2 * bt * s * D_MODEL * 4                 # double-buffered in + out tiles
    act = t * D_MODEL * 4                             # residual stream (f32)
    qkv = t * 3 * D_MODEL * (4 + 2)                   # f32 qkv + bf16 matmul inputs
    heads = 3 * t * D_MODEL * 2                       # bf16 q/k/v slabs
    scores = bt * N_HEADS * s * s * (4 + 4 + 2)       # scores + probs (f32) + bf16 probs
    ff = t * D_FF * (4 + 2)
    w = N_LAYERS * (3 * D_MODEL * D_MODEL + D_MODEL * D_MODEL
                    + 2 * D_MODEL * D_FF) * 2 + N_LAYERS * 16 * D_MODEL * 4
    return io + act + qkv + heads + scores + ff + w


def _default_grid_steps():
    # v7x has 2 TensorCores per chip -> give each one equal-work parallel grid step.
    try:
        kind = jax.devices()[0].device_kind.lower()
    except Exception:
        return 1
    return 2 if ("v7" in kind or "7x" in kind) else 1


def _choose_batch_tile(batch, seq):
    """Largest batch slice per grid step that fits the VMEM budget, preferring
    exactly `num_TC` grid steps. (On v5e, larger T = batch_tile*S keeps the 4
    smaller 128x128 MXUs busy; ideally T is a multiple of 128.)"""
    steps = _default_grid_steps()
    if batch % steps == 0:
        bt = batch // steps
        if _vmem_bytes_estimate(bt, seq) <= _VMEM_BUDGET:
            return bt
    for bt in range(batch, 0, -1):
        if batch % bt == 0 and _vmem_bytes_estimate(bt, seq) <= _VMEM_BUDGET:
            return bt
    return 1


# ---------------------------------------------------------------------------
# Wrapper
# ---------------------------------------------------------------------------
_WEIGHT_ORDER = ('wqkv', 'wo', 'w1', 'w2', 'bqkv', 'b1',
                 'bo', 'ln1w', 'ln1b', 'b2', 'ln2w', 'ln2b')


def transformer_encoder(x, pe, packed, *, batch_tile=None, single_buffer_weights=True):
    """x: (B, S, D_MODEL) f32; pe: (S, D_MODEL) f32; packed: dict from pack_params."""
    B, S, D = x.shape
    assert D == D_MODEL
    if batch_tile is None:
        batch_tile = _choose_batch_tile(B, S)
    assert B % batch_tile == 0
    grid = (B // batch_tile,)
    weights = [packed[k] for k in _WEIGHT_ORDER]

    vmem_limit = int(min(64 << 20, max(32 << 20, 2 * _vmem_bytes_estimate(batch_tile, S))))
    kernel = _make_fused_kernel(batch_tile, S)

    def _run(single_buf):
        def const_spec(a):
            nd = a.ndim

            def idx(*_):
                return (0,) * nd

            if single_buf:
                # Constant index map -> weights never change across grid steps; a
                # single resident buffer avoids wasting VMEM on a second copy.
                return pl.BlockSpec(a.shape, idx, pipeline_mode=pl.Buffered(1))
            return pl.BlockSpec(a.shape, idx)

        return pl.pallas_call(
            kernel,
            out_shape=jax.ShapeDtypeStruct((B, S, D), x.dtype),
            grid=grid,
            in_specs=[pl.BlockSpec((batch_tile, S, D), lambda b: (b, 0, 0)),
                      const_spec(pe)] + [const_spec(w) for w in weights],
            out_specs=pl.BlockSpec((batch_tile, S, D), lambda b: (b, 0, 0)),
            compiler_params=pltpu.CompilerParams(
                dimension_semantics=("parallel",),
                vmem_limit_bytes=vmem_limit),
        )(x, pe, *weights)

    if single_buffer_weights:
        try:
            return _run(True)
        except Exception:
            # TODO(synk): pl.Buffered(1) single-buffering rejected by this JAX/Mosaic
            # build; fall back to default (double-buffered) constant weight specs.
            pass
    return _run(False)


# ---------------------------------------------------------------------------
# Deterministic parameter / buffer construction + packing
# ---------------------------------------------------------------------------
def make_positional_encoding(seq_len, d_model, dtype=jnp.float32):
    position = jnp.arange(seq_len, dtype=jnp.float32)[:, None]              # (S,1)
    div = jnp.exp(jnp.arange(0, d_model, 2, dtype=jnp.float32)
                  * (-math.log(10000.0) / d_model))                         # (D/2,)
    pe = jnp.zeros((seq_len, d_model), dtype=jnp.float32)
    pe = pe.at[:, 0::2].set(jnp.sin(position * div))
    pe = pe.at[:, 1::2].set(jnp.cos(position * div))
    return pe.astype(dtype)


def init_params(key):
    """PyTorch-convention per-layer parameters (weights stored as (out, in))."""
    params = []
    scale = 0.02
    for _ in range(N_LAYERS):
        keys = jax.random.split(key, 5)
        key = keys[0]
        layer = dict(
            in_proj_weight=scale * jax.random.normal(keys[1], (3 * D_MODEL, D_MODEL), jnp.float32),
            in_proj_bias=jnp.zeros((3 * D_MODEL,), jnp.float32),
            out_proj_weight=scale * jax.random.normal(keys[2], (D_MODEL, D_MODEL), jnp.float32),
            out_proj_bias=jnp.zeros((D_MODEL,), jnp.float32),
            ln1_w=jnp.ones((D_MODEL,), jnp.float32),
            ln1_b=jnp.zeros((D_MODEL,), jnp.float32),
            linear1_w=scale * jax.random.normal(keys[3], (D_FF, D_MODEL), jnp.float32),
            linear1_b=jnp.zeros((D_FF,), jnp.float32),
            linear2_w=scale * jax.random.normal(keys[4], (D_MODEL, D_FF), jnp.float32),
            linear2_b=jnp.zeros((D_MODEL,), jnp.float32),
            ln2_w=jnp.ones((D_MODEL,), jnp.float32),
            ln2_b=jnp.zeros((D_MODEL,), jnp.float32),
        )
        params.append(layer)
    return params


def pack_params(params):
    """Stack per-layer params into kernel-friendly slabs.

    - matmul weights pre-transposed to (in, out) and cast to bf16
    - 1/sqrt(HEAD_DIM) attention scale folded into the Q columns of W_qkv / b_qkv
    - bias & LayerNorm vectors kept as separate (L, 1, width) f32 arrays
    """
    sm_scale = 1.0 / math.sqrt(HEAD_DIM)
    stacks = {k: [] for k in _WEIGHT_ORDER}
    for p in params:
        wqkv_t = p['in_proj_weight'].T                       # (D, 3D)
        wqkv_t = wqkv_t.at[:, :D_MODEL].multiply(sm_scale)   # fold attn scale (Q cols)
        bqkv = p['in_proj_bias'].at[:D_MODEL].multiply(sm_scale)

        stacks['wqkv'].append(wqkv_t.astype(jnp.bfloat16))
        stacks['wo'].append(p['out_proj_weight'].T.astype(jnp.bfloat16))
        stacks['w1'].append(p['linear1_w'].T.astype(jnp.bfloat16))
        stacks['w2'].append(p['linear2_w'].T.astype(jnp.bfloat16))
        stacks['bqkv'].append(bqkv[None, :])                 # (1, 3D)
        stacks['b1'].append(p['linear1_b'][None, :])         # (1, Dff)
        stacks['bo'].append(p['out_proj_bias'][None, :])     # (1, D)
        stacks['ln1w'].append(p['ln1_w'][None, :])
        stacks['ln1b'].append(p['ln1_b'][None, :])
        stacks['b2'].append(p['linear2_b'][None, :])
        stacks['ln2w'].append(p['ln2_w'][None, :])
        stacks['ln2b'].append(p['ln2_b'][None, :])
    return {k: jnp.stack(v) for k, v in stacks.items()}


# ---------------------------------------------------------------------------
if __name__ == "__main__":
    BATCH, SEQ = 2, 8
    key = jax.random.PRNGKey(0)
    k_x, k_p = jax.random.split(key)

    x = jax.random.normal(k_x, (BATCH, SEQ, D_MODEL), jnp.float32)
    pe = make_positional_encoding(SEQ, D_MODEL)
    params = init_params(k_p)
    packed = pack_params(params)

    out = transformer_encoder(x, pe, packed)     # batch_tile auto-chosen
    out = jax.block_until_ready(out)

    assert out.shape == (BATCH, SEQ, D_MODEL)
    assert jnp.all(jnp.isfinite(out))
    print("KERNEL_OK")
</pallas_src>

<mosaic_0001>
module attributes {stable_mosaic.version = 11 : i64} {
  func.func @kernel(%arg0: i32, %arg1: memref<2x8x128xf32, #tpu.memory_space<vmem>>, %arg2: memref<8x128xf32, #tpu.memory_space<vmem>>, %arg3: memref<2x128x384xbf16, #tpu.memory_space<vmem>>, %arg4: memref<2x128x128xbf16, #tpu.memory_space<vmem>>, %arg5: memref<2x128x256xbf16, #tpu.memory_space<vmem>>, %arg6: memref<2x256x128xbf16, #tpu.memory_space<vmem>>, %arg7: memref<2x1x384xf32, #tpu.memory_space<vmem>>, %arg8: memref<2x1x256xf32, #tpu.memory_space<vmem>>, %arg9: memref<2x1x128xf32, #tpu.memory_space<vmem>>, %arg10: memref<2x1x128xf32, #tpu.memory_space<vmem>>, %arg11: memref<2x1x128xf32, #tpu.memory_space<vmem>>, %arg12: memref<2x1x128xf32, #tpu.memory_space<vmem>>, %arg13: memref<2x1x128xf32, #tpu.memory_space<vmem>>, %arg14: memref<2x1x128xf32, #tpu.memory_space<vmem>>, %arg15: memref<2x8x128xf32, #tpu.memory_space<vmem>>) attributes {dimension_semantics = [#tpu.dimension_semantics<parallel>], iteration_bounds = array<i64: 1>, scalar_prefetch = 0 : i64, scratch_operands = 0 : i64, tpu.core_type = #tpu.core_type<tc>, window_params = [{transform_indices = @transform_0, window_bounds = array<i64: 2, 8, 128>}, {pipeline_mode = #tpu.pipeline_mode<synchronous>, transform_indices = @transform_1, window_bounds = array<i64: 8, 128>}, {pipeline_mode = #tpu.pipeline_mode<synchronous>, transform_indices = @transform_2, window_bounds = array<i64: 2, 128, 384>}, {pipeline_mode = #tpu.pipeline_mode<synchronous>, transform_indices = @transform_3, window_bounds = array<i64: 2, 128, 128>}, {pipeline_mode = #tpu.pipeline_mode<synchronous>, transform_indices = @transform_4, window_bounds = array<i64: 2, 128, 256>}, {pipeline_mode = #tpu.pipeline_mode<synchronous>, transform_indices = @transform_5, window_bounds = array<i64: 2, 256, 128>}, {pipeline_mode = #tpu.pipeline_mode<synchronous>, transform_indices = @transform_6, window_bounds = array<i64: 2, 1, 384>}, {pipeline_mode = #tpu.pipeline_mode<synchronous>, transform_indices = @transform_7, window_bounds = array<i64: 2, 1, 256>}, {pipeline_mode = #tpu.pipeline_mode<synchronous>, transform_indices = @transform_8, window_bounds = array<i64: 2, 1, 128>}, {pipeline_mode = #tpu.pipeline_mode<synchronous>, transform_indices = @transform_9, window_bounds = array<i64: 2, 1, 128>}, {pipeline_mode = #tpu.pipeline_mode<synchronous>, transform_indices = @transform_10, window_bounds = array<i64: 2, 1, 128>}, {pipeline_mode = #tpu.pipeline_mode<synchronous>, transform_indices = @transform_11, window_bounds = array<i64: 2, 1, 128>}, {pipeline_mode = #tpu.pipeline_mode<synchronous>, transform_indices = @transform_12, window_bounds = array<i64: 2, 1, 128>}, {pipeline_mode = #tpu.pipeline_mode<synchronous>, transform_indices = @transform_13, window_bounds = array<i64: 2, 1, 128>}, {transform_indices = @transform_14, window_bounds = array<i64: 2, 8, 128>}]} {
    %c0 = arith.constant 0 : index
    %c0_0 = arith.constant 0 : index
    %c0_1 = arith.constant 0 : index
    %0 = vector.load %arg1[%c0, %c0_0, %c0_1] : memref<2x8x128xf32, #tpu.memory_space<vmem>>, vector<2x8x128xf32>
    %c0_2 = arith.constant 0 : index
    %c0_3 = arith.constant 0 : index
    %1 = vector.load %arg2[%c0_2, %c0_3] : memref<8x128xf32, #tpu.memory_space<vmem>>, vector<8x128xf32>
    %2 = vector.shape_cast %1 : vector<8x128xf32> to vector<1x8x128xf32>
    %3 = vector.broadcast %2 : vector<1x8x128xf32> to vector<2x8x128xf32>
    %4 = arith.addf %0, %3 : vector<2x8x128xf32>
    %5 = vector.shape_cast %4 : vector<2x8x128xf32> to vector<16x128xf32>
    %c0_4 = arith.constant 0 : index
    %c0_5 = arith.constant 0 : index
    %c0_6 = arith.constant 0 : index
    %6 = vector.load %arg3[%c0_4, %c0_5, %c0_6] : memref<2x128x384xbf16, #tpu.memory_space<vmem>>, vector<1x128x384xbf16>
    %7 = vector.shape_cast %6 : vector<1x128x384xbf16> to vector<128x384xbf16>
    %c0_7 = arith.constant 0 : index
    %c0_8 = arith.constant 0 : index
    %c0_9 = arith.constant 0 : index
    %8 = vector.load %arg4[%c0_7, %c0_8, %c0_9] : memref<2x128x128xbf16, #tpu.memory_space<vmem>>, vector<1x128x128xbf16>
    %9 = vector.shape_cast %8 : vector<1x128x128xbf16> to vector<128x128xbf16>
    %c0_10 = arith.constant 0 : index
    %c0_11 = arith.constant 0 : index
    %c0_12 = arith.constant 0 : index
    %10 = vector.load %arg5[%c0_10, %c0_11, %c0_12] : memref<2x128x256xbf16, #tpu.memory_space<vmem>>, vector<1x128x256xbf16>
    %11 = vector.shape_cast %10 : vector<1x128x256xbf16> to vector<128x256xbf16>
    %c0_13 = arith.constant 0 : index
    %c0_14 = arith.constant 0 : index
    %c0_15 = arith.constant 0 : index
    %12 = vector.load %arg6[%c0_13, %c0_14, %c0_15] : memref<2x256x128xbf16, #tpu.memory_space<vmem>>, vector<1x256x128xbf16>
    %13 = vector.shape_cast %12 : vector<1x256x128xbf16> to vector<256x128xbf16>
    %c0_16 = arith.constant 0 : index
    %c0_17 = arith.constant 0 : index
    %c0_18 = arith.constant 0 : index
    %14 = vector.load %arg7[%c0_16, %c0_17, %c0_18] : memref<2x1x384xf32, #tpu.memory_space<vmem>>, vector<1x1x384xf32>
    %15 = vector.shape_cast %14 : vector<1x1x384xf32> to vector<1x384xf32>
    %c0_19 = arith.constant 0 : index
    %c0_20 = arith.constant 0 : index
    %c0_21 = arith.constant 0 : index
    %16 = vector.load %arg8[%c0_19, %c0_20, %c0_21] : memref<2x1x256xf32, #tpu.memory_space<vmem>>, vector<1x1x256xf32>
    %17 = vector.shape_cast %16 : vector<1x1x256xf32> to vector<1x256xf32>
    %c0_22 = arith.constant 0 : index
    %c0_23 = arith.constant 0 : index
    %c0_24 = arith.constant 0 : index
    %18 = vector.load %arg9[%c0_22, %c0_23, %c0_24] : memref<2x1x128xf32, #tpu.memory_space<vmem>>, vector<1x1x128xf32>
    %19 = vector.shape_cast %18 : vector<1x1x128xf32> to vector<1x128xf32>
    %c0_25 = arith.constant 0 : index
    %c0_26 = arith.constant 0 : index
    %c0_27 = arith.constant 0 : index
    %20 = vector.load %arg10[%c0_25, %c0_26, %c0_27] : memref<2x1x128xf32, #tpu.memory_space<vmem>>, vector<1x1x128xf32>
    %21 = vector.shape_cast %20 : vector<1x1x128xf32> to vector<1x128xf32>
    %c0_28 = arith.constant 0 : index
    %c0_29 = arith.constant 0 : index
    %c0_30 = arith.constant 0 : index
    %22 = vector.load %arg11[%c0_28, %c0_29, %c0_30] : memref<2x1x128xf32, #tpu.memory_space<vmem>>, vector<1x1x128xf32>
    %23 = vector.shape_cast %22 : vector<1x1x128xf32> to vector<1x128xf32>
    %c0_31 = arith.constant 0 : index
    %c0_32 = arith.constant 0 : index
    %c0_33 = arith.constant 0 : index
    %24 = vector.load %arg12[%c0_31, %c0_32, %c0_33] : memref<2x1x128xf32, #tpu.memory_space<vmem>>, vector<1x1x128xf32>
    %25 = vector.shape_cast %24 : vector<1x1x128xf32> to vector<1x128xf32>
    %c0_34 = arith.constant 0 : index
    %c0_35 = arith.constant 0 : index
    %c0_36 = arith.constant 0 : index
    %26 = vector.load %arg13[%c0_34, %c0_35, %c0_36] : memref<2x1x128xf32, #tpu.memory_space<vmem>>, vector<1x1x128xf32>
    %27 = vector.shape_cast %26 : vector<1x1x128xf32> to vector<1x128xf32>
    %c0_37 = arith.constant 0 : index
    %c0_38 = arith.constant 0 : index
    %c0_39 = arith.constant 0 : index
    %28 = vector.load %arg14[%c0_37, %c0_38, %c0_39] : memref<2x1x128xf32, #tpu.memory_space<vmem>>, vector<1x1x128xf32>
    %29 = vector.shape_cast %28 : vector<1x1x128xf32> to vector<1x128xf32>
    %30 = arith.truncf %5 : vector<16x128xf32> to vector<16x128xbf16>
    %cst = arith.constant dense<0.000000e+00> : vector<16x384xf32>
    %31 = tpu.matmul %30, %7, %cst {dimension_numbers = #tpu.dot_dimension_numbers<[1], [0], [0], [1], [0, 0, 1, 1], [], []>} : vector<16x128xbf16>, vector<128x384xbf16>, vector<16x384xf32> -> vector<16x384xf32>
    %32 = vector.broadcast %15 : vector<1x384xf32> to vector<16x384xf32>
    %33 = arith.addf %31, %32 : vector<16x384xf32>
    %34 = vector.extract_strided_slice %33 {offsets = [0, 0], sizes = [16, 128], strides = [1, 1]} : vector<16x384xf32> to vector<16x128xf32>
    %35 = vector.shape_cast %34 : vector<16x128xf32> to vector<2x8x128xf32>
    %36 = arith.truncf %35 : vector<2x8x128xf32> to vector<2x8x128xbf16>
    %37 = vector.extract_strided_slice %33 {offsets = [0, 128], sizes = [16, 128], strides = [1, 1]} : vector<16x384xf32> to vector<16x128xf32>
    %38 = vector.shape_cast %37 : vector<16x128xf32> to vector<2x8x128xf32>
    %39 = arith.truncf %38 : vector<2x8x128xf32> to vector<2x8x128xbf16>
    %40 = vector.extract_strided_slice %33 {offsets = [0, 256], sizes = [16, 128], strides = [1, 1]} : vector<16x384xf32> to vector<16x128xf32>
    %41 = vector.shape_cast %40 : vector<16x128xf32> to vector<2x8x128xf32>
    %42 = arith.truncf %41 : vector<2x8x128xf32> to vector<2x8x128xbf16>
    %43 = vector.extract_strided_slice %36 {offsets = [0, 0, 0], sizes = [2, 8, 32], strides = [1, 1, 1]} : vector<2x8x128xbf16> to vector<2x8x32xbf16>
    %44 = vector.extract_strided_slice %39 {offsets = [0, 0, 0], sizes = [2, 8, 32], strides = [1, 1, 1]} : vector<2x8x128xbf16> to vector<2x8x32xbf16>
    %45 = vector.extract_strided_slice %42 {offsets = [0, 0, 0], sizes = [2, 8, 32], strides = [1, 1, 1]} : vector<2x8x128xbf16> to vector<2x8x32xbf16>
    "tpu.trace_start"() <{level = 10 : i32, message = "bqd,bkd->bqk"}> : () -> ()
    %cst_40 = arith.constant dense<0.000000e+00> : vector<2x8x8xf32>
    %46 = tpu.matmul %43, %44, %cst_40 {dimension_numbers = #tpu.dot_dimension_numbers<[2], [2], [1], [1], [0, 0, 0, 1, 1, 1], [0], [0]>} : vector<2x8x32xbf16>, vector<2x8x32xbf16>, vector<2x8x8xf32> -> vector<2x8x8xf32>
    "tpu.trace_stop"() : () -> ()
    %cst_41 = arith.constant dense<0xFF800000> : vector<2x8xf32>
    %47 = vector.multi_reduction <maximumf>, %46, %cst_41 [2] : vector<2x8x8xf32> to vector<2x8xf32>
    %48 = vector.shape_cast %47 : vector<2x8xf32> to vector<2x8x1xf32>
    %49 = vector.broadcast %48 : vector<2x8x1xf32> to vector<2x8x8xf32>
    %50 = arith.subf %46, %49 : vector<2x8x8xf32>
    %51 = math.exp %50 : vector<2x8x8xf32>
    %cst_42 = arith.constant dense<0.000000e+00> : vector<2x8xf32>
    %52 = vector.multi_reduction <add>, %51, %cst_42 [2] : vector<2x8x8xf32> to vector<2x8xf32>
    %53 = vector.shape_cast %52 : vector<2x8xf32> to vector<2x8x1xf32>
    %54 = tpu.reciprocal %53 {approx = true} : vector<2x8x1xf32> -> vector<2x8x1xf32>
    %55 = vector.broadcast %54 : vector<2x8x1xf32> to vector<2x8x8xf32>
    %56 = arith.mulf %51, %55 : vector<2x8x8xf32>
    %57 = arith.truncf %56 : vector<2x8x8xf32> to vector<2x8x8xbf16>
    "tpu.trace_start"() <{level = 10 : i32, message = "bqk,bkd->bqd"}> : () -> ()
    %cst_43 = arith.constant dense<0.000000e+00> : vector<2x8x32xf32>
    %58 = tpu.matmul %57, %45, %cst_43 {dimension_numbers = #tpu.dot_dimension_numbers<[2], [1], [1], [2], [0, 0, 0, 1, 1, 2], [0], [0]>} : vector<2x8x8xbf16>, vector<2x8x32xbf16>, vector<2x8x32xf32> -> vector<2x8x32xf32>
    "tpu.trace_stop"() : () -> ()
    %59 = vector.extract_strided_slice %36 {offsets = [0, 0, 32], sizes = [2, 8, 32], strides = [1, 1, 1]} : vector<2x8x128xbf16> to vector<2x8x32xbf16>
    %60 = vector.extract_strided_slice %39 {offsets = [0, 0, 32], sizes = [2, 8, 32], strides = [1, 1, 1]} : vector<2x8x128xbf16> to vector<2x8x32xbf16>
    %61 = vector.extract_strided_slice %42 {offsets = [0, 0, 32], sizes = [2, 8, 32], strides = [1, 1, 1]} : vector<2x8x128xbf16> to vector<2x8x32xbf16>
    "tpu.trace_start"() <{level = 10 : i32, message = "bqd,bkd->bqk"}> : () -> ()
    %cst_44 = arith.constant dense<0.000000e+00> : vector<2x8x8xf32>
    %62 = tpu.matmul %59, %60, %cst_44 {dimension_numbers = #tpu.dot_dimension_numbers<[2], [2], [1], [1], [0, 0, 0, 1, 1, 1], [0], [0]>} : vector<2x8x32xbf16>, vector<2x8x32xbf16>, vector<2x8x8xf32> -> vector<2x8x8xf32>
    "tpu.trace_stop"() : () -> ()
    %cst_45 = arith.constant dense<0xFF800000> : vector<2x8xf32>
    %63 = vector.multi_reduction <maximumf>, %62, %cst_45 [2] : vector<2x8x8xf32> to vector<2x8xf32>
    %64 = vector.shape_cast %63 : vector<2x8xf32> to vector<2x8x1xf32>
    %65 = vector.broadcast %64 : vector<2x8x1xf32> to vector<2x8x8xf32>
    %66 = arith.subf %62, %65 : vector<2x8x8xf32>
    %67 = math.exp %66 : vector<2x8x8xf32>
    %cst_46 = arith.constant dense<0.000000e+00> : vector<2x8xf32>
    %68 = vector.multi_reduction <add>, %67, %cst_46 [2] : vector<2x8x8xf32> to vector<2x8xf32>
    %69 = vector.shape_cast %68 : vector<2x8xf32> to vector<2x8x1xf32>
    %70 = tpu.reciprocal %69 {approx = true} : vector<2x8x1xf32> -> vector<2x8x1xf32>
    %71 = vector.broadcast %70 : vector<2x8x1xf32> to vector<2x8x8xf32>
    %72 = arith.mulf %67, %71 : vector<2x8x8xf32>
    %73 = arith.truncf %72 : vector<2x8x8xf32> to vector<2x8x8xbf16>
    "tpu.trace_start"() <{level = 10 : i32, message = "bqk,bkd->bqd"}> : () -> ()
    %cst_47 = arith.constant dense<0.000000e+00> : vector<2x8x32xf32>
    %74 = tpu.matmul %73, %61, %cst_47 {dimension_numbers = #tpu.dot_dimension_numbers<[2], [1], [1], [2], [0, 0, 0, 1, 1, 2], [0], [0]>} : vector<2x8x8xbf16>, vector<2x8x32xbf16>, vector<2x8x32xf32> -> vector<2x8x32xf32>
    "tpu.trace_stop"() : () -> ()
    %75 = vector.extract_strided_slice %36 {offsets = [0, 0, 64], sizes = [2, 8, 32], strides = [1, 1, 1]} : vector<2x8x128xbf16> to vector<2x8x32xbf16>
    %76 = vector.extract_strided_slice %39 {offsets = [0, 0, 64], sizes = [2, 8, 32], strides = [1, 1, 1]} : vector<2x8x128xbf16> to vector<2x8x32xbf16>
    %77 = vector.extract_strided_slice %42 {offsets = [0, 0, 64], sizes = [2, 8, 32], strides = [1, 1, 1]} : vector<2x8x128xbf16> to vector<2x8x32xbf16>
    "tpu.trace_start"() <{level = 10 : i32, message = "bqd,bkd->bqk"}> : () -> ()
    %cst_48 = arith.constant dense<0.000000e+00> : vector<2x8x8xf32>
    %78 = tpu.matmul %75, %76, %cst_48 {dimension_numbers = #tpu.dot_dimension_numbers<[2], [2], [1], [1], [0, 0, 0, 1, 1, 1], [0], [0]>} : vector<2x8x32xbf16>, vector<2x8x32xbf16>, vector<2x8x8xf32> -> vector<2x8x8xf32>
    "tpu.trace_stop"() : () -> ()
    %cst_49 = arith.constant dense<0xFF800000> : vector<2x8xf32>
    %79 = vector.multi_reduction <maximumf>, %78, %cst_49 [2] : vector<2x8x8xf32> to vector<2x8xf32>
    %80 = vector.shape_cast %79 : vector<2x8xf32> to vector<2x8x1xf32>
    %81 = vector.broadcast %80 : vector<2x8x1xf32> to vector<2x8x8xf32>
    %82 = arith.subf %78, %81 : vector<2x8x8xf32>
    %83 = math.exp %82 : vector<2x8x8xf32>
    %cst_50 = arith.constant dense<0.000000e+00> : vector<2x8xf32>
    %84 = vector.multi_reduction <add>, %83, %cst_50 [2] : vector<2x8x8xf32> to vector<2x8xf32>
    %85 = vector.shape_cast %84 : vector<2x8xf32> to vector<2x8x1xf32>
    %86 = tpu.reciprocal %85 {approx = true} : vector<2x8x1xf32> -> vector<2x8x1xf32>
    %87 = vector.broadcast %86 : vector<2x8x1xf32> to vector<2x8x8xf32>
    %88 = arith.mulf %83, %87 : vector<2x8x8xf32>
    %89 = arith.truncf %88 : vector<2x8x8xf32> to vector<2x8x8xbf16>
    "tpu.trace_start"() <{level = 10 : i32, message = "bqk,bkd->bqd"}> : () -> ()
    %cst_51 = arith.constant dense<0.000000e+00> : vector<2x8x32xf32>
    %90 = tpu.matmul %89, %77, %cst_51 {dimension_numbers = #tpu.dot_dimension_numbers<[2], [1], [1], [2], [0, 0, 0, 1, 1, 2], [0], [0]>} : vector<2x8x8xbf16>, vector<2x8x32xbf16>, vector<2x8x32xf32> -> vector<2x8x32xf32>
    "tpu.trace_stop"() : () -> ()
    %91 = vector.extract_strided_slice %36 {offsets = [0, 0, 96], sizes = [2, 8, 32], strides = [1, 1, 1]} : vector<2x8x128xbf16> to vector<2x8x32xbf16>
    %92 = vector.extract_strided_slice %39 {offsets = [0, 0, 96], sizes = [2, 8, 32], strides = [1, 1, 1]} : vector<2x8x128xbf16> to vector<2x8x32xbf16>
    %93 = vector.extract_strided_slice %42 {offsets = [0, 0, 96], sizes = [2, 8, 32], strides = [1, 1, 1]} : vector<2x8x128xbf16> to vector<2x8x32xbf16>
    "tpu.trace_start"() <{level = 10 : i32, message = "bqd,bkd->bqk"}> : () -> ()
    %cst_52 = arith.constant dense<0.000000e+00> : vector<2x8x8xf32>
    %94 = tpu.matmul %91, %92, %cst_52 {dimension_numbers = #tpu.dot_dimension_numbers<[2], [2], [1], [1], [0, 0, 0, 1, 1, 1], [0], [0]>} : vector<2x8x32xbf16>, vector<2x8x32xbf16>, vector<2x8x8xf32> -> vector<2x8x8xf32>
    "tpu.trace_stop"() : () -> ()
    %cst_53 = arith.constant dense<0xFF800000> : vector<2x8xf32>
    %95 = vector.multi_reduction <maximumf>, %94, %cst_53 [2] : vector<2x8x8xf32> to vector<2x8xf32>
    %96 = vector.shape_cast %95 : vector<2x8xf32> to vector<2x8x1xf32>
    %97 = vector.broadcast %96 : vector<2x8x1xf32> to vector<2x8x8xf32>
    %98 = arith.subf %94, %97 : vector<2x8x8xf32>
    %99 = math.exp %98 : vector<2x8x8xf32>
    %cst_54 = arith.constant dense<0.000000e+00> : vector<2x8xf32>
    %100 = vector.multi_reduction <add>, %99, %cst_54 [2] : vector<2x8x8xf32> to vector<2x8xf32>
    %101 = vector.shape_cast %100 : vector<2x8xf32> to vector<2x8x1xf32>
    %102 = tpu.reciprocal %101 {approx = true} : vector<2x8x1xf32> -> vector<2x8x1xf32>
    %103 = vector.broadcast %102 : vector<2x8x1xf32> to vector<2x8x8xf32>
    %104 = arith.mulf %99, %103 : vector<2x8x8xf32>
    %105 = arith.truncf %104 : vector<2x8x8xf32> to vector<2x8x8xbf16>
    "tpu.trace_start"() <{level = 10 : i32, message = "bqk,bkd->bqd"}> : () -> ()
    %cst_55 = arith.constant dense<0.000000e+00> : vector<2x8x32xf32>
    %106 = tpu.matmul %105, %93, %cst_55 {dimension_numbers = #tpu.dot_dimension_numbers<[2], [1], [1], [2], [0, 0, 0, 1, 1, 2], [0], [0]>} : vector<2x8x8xbf16>, vector<2x8x32xbf16>, vector<2x8x32xf32> -> vector<2x8x32xf32>
    "tpu.trace_stop"() : () -> ()
    %107 = tpu.concatenate %58, %74, %90, %106 in 2 : vector<2x8x32xf32>, vector<2x8x32xf32>, vector<2x8x32xf32>, vector<2x8x32xf32> -> vector<2x8x128xf32>
    %108 = vector.shape_cast %107 : vector<2x8x128xf32> to vector<16x128xf32>
    %109 = arith.truncf %108 : vector<16x128xf32> to vector<16x128xbf16>
    %cst_56 = arith.constant dense<0.000000e+00> : vector<16x128xf32>
    %110 = tpu.matmul %109, %9, %cst_56 {dimension_numbers = #tpu.dot_dimension_numbers<[1], [0], [0], [1], [0, 0, 1, 1], [], []>} : vector<16x128xbf16>, vector<128x128xbf16>, vector<16x128xf32> -> vector<16x128xf32>
    %111 = vector.broadcast %19 : vector<1x128xf32> to vector<16x128xf32>
    %112 = arith.addf %110, %111 : vector<16x128xf32>
    %113 = arith.addf %5, %112 : vector<16x128xf32>
    %cst_57 = arith.constant dense<0.000000e+00> : vector<16xf32>
    %114 = vector.multi_reduction <add>, %113, %cst_57 [1] : vector<16x128xf32> to vector<16xf32>
    %115 = vector.shape_cast %114 : vector<16xf32> to vector<16x1xf32>
    %cst_58 = arith.constant 1.280000e+02 : f32
    %116 = vector.broadcast %cst_58 : f32 to vector<16x1xf32>
    %117 = arith.divf %115, %116 : vector<16x1xf32>
    %118 = vector.broadcast %117 : vector<16x1xf32> to vector<16x128xf32>
    %119 = arith.subf %113, %118 : vector<16x128xf32>
    %120 = arith.mulf %119, %119 : vector<16x128xf32>
    %cst_59 = arith.constant dense<0.000000e+00> : vector<16xf32>
    %121 = vector.multi_reduction <add>, %120, %cst_59 [1] : vector<16x128xf32> to vector<16xf32>
    %122 = vector.shape_cast %121 : vector<16xf32> to vector<16x1xf32>
    %cst_60 = arith.constant 1.280000e+02 : f32
    %123 = vector.broadcast %cst_60 : f32 to vector<16x1xf32>
    %124 = arith.divf %122, %123 : vector<16x1xf32>
    %125 = vector.broadcast %117 : vector<16x1xf32> to vector<16x128xf32>
    %126 = arith.subf %113, %125 : vector<16x128xf32>
    %cst_61 = arith.constant 9.99999974E-6 : f32
    %127 = vector.broadcast %cst_61 : f32 to vector<16x1xf32>
    %128 = arith.addf %124, %127 : vector<16x1xf32>
    %129 = math.rsqrt %128 : vector<16x1xf32>
    %130 = vector.broadcast %129 : vector<16x1xf32> to vector<16x128xf32>
    %131 = arith.mulf %126, %130 : vector<16x128xf32>
    %132 = vector.broadcast %21 : vector<1x128xf32> to vector<16x128xf32>
    %133 = arith.mulf %131, %132 : vector<16x128xf32>
    %134 = vector.broadcast %23 : vector<1x128xf32> to vector<16x128xf32>
    %135 = arith.addf %133, %134 : vector<16x128xf32>
    %136 = arith.truncf %135 : vector<16x128xf32> to vector<16x128xbf16>
    %cst_62 = arith.constant dense<0.000000e+00> : vector<16x256xf32>
    %137 = tpu.matmul %136, %11, %cst_62 {dimension_numbers = #tpu.dot_dimension_numbers<[1], [0], [0], [1], [0, 0, 1, 1], [], []>} : vector<16x128xbf16>, vector<128x256xbf16>, vector<16x256xf32> -> vector<16x256xf32>
    %138 = vector.broadcast %17 : vector<1x256xf32> to vector<16x256xf32>
    %139 = arith.addf %137, %138 : vector<16x256xf32>
    %cst_63 = arith.constant 0.000000e+00 : f32
    %140 = vector.broadcast %cst_63 : f32 to vector<16x256xf32>
    %141 = arith.maximumf %139, %140 : vector<16x256xf32>
    %142 = arith.truncf %141 : vector<16x256xf32> to vector<16x256xbf16>
    %cst_64 = arith.constant dense<0.000000e+00> : vector<16x128xf32>
    %143 = tpu.matmul %142, %13, %cst_64 {dimension_numbers = #tpu.dot_dimension_numbers<[1], [0], [0], [1], [0, 0, 1, 1], [], []>} : vector<16x256xbf16>, vector<256x128xbf16>, vector<16x128xf32> -> vector<16x128xf32>
    %144 = vector.broadcast %25 : vector<1x128xf32> to vector<16x128xf32>
    %145 = arith.addf %143, %144 : vector<16x128xf32>
    %146 = arith.addf %135, %145 : vector<16x128xf32>
    %cst_65 = arith.constant dense<0.000000e+00> : vector<16xf32>
    %147 = vector.multi_reduction <add>, %146, %cst_65 [1] : vector<16x128xf32> to vector<16xf32>
    %148 = vector.shape_cast %147 : vector<16xf32> to vector<16x1xf32>
    %cst_66 = arith.constant 1.280000e+02 : f32
    %149 = vector.broadcast %cst_66 : f32 to vector<16x1xf32>
    %150 = arith.divf %148, %149 : vector<16x1xf32>
    %151 = vector.broadcast %150 : vector<16x1xf32> to vector<16x128xf32>
    %152 = arith.subf %146, %151 : vector<16x128xf32>
    %153 = arith.mulf %152, %152 : vector<16x128xf32>
    %cst_67 = arith.constant dense<0.000000e+00> : vector<16xf32>
    %154 = vector.multi_reduction <add>, %153, %cst_67 [1] : vector<16x128xf32> to vector<16xf32>
    %155 = vector.shape_cast %154 : vector<16xf32> to vector<16x1xf32>
    %cst_68 = arith.constant 1.280000e+02 : f32
    %156 = vector.broadcast %cst_68 : f32 to vector<16x1xf32>
    %157 = arith.divf %155, %156 : vector<16x1xf32>
    %158 = vector.broadcast %150 : vector<16x1xf32> to vector<16x128xf32>
    %159 = arith.subf %146, %158 : vector<16x128xf32>
    %cst_69 = arith.constant 9.99999974E-6 : f32
    %160 = vector.broadcast %cst_69 : f32 to vector<16x1xf32>
    %161 = arith.addf %157, %160 : vector<16x1xf32>
    %162 = math.rsqrt %161 : vector<16x1xf32>
    %163 = vector.broadcast %162 : vector<16x1xf32> to vector<16x128xf32>
    %164 = arith.mulf %159, %163 : vector<16x128xf32>
    %165 = vector.broadcast %27 : vector<1x128xf32> to vector<16x128xf32>
    %166 = arith.mulf %164, %165 : vector<16x128xf32>
    %167 = vector.broadcast %29 : vector<1x128xf32> to vector<16x128xf32>
    %168 = arith.addf %166, %167 : vector<16x128xf32>
    %c1 = arith.constant 1 : index
    %c0_70 = arith.constant 0 : index
    %c0_71 = arith.constant 0 : index
    %169 = vector.load %arg3[%c1, %c0_70, %c0_71] : memref<2x128x384xbf16, #tpu.memory_space<vmem>>, vector<1x128x384xbf16>
    %170 = vector.shape_cast %169 : vector<1x128x384xbf16> to vector<128x384xbf16>
    %c1_72 = arith.constant 1 : index
    %c0_73 = arith.constant 0 : index
    %c0_74 = arith.constant 0 : index
    %171 = vector.load %arg4[%c1_72, %c0_73, %c0_74] : memref<2x128x128xbf16, #tpu.memory_space<vmem>>, vector<1x128x128xbf16>
    %172 = vector.shape_cast %171 : vector<1x128x128xbf16> to vector<128x128xbf16>
    %c1_75 = arith.constant 1 : index
    %c0_76 = arith.constant 0 : index
    %c0_77 = arith.constant 0 : index
    %173 = vector.load %arg5[%c1_75, %c0_76, %c0_77] : memref<2x128x256xbf16, #tpu.memory_space<vmem>>, vector<1x128x256xbf16>
    %174 = vector.shape_cast %173 : vector<1x128x256xbf16> to vector<128x256xbf16>
    %c1_78 = arith.constant 1 : index
    %c0_79 = arith.constant 0 : index
    %c0_80 = arith.constant 0 : index
    %175 = vector.load %arg6[%c1_78, %c0_79, %c0_80] : memref<2x256x128xbf16, #tpu.memory_space<vmem>>, vector<1x256x128xbf16>
    %176 = vector.shape_cast %175 : vector<1x256x128xbf16> to vector<256x128xbf16>
    %c1_81 = arith.constant 1 : index
    %c0_82 = arith.constant 0 : index
    %c0_83 = arith.constant 0 : index
    %177 = vector.load %arg7[%c1_81, %c0_82, %c0_83] : memref<2x1x384xf32, #tpu.memory_space<vmem>>, vector<1x1x384xf32>
    %178 = vector.shape_cast %177 : vector<1x1x384xf32> to vector<1x384xf32>
    %c1_84 = arith.constant 1 : index
    %c0_85 = arith.constant 0 : index
    %c0_86 = arith.constant 0 : index
    %179 = vector.load %arg8[%c1_84, %c0_85, %c0_86] : memref<2x1x256xf32, #tpu.memory_space<vmem>>, vector<1x1x256xf32>
    %180 = vector.shape_cast %179 : vector<1x1x256xf32> to vector<1x256xf32>
    %c1_87 = arith.constant 1 : index
    %c0_88 = arith.constant 0 : index
    %c0_89 = arith.constant 0 : index
    %181 = vector.load %arg9[%c1_87, %c0_88, %c0_89] : memref<2x1x128xf32, #tpu.memory_space<vmem>>, vector<1x1x128xf32>
    %182 = vector.shape_cast %181 : vector<1x1x128xf32> to vector<1x128xf32>
    %c1_90 = arith.constant 1 : index
    %c0_91 = arith.constant 0 : index
    %c0_92 = arith.constant 0 : index
    %183 = vector.load %arg10[%c1_90, %c0_91, %c0_92] : memref<2x1x128xf32, #tpu.memory_space<vmem>>, vector<1x1x128xf32>
    %184 = vector.shape_cast %183 : vector<1x1x128xf32> to vector<1x128xf32>
    %c1_93 = arith.constant 1 : index
    %c0_94 = arith.constant 0 : index
    %c0_95 = arith.constant 0 : index
    %185 = vector.load %arg11[%c1_93, %c0_94, %c0_95] : memref<2x1x128xf32, #tpu.memory_space<vmem>>, vector<1x1x128xf32>
    %186 = vector.shape_cast %185 : vector<1x1x128xf32> to vector<1x128xf32>
    %c1_96 = arith.constant 1 : index
    %c0_97 = arith.constant 0 : index
    %c0_98 = arith.constant 0 : index
    %187 = vector.load %arg12[%c1_96, %c0_97, %c0_98] : memref<2x1x128xf32, #tpu.memory_space<vmem>>, vector<1x1x128xf32>
    %188 = vector.shape_cast %187 : vector<1x1x128xf32> to vector<1x128xf32>
    %c1_99 = arith.constant 1 : index
    %c0_100 = arith.constant 0 : index
    %c0_101 = arith.constant 0 : index
    %189 = vector.load %arg13[%c1_99, %c0_100, %c0_101] : memref<2x1x128xf32, #tpu.memory_space<vmem>>, vector<1x1x128xf32>
    %190 = vector.shape_cast %189 : vector<1x1x128xf32> to vector<1x128xf32>
    %c1_102 = arith.constant 1 : index
    %c0_103 = arith.constant 0 : index
    %c0_104 = arith.constant 0 : index
    %191 = vector.load %arg14[%c1_102, %c0_103, %c0_104] : memref<2x1x128xf32, #tpu.memory_space<vmem>>, vector<1x1x128xf32>
    %192 = vector.shape_cast %191 : vector<1x1x128xf32> to vector<1x128xf32>
    %193 = arith.truncf %168 : vector<16x128xf32> to vector<16x128xbf16>
    %cst_105 = arith.constant dense<0.000000e+00> : vector<16x384xf32>
    %194 = tpu.matmul %193, %170, %cst_105 {dimension_numbers = #tpu.dot_dimension_numbers<[1], [0], [0], [1], [0, 0, 1, 1], [], []>} : vector<16x128xbf16>, vector<128x384xbf16>, vector<16x384xf32> -> vector<16x384xf32>
    %195 = vector.broadcast %178 : vector<1x384xf32> to vector<16x384xf32>
    %196 = arith.addf %194, %195 : vector<16x384xf32>
    %197 = vector.extract_strided_slice %196 {offsets = [0, 0], sizes = [16, 128], strides = [1, 1]} : vector<16x384xf32> to vector<16x128xf32>
    %198 = vector.shape_cast %197 : vector<16x128xf32> to vector<2x8x128xf32>
    %199 = arith.truncf %198 : vector<2x8x128xf32> to vector<2x8x128xbf16>
    %200 = vector.extract_strided_slice %196 {offsets = [0, 128], sizes = [16, 128], strides = [1, 1]} : vector<16x384xf32> to vector<16x128xf32>
    %201 = vector.shape_cast %200 : vector<16x128xf32> to vector<2x8x128xf32>
    %202 = arith.truncf %201 : vector<2x8x128xf32> to vector<2x8x128xbf16>
    %203 = vector.extract_strided_slice %196 {offsets = [0, 256], sizes = [16, 128], strides = [1, 1]} : vector<16x384xf32> to vector<16x128xf32>
    %204 = vector.shape_cast %203 : vector<16x128xf32> to vector<2x8x128xf32>
    %205 = arith.truncf %204 : vector<2x8x128xf32> to vector<2x8x128xbf16>
    %206 = vector.extract_strided_slice %199 {offsets = [0, 0, 0], sizes = [2, 8, 32], strides = [1, 1, 1]} : vector<2x8x128xbf16> to vector<2x8x32xbf16>
    %207 = vector.extract_strided_slice %202 {offsets = [0, 0, 0], sizes = [2, 8, 32], strides = [1, 1, 1]} : vector<2x8x128xbf16> to vector<2x8x32xbf16>
    %208 = vector.extract_strided_slice %205 {offsets = [0, 0, 0], sizes = [2, 8, 32], strides = [1, 1, 1]} : vector<2x8x128xbf16> to vector<2x8x32xbf16>
    "tpu.trace_start"() <{level = 10 : i32, message = "bqd,bkd->bqk"}> : () -> ()
    %cst_106 = arith.constant dense<0.000000e+00> : vector<2x8x8xf32>
    %209 = tpu.matmul %206, %207, %cst_106 {dimension_numbers = #tpu.dot_dimension_numbers<[2], [2], [1], [1], [0, 0, 0, 1, 1, 1], [0], [0]>} : vector<2x8x32xbf16>, vector<2x8x32xbf16>, vector<2x8x8xf32> -> vector<2x8x8xf32>
    "tpu.trace_stop"() : () -> ()
    %cst_107 = arith.constant dense<0xFF800000> : vector<2x8xf32>
    %210 = vector.multi_reduction <maximumf>, %209, %cst_107 [2] : vector<2x8x8xf32> to vector<2x8xf32>
    %211 = vector.shape_cast %210 : vector<2x8xf32> to vector<2x8x1xf32>
    %212 = vector.broadcast %211 : vector<2x8x1xf32> to vector<2x8x8xf32>
    %213 = arith.subf %209, %212 : vector<2x8x8xf32>
    %214 = math.exp %213 : vector<2x8x8xf32>
    %cst_108 = arith.constant dense<0.000000e+00> : vector<2x8xf32>
    %215 = vector.multi_reduction <add>, %214, %cst_108 [2] : vector<2x8x8xf32> to vector<2x8xf32>
    %216 = vector.shape_cast %215 : vector<2x8xf32> to vector<2x8x1xf32>
    %217 = tpu.reciprocal %216 {approx = true} : vector<2x8x1xf32> -> vector<2x8x1xf32>
    %218 = vector.broadcast %217 : vector<2x8x1xf32> to vector<2x8x8xf32>
    %219 = arith.mulf %214, %218 : vector<2x8x8xf32>
    %220 = arith.truncf %219 : vector<2x8x8xf32> to vector<2x8x8xbf16>
    "tpu.trace_start"() <{level = 10 : i32, message = "bqk,bkd->bqd"}> : () -> ()
    %cst_109 = arith.constant dense<0.000000e+00> : vector<2x8x32xf32>
    %221 = tpu.matmul %220, %208, %cst_109 {dimension_numbers = #tpu.dot_dimension_numbers<[2], [1], [1], [2], [0, 0, 0, 1, 1, 2], [0], [0]>} : vector<2x8x8xbf16>, vector<2x8x32xbf16>, vector<2x8x32xf32> -> vector<2x8x32xf32>
    "tpu.trace_stop"() : () -> ()
    %222 = vector.extract_strided_slice %199 {offsets = [0, 0, 32], sizes = [2, 8, 32], strides = [1, 1, 1]} : vector<2x8x128xbf16> to vector<2x8x32xbf16>
    %223 = vector.extract_strided_slice %202 {offsets = [0, 0, 32], sizes = [2, 8, 32], strides = [1, 1, 1]} : vector<2x8x128xbf16> to vector<2x8x32xbf16>
    %224 = vector.extract_strided_slice %205 {offsets = [0, 0, 32], sizes = [2, 8, 32], strides = [1, 1, 1]} : vector<2x8x128xbf16> to vector<2x8x32xbf16>
    "tpu.trace_start"() <{level = 10 : i32, message = "bqd,bkd->bqk"}> : () -> ()
    %cst_110 = arith.constant dense<0.000000e+00> : vector<2x8x8xf32>
    %225 = tpu.matmul %222, %223, %cst_110 {dimension_numbers = #tpu.dot_dimension_numbers<[2], [2], [1], [1], [0, 0, 0, 1, 1, 1], [0], [0]>} : vector<2x8x32xbf16>, vector<2x8x32xbf16>, vector<2x8x8xf32> -> vector<2x8x8xf32>
    "tpu.trace_stop"() : () -> ()
    %cst_111 = arith.constant dense<0xFF800000> : vector<2x8xf32>
    %226 = vector.multi_reduction <maximumf>, %225, %cst_111 [2] : vector<2x8x8xf32> to vector<2x8xf32>
    %227 = vector.shape_cast %226 : vector<2x8xf32> to vector<2x8x1xf32>
    %228 = vector.broadcast %227 : vector<2x8x1xf32> to vector<2x8x8xf32>
    %229 = arith.subf %225, %228 : vector<2x8x8xf32>
    %230 = math.exp %229 : vector<2x8x8xf32>
    %cst_112 = arith.constant dense<0.000000e+00> : vector<2x8xf32>
    %231 = vector.multi_reduction <add>, %230, %cst_112 [2] : vector<2x8x8xf32> to vector<2x8xf32>
    %232 = vector.shape_cast %231 : vector<2x8xf32> to vector<2x8x1xf32>
    %233 = tpu.reciprocal %232 {approx = true} : vector<2x8x1xf32> -> vector<2x8x1xf32>
    %234 = vector.broadcast %233 : vector<2x8x1xf32> to vector<2x8x8xf32>
    %235 = arith.mulf %230, %234 : vector<2x8x8xf32>
    %236 = arith.truncf %235 : vector<2x8x8xf32> to vector<2x8x8xbf16>
    "tpu.trace_start"() <{level = 10 : i32, message = "bqk,bkd->bqd"}> : () -> ()
    %cst_113 = arith.constant dense<0.000000e+00> : vector<2x8x32xf32>
    %237 = tpu.matmul %236, %224, %cst_113 {dimension_numbers = #tpu.dot_dimension_numbers<[2], [1], [1], [2], [0, 0, 0, 1, 1, 2], [0], [0]>} : vector<2x8x8xbf16>, vector<2x8x32xbf16>, vector<2x8x32xf32> -> vector<2x8x32xf32>
    "tpu.trace_stop"() : () -> ()
    %238 = vector.extract_strided_slice %199 {offsets = [0, 0, 64], sizes = [2, 8, 32], strides = [1, 1, 1]} : vector<2x8x128xbf16> to vector<2x8x32xbf16>
    %239 = vector.extract_strided_slice %202 {offsets = [0, 0, 64], sizes = [2, 8, 32], strides = [1, 1, 1]} : vector<2x8x128xbf16> to vector<2x8x32xbf16>
    %240 = vector.extract_strided_slice %205 {offsets = [0, 0, 64], sizes = [2, 8, 32], strides = [1, 1, 1]} : vector<2x8x128xbf16> to vector<2x8x32xbf16>
    "tpu.trace_start"() <{level = 10 : i32, message = "bqd,bkd->bqk"}> : () -> ()
    %cst_114 = arith.constant dense<0.000000e+00> : vector<2x8x8xf32>
    %241 = tpu.matmul %238, %239, %cst_114 {dimension_numbers = #tpu.dot_dimension_numbers<[2], [2], [1], [1], [0, 0, 0, 1, 1, 1], [0], [0]>} : vector<2x8x32xbf16>, vector<2x8x32xbf16>, vector<2x8x8xf32> -> vector<2x8x8xf32>
    "tpu.trace_stop"() : () -> ()
    %cst_115 = arith.constant dense<0xFF800000> : vector<2x8xf32>
    %242 = vector.multi_reduction <maximumf>, %241, %cst_115 [2] : vector<2x8x8xf32> to vector<2x8xf32>
    %243 = vector.shape_cast %242 : vector<2x8xf32> to vector<2x8x1xf32>
    %244 = vector.broadcast %243 : vector<2x8x1xf32> to vector<2x8x8xf32>
    %245 = arith.subf %241, %244 : vector<2x8x8xf32>
    %246 = math.exp %245 : vector<2x8x8xf32>
    %cst_116 = arith.constant dense<0.000000e+00> : vector<2x8xf32>
    %247 = vector.multi_reduction <add>, %246, %cst_116 [2] : vector<2x8x8xf32> to vector<2x8xf32>
    %248 = vector.shape_cast %247 : vector<2x8xf32> to vector<2x8x1xf32>
    %249 = tpu.reciprocal %248 {approx = true} : vector<2x8x1xf32> -> vector<2x8x1xf32>
    %250 = vector.broadcast %249 : vector<2x8x1xf32> to vector<2x8x8xf32>
    %251 = arith.mulf %246, %250 : vector<2x8x8xf32>
    %252 = arith.truncf %251 : vector<2x8x8xf32> to vector<2x8x8xbf16>
    "tpu.trace_start"() <{level = 10 : i32, message = "bqk,bkd->bqd"}> : () -> ()
    %cst_117 = arith.constant dense<0.000000e+00> : vector<2x8x32xf32>
    %253 = tpu.matmul %252, %240, %cst_117 {dimension_numbers = #tpu.dot_dimension_numbers<[2], [1], [1], [2], [0, 0, 0, 1, 1, 2], [0], [0]>} : vector<2x8x8xbf16>, vector<2x8x32xbf16>, vector<2x8x32xf32> -> vector<2x8x32xf32>
    "tpu.trace_stop"() : () -> ()
    %254 = vector.extract_strided_slice %199 {offsets = [0, 0, 96], sizes = [2, 8, 32], strides = [1, 1, 1]} : vector<2x8x128xbf16> to vector<2x8x32xbf16>
    %255 = vector.extract_strided_slice %202 {offsets = [0, 0, 96], sizes = [2, 8, 32], strides = [1, 1, 1]} : vector<2x8x128xbf16> to vector<2x8x32xbf16>
    %256 = vector.extract_strided_slice %205 {offsets = [0, 0, 96], sizes = [2, 8, 32], strides = [1, 1, 1]} : vector<2x8x128xbf16> to vector<2x8x32xbf16>
    "tpu.trace_start"() <{level = 10 : i32, message = "bqd,bkd->bqk"}> : () -> ()
    %cst_118 = arith.constant dense<0.000000e+00> : vector<2x8x8xf32>
    %257 = tpu.matmul %254, %255, %cst_118 {dimension_numbers = #tpu.dot_dimension_numbers<[2], [2], [1], [1], [0, 0, 0, 1, 1, 1], [0], [0]>} : vector<2x8x32xbf16>, vector<2x8x32xbf16>, vector<2x8x8xf32> -> vector<2x8x8xf32>
    "tpu.trace_stop"() : () -> ()
    %cst_119 = arith.constant dense<0xFF800000> : vector<2x8xf32>
    %258 = vector.multi_reduction <maximumf>, %257, %cst_119 [2] : vector<2x8x8xf32> to vector<2x8xf32>
    %259 = vector.shape_cast %258 : vector<2x8xf32> to vector<2x8x1xf32>
    %260 = vector.broadcast %259 : vector<2x8x1xf32> to vector<2x8x8xf32>
    %261 = arith.subf %257, %260 : vector<2x8x8xf32>
    %262 = math.exp %261 : vector<2x8x8xf32>
    %cst_120 = arith.constant dense<0.000000e+00> : vector<2x8xf32>
    %263 = vector.multi_reduction <add>, %262, %cst_120 [2] : vector<2x8x8xf32> to vector<2x8xf32>
    %264 = vector.shape_cast %263 : vector<2x8xf32> to vector<2x8x1xf32>
    %265 = tpu.reciprocal %264 {approx = true} : vector<2x8x1xf32> -> vector<2x8x1xf32>
    %266 = vector.broadcast %265 : vector<2x8x1xf32> to vector<2x8x8xf32>
    %267 = arith.mulf %262, %266 : vector<2x8x8xf32>
    %268 = arith.truncf %267 : vector<2x8x8xf32> to vector<2x8x8xbf16>
    "tpu.trace_start"() <{level = 10 : i32, message = "bqk,bkd->bqd"}> : () -> ()
    %cst_121 = arith.constant dense<0.000000e+00> : vector<2x8x32xf32>
    %269 = tpu.matmul %268, %256, %cst_121 {dimension_numbers = #tpu.dot_dimension_numbers<[2], [1], [1], [2], [0, 0, 0, 1, 1, 2], [0], [0]>} : vector<2x8x8xbf16>, vector<2x8x32xbf16>, vector<2x8x32xf32> -> vector<2x8x32xf32>
    "tpu.trace_stop"() : () -> ()
    %270 = tpu.concatenate %221, %237, %253, %269 in 2 : vector<2x8x32xf32>, vector<2x8x32xf32>, vector<2x8x32xf32>, vector<2x8x32xf32> -> vector<2x8x128xf32>
    %271 = vector.shape_cast %270 : vector<2x8x128xf32> to vector<16x128xf32>
    %272 = arith.truncf %271 : vector<16x128xf32> to vector<16x128xbf16>
    %cst_122 = arith.constant dense<0.000000e+00> : vector<16x128xf32>
    %273 = tpu.matmul %272, %172, %cst_122 {dimension_numbers = #tpu.dot_dimension_numbers<[1], [0], [0], [1], [0, 0, 1, 1], [], []>} : vector<16x128xbf16>, vector<128x128xbf16>, vector<16x128xf32> -> vector<16x128xf32>
    %274 = vector.broadcast %182 : vector<1x128xf32> to vector<16x128xf32>
    %275 = arith.addf %273, %274 : vector<16x128xf32>
    %276 = arith.addf %168, %275 : vector<16x128xf32>
    %cst_123 = arith.constant dense<0.000000e+00> : vector<16xf32>
    %277 = vector.multi_reduction <add>, %276, %cst_123 [1] : vector<16x128xf32> to vector<16xf32>
    %278 = vector.shape_cast %277 : vector<16xf32> to vector<16x1xf32>
    %cst_124 = arith.constant 1.280000e+02 : f32
    %279 = vector.broadcast %cst_124 : f32 to vector<16x1xf32>
    %280 = arith.divf %278, %279 : vector<16x1xf32>
    %281 = vector.broadcast %280 : vector<16x1xf32> to vector<16x128xf32>
    %282 = arith.subf %276, %281 : vector<16x128xf32>
    %283 = arith.mulf %282, %282 : vector<16x128xf32>
    %cst_125 = arith.constant dense<0.000000e+00> : vector<16xf32>
    %284 = vector.multi_reduction <add>, %283, %cst_125 [1] : vector<16x128xf32> to vector<16xf32>
    %285 = vector.shape_cast %284 : vector<16xf32> to vector<16x1xf32>
    %cst_126 = arith.constant 1.280000e+02 : f32
    %286 = vector.broadcast %cst_126 : f32 to vector<16x1xf32>
    %287 = arith.divf %285, %286 : vector<16x1xf32>
    %288 = vector.broadcast %280 : vector<16x1xf32> to vector<16x128xf32>
    %289 = arith.subf %276, %288 : vector<16x128xf32>
    %cst_127 = arith.constant 9.99999974E-6 : f32
    %290 = vector.broadcast %cst_127 : f32 to vector<16x1xf32>
    %291 = arith.addf %287, %290 : vector<16x1xf32>
    %292 = math.rsqrt %291 : vector<16x1xf32>
    %293 = vector.broadcast %292 : vector<16x1xf32> to vector<16x128xf32>
    %294 = arith.mulf %289, %293 : vector<16x128xf32>
    %295 = vector.broadcast %184 : vector<1x128xf32> to vector<16x128xf32>
    %296 = arith.mulf %294, %295 : vector<16x128xf32>
    %297 = vector.broadcast %186 : vector<1x128xf32> to vector<16x128xf32>
    %298 = arith.addf %296, %297 : vector<16x128xf32>
    %299 = arith.truncf %298 : vector<16x128xf32> to vector<16x128xbf16>
    %cst_128 = arith.constant dense<0.000000e+00> : vector<16x256xf32>
    %300 = tpu.matmul %299, %174, %cst_128 {dimension_numbers = #tpu.dot_dimension_numbers<[1], [0], [0], [1], [0, 0, 1, 1], [], []>} : vector<16x128xbf16>, vector<128x256xbf16>, vector<16x256xf32> -> vector<16x256xf32>
    %301 = vector.broadcast %180 : vector<1x256xf32> to vector<16x256xf32>
    %302 = arith.addf %300, %301 : vector<16x256xf32>
    %cst_129 = arith.constant 0.000000e+00 : f32
    %303 = vector.broadcast %cst_129 : f32 to vector<16x256xf32>
    %304 = arith.maximumf %302, %303 : vector<16x256xf32>
    %305 = arith.truncf %304 : vector<16x256xf32> to vector<16x256xbf16>
    %cst_130 = arith.constant dense<0.000000e+00> : vector<16x128xf32>
    %306 = tpu.matmul %305, %176, %cst_130 {dimension_numbers = #tpu.dot_dimension_numbers<[1], [0], [0], [1], [0, 0, 1, 1], [], []>} : vector<16x256xbf16>, vector<256x128xbf16>, vector<16x128xf32> -> vector<16x128xf32>
    %307 = vector.broadcast %188 : vector<1x128xf32> to vector<16x128xf32>
    %308 = arith.addf %306, %307 : vector<16x128xf32>
    %309 = arith.addf %298, %308 : vector<16x128xf32>
    %cst_131 = arith.constant dense<0.000000e+00> : vector<16xf32>
    %310 = vector.multi_reduction <add>, %309, %cst_131 [1] : vector<16x128xf32> to vector<16xf32>
    %311 = vector.shape_cast %310 : vector<16xf32> to vector<16x1xf32>
    %cst_132 = arith.constant 1.280000e+02 : f32
    %312 = vector.broadcast %cst_132 : f32 to vector<16x1xf32>
    %313 = arith.divf %311, %312 : vector<16x1xf32>
    %314 = vector.broadcast %313 : vector<16x1xf32> to vector<16x128xf32>
    %315 = arith.subf %309, %314 : vector<16x128xf32>
    %316 = arith.mulf %315, %315 : vector<16x128xf32>
    %cst_133 = arith.constant dense<0.000000e+00> : vector<16xf32>
    %317 = vector.multi_reduction <add>, %316, %cst_133 [1] : vector<16x128xf32> to vector<16xf32>
    %318 = vector.shape_cast %317 : vector<16xf32> to vector<16x1xf32>
    %cst_134 = arith.constant 1.280000e+02 : f32
    %319 = vector.broadcast %cst_134 : f32 to vector<16x1xf32>
    %320 = arith.divf %318, %319 : vector<16x1xf32>
    %321 = vector.broadcast %313 : vector<16x1xf32> to vector<16x128xf32>
    %322 = arith.subf %309, %321 : vector<16x128xf32>
    %cst_135 = arith.constant 9.99999974E-6 : f32
    %323 = vector.broadcast %cst_135 : f32 to vector<16x1xf32>
    %324 = arith.addf %320, %323 : vector<16x1xf32>
    %325 = math.rsqrt %324 : vector<16x1xf32>
    %326 = vector.broadcast %325 : vector<16x1xf32> to vector<16x128xf32>
    %327 = arith.mulf %322, %326 : vector<16x128xf32>
    %328 = vector.broadcast %190 : vector<1x128xf32> to vector<16x128xf32>
    %329 = arith.mulf %327, %328 : vector<16x128xf32>
    %330 = vector.broadcast %192 : vector<1x128xf32> to vector<16x128xf32>
    %331 = arith.addf %329, %330 : vector<16x128xf32>
    %332 = vector.shape_cast %331 : vector<16x128xf32> to vector<2x8x128xf32>
    %c0_136 = arith.constant 0 : index
    %c0_137 = arith.constant 0 : index
    %c0_138 = arith.constant 0 : index
    %333 = vector.load %arg15[%c0_136, %c0_137, %c0_138] : memref<2x8x128xf32, #tpu.memory_space<vmem>>, vector<2x8x128xf32>
    tpu.vector_store %arg15[%c0_136, %c0_137, %c0_138], %332 {strides = array<i32>} : memref<2x8x128xf32, #tpu.memory_space<vmem>>, vector<2x8x128xf32>,
    return
  }
  func.func @transform_0(%arg0: i32) -> (i32, i32, i32) {
    %c0_i32 = arith.constant 0 : i32
    %c0_i32_0 = arith.constant 0 : i32
    %c0_i32_1 = arith.constant 0 : i32
    return %arg0, %c0_i32, %c0_i32_0 : i32, i32, i32
  }
  func.func @transform_1(%arg0: i32) -> (i32, i32) {
    %c0_i32 = arith.constant 0 : i32
    %c0_i32_0 = arith.constant 0 : i32
    %c0_i32_1 = arith.constant 0 : i32
    return %c0_i32, %c0_i32_0 : i32, i32
  }
  func.func @transform_2(%arg0: i32) -> (i32, i32, i32) {
    %c0_i32 = arith.constant 0 : i32
    %c0_i32_0 = arith.constant 0 : i32
    %c0_i32_1 = arith.constant 0 : i32
    %c0_i32_2 = arith.constant 0 : i32
    return %c0_i32, %c0_i32_0, %c0_i32_1 : i32, i32, i32
  }
  func.func @transform_3(%arg0: i32) -> (i32, i32, i32) {
    %c0_i32 = arith.constant 0 : i32
    %c0_i32_0 = arith.constant 0 : i32
    %c0_i32_1 = arith.constant 0 : i32
    %c0_i32_2 = arith.constant 0 : i32
    return %c0_i32, %c0_i32_0, %c0_i32_1 : i32, i32, i32
  }
  func.func @transform_4(%arg0: i32) -> (i32, i32, i32) {
    %c0_i32 = arith.constant 0 : i32
    %c0_i32_0 = arith.constant 0 : i32
    %c0_i32_1 = arith.constant 0 : i32
    %c0_i32_2 = arith.constant 0 : i32
    return %c0_i32, %c0_i32_0, %c0_i32_1 : i32, i32, i32
  }
  func.func @transform_5(%arg0: i32) -> (i32, i32, i32) {
    %c0_i32 = arith.constant 0 : i32
    %c0_i32_0 = arith.constant 0 : i32
    %c0_i32_1 = arith.constant 0 : i32
    %c0_i32_2 = arith.constant 0 : i32
    return %c0_i32, %c0_i32_0, %c0_i32_1 : i32, i32, i32
  }
  func.func @transform_6(%arg0: i32) -> (i32, i32, i32) {
    %c0_i32 = arith.constant 0 : i32
    %c0_i32_0 = arith.constant 0 : i32
    %c0_i32_1 = arith.constant 0 : i32
    %c0_i32_2 = arith.constant 0 : i32
    return %c0_i32, %c0_i32_0, %c0_i32_1 : i32, i32, i32
  }
  func.func @transform_7(%arg0: i32) -> (i32, i32, i32) {
    %c0_i32 = arith.constant 0 : i32
    %c0_i32_0 = arith.constant 0 : i32
    %c0_i32_1 = arith.constant 0 : i32
    %c0_i32_2 = arith.constant 0 : i32
    return %c0_i32, %c0_i32_0, %c0_i32_1 : i32, i32, i32
  }
  func.func @transform_8(%arg0: i32) -> (i32, i32, i32) {
    %c0_i32 = arith.constant 0 : i32
    %c0_i32_0 = arith.constant 0 : i32
    %c0_i32_1 = arith.constant 0 : i32
    %c0_i32_2 = arith.constant 0 : i32
    return %c0_i32, %c0_i32_0, %c0_i32_1 : i32, i32, i32
  }
  func.func @transform_9(%arg0: i32) -> (i32, i32, i32) {
    %c0_i32 = arith.constant 0 : i32
    %c0_i32_0 = arith.constant 0 : i32
    %c0_i32_1 = arith.constant 0 : i32
    %c0_i32_2 = arith.constant 0 : i32
    return %c0_i32, %c0_i32_0, %c0_i32_1 : i32, i32, i32
  }
  func.func @transform_10(%arg0: i32) -> (i32, i32, i32) {
    %c0_i32 = arith.constant 0 : i32
    %c0_i32_0 = arith.constant 0 : i32
    %c0_i32_1 = arith.constant 0 : i32
    %c0_i32_2 = arith.constant 0 : i32
    return %c0_i32, %c0_i32_0, %c0_i32_1 : i32, i32, i32
  }
  func.func @transform_11(%arg0: i32) -> (i32, i32, i32) {
    %c0_i32 = arith.constant 0 : i32
    %c0_i32_0 = arith.constant 0 : i32
    %c0_i32_1 = arith.constant 0 : i32
    %c0_i32_2 = arith.constant 0 : i32
    return %c0_i32, %c0_i32_0, %c0_i32_1 : i32, i32, i32
  }
  func.func @transform_12(%arg0: i32) -> (i32, i32, i32) {
    %c0_i32 = arith.constant 0 : i32
    %c0_i32_0 = arith.constant 0 : i32
    %c0_i32_1 = arith.constant 0 : i32
    %c0_i32_2 = arith.constant 0 : i32
    return %c0_i32, %c0_i32_0, %c0_i32_1 : i32, i32, i32
  }
  func.func @transform_13(%arg0: i32) -> (i32, i32, i32) {
    %c0_i32 = arith.constant 0 : i32
    %c0_i32_0 = arith.constant 0 : i32
    %c0_i32_1 = arith.constant 0 : i32
    %c0_i32_2 = arith.constant 0 : i32
    return %c0_i32, %c0_i32_0, %c0_i32_1 : i32, i32, i32
  }
  func.func @transform_14(%arg0: i32) -> (i32, i32, i32) {
    %c0_i32 = arith.constant 0 : i32
    %c0_i32_0 = arith.constant 0 : i32
    %c0_i32_1 = arith.constant 0 : i32
    return %arg0, %c0_i32, %c0_i32_0 : i32, i32, i32
  }
}

module attributes {stable_mosaic.version = 11 : i64} {
  func.func @kernel(%arg0: i32, %arg1: memref<2x8x128xf32, #tpu.memory_space<vmem>>, %arg2: memref<8x128xf32, #tpu.memory_space<vmem>>, %arg3: memref<2x128x384xbf16, #tpu.memory_space<vmem>>, %arg4: memref<2x128x128xbf16, #tpu.memory_space<vmem>>, %arg5: memref<2x128x256xbf16, #tpu.memory_space<vmem>>, %arg6: memref<2x256x128xbf16, #tpu.memory_space<vmem>>, %arg7: memref<2x1x384xf32, #tpu.memory_space<vmem>>, %arg8: memref<2x1x256xf32, #tpu.memory_space<vmem>>, %arg9: memref<2x1x128xf32, #tpu.memory_space<vmem>>, %arg10: memref<2x1x128xf32, #tpu.memory_space<vmem>>, %arg11: memref<2x1x128xf32, #tpu.memory_space<vmem>>, %arg12: memref<2x1x128xf32, #tpu.memory_space<vmem>>, %arg13: memref<2x1x128xf32, #tpu.memory_space<vmem>>, %arg14: memref<2x1x128xf32, #tpu.memory_space<vmem>>, %arg15: memref<2x8x128xf32, #tpu.memory_space<vmem>>) attributes {dimension_semantics = [#tpu.dimension_semantics<parallel>], iteration_bounds = array<i64: 1>, scalar_prefetch = 0 : i64, scratch_operands = 0 : i64, tpu.core_type = #tpu.core_type<tc>, window_params = [{transform_indices = @transform_0, window_bounds = array<i64: 2, 8, 128>}, {pipeline_mode = #tpu.pipeline_mode<synchronous>, transform_indices = @transform_1, window_bounds = array<i64: 8, 128>}, {pipeline_mode = #tpu.pipeline_mode<synchronous>, transform_indices = @transform_2, window_bounds = array<i64: 2, 128, 384>}, {pipeline_mode = #tpu.pipeline_mode<synchronous>, transform_indices = @transform_3, window_bounds = array<i64: 2, 128, 128>}, {pipeline_mode = #tpu.pipeline_mode<synchronous>, transform_indices = @transform_4, window_bounds = array<i64: 2, 128, 256>}, {pipeline_mode = #tpu.pipeline_mode<synchronous>, transform_indices = @transform_5, window_bounds = array<i64: 2, 256, 128>}, {pipeline_mode = #tpu.pipeline_mode<synchronous>, transform_indices = @transform_6, window_bounds = array<i64: 2, 1, 384>}, {pipeline_mode = #tpu.pipeline_mode<synchronous>, transform_indices = @transform_7, window_bounds = array<i64: 2, 1, 256>}, {pipeline_mode = #tpu.pipeline_mode<synchronous>, transform_indices = @transform_8, window_bounds = array<i64: 2, 1, 128>}, {pipeline_mode = #tpu.pipeline_mode<synchronous>, transform_indices = @transform_9, window_bounds = array<i64: 2, 1, 128>}, {pipeline_mode = #tpu.pipeline_mode<synchronous>, transform_indices = @transform_10, window_bounds = array<i64: 2, 1, 128>}, {pipeline_mode = #tpu.pipeline_mode<synchronous>, transform_indices = @transform_11, window_bounds = array<i64: 2, 1, 128>}, {pipeline_mode = #tpu.pipeline_mode<synchronous>, transform_indices = @transform_12, window_bounds = array<i64: 2, 1, 128>}, {pipeline_mode = #tpu.pipeline_mode<synchronous>, transform_indices = @transform_13, window_bounds = array<i64: 2, 1, 128>}, {transform_indices = @transform_14, window_bounds = array<i64: 2, 8, 128>}]} {
    %c0 = arith.constant 0 : index
    %c0_0 = arith.constant 0 : index
    %c0_1 = arith.constant 0 : index
    %0 = vector.load %arg1[%c0, %c0_0, %c0_1] : memref<2x8x128xf32, #tpu.memory_space<vmem>>, vector<2x8x128xf32>
    %c0_2 = arith.constant 0 : index
    %c0_3 = arith.constant 0 : index
    %1 = vector.load %arg2[%c0_2, %c0_3] : memref<8x128xf32, #tpu.memory_space<vmem>>, vector<8x128xf32>
    %2 = vector.shape_cast %1 : vector<8x128xf32> to vector<1x8x128xf32>
    %3 = vector.broadcast %2 : vector<1x8x128xf32> to vector<2x8x128xf32>
    %4 = arith.addf %0, %3 : vector<2x8x128xf32>
    %5 = vector.shape_cast %4 : vector<2x8x128xf32> to vector<16x128xf32>
    %c0_4 = arith.constant 0 : index
    %c0_5 = arith.constant 0 : index
    %c0_6 = arith.constant 0 : index
    %6 = vector.load %arg3[%c0_4, %c0_5, %c0_6] : memref<2x128x384xbf16, #tpu.memory_space<vmem>>, vector<1x128x384xbf16>
    %7 = vector.shape_cast %6 : vector<1x128x384xbf16> to vector<128x384xbf16>
    %c0_7 = arith.constant 0 : index
    %c0_8 = arith.constant 0 : index
    %c0_9 = arith.constant 0 : index
    %8 = vector.load %arg4[%c0_7, %c0_8, %c0_9] : memref<2x128x128xbf16, #tpu.memory_space<vmem>>, vector<1x128x128xbf16>
    %9 = vector.shape_cast %8 : vector<1x128x128xbf16> to vector<128x128xbf16>
    %c0_10 = arith.constant 0 : index
    %c0_11 = arith.constant 0 : index
    %c0_12 = arith.constant 0 : index
    %10 = vector.load %arg5[%c0_10, %c0_11, %c0_12] : memref<2x128x256xbf16, #tpu.memory_space<vmem>>, vector<1x128x256xbf16>
    %11 = vector.shape_cast %10 : vector<1x128x256xbf16> to vector<128x256xbf16>
    %c0_13 = arith.constant 0 : index
    %c0_14 = arith.constant 0 : index
    %c0_15 = arith.constant 0 : index
    %12 = vector.load %arg6[%c0_13, %c0_14, %c0_15] : memref<2x256x128xbf16, #tpu.memory_space<vmem>>, vector<1x256x128xbf16>
    %13 = vector.shape_cast %12 : vector<1x256x128xbf16> to vector<256x128xbf16>
    %c0_16 = arith.constant 0 : index
    %c0_17 = arith.constant 0 : index
    %c0_18 = arith.constant 0 : index
    %14 = vector.load %arg7[%c0_16, %c0_17, %c0_18] : memref<2x1x384xf32, #tpu.memory_space<vmem>>, vector<1x1x384xf32>
    %15 = vector.shape_cast %14 : vector<1x1x384xf32> to vector<1x384xf32>
    %c0_19 = arith.constant 0 : index
    %c0_20 = arith.constant 0 : index
    %c0_21 = arith.constant 0 : index
    %16 = vector.load %arg8[%c0_19, %c0_20, %c0_21] : memref<2x1x256xf32, #tpu.memory_space<vmem>>, vector<1x1x256xf32>
    %17 = vector.shape_cast %16 : vector<1x1x256xf32> to vector<1x256xf32>
    %c0_22 = arith.constant 0 : index
    %c0_23 = arith.constant 0 : index
    %c0_24 = arith.constant 0 : index
    %18 = vector.load %arg9[%c0_22, %c0_23, %c0_24] : memref<2x1x128xf32, #tpu.memory_space<vmem>>, vector<1x1x128xf32>
    %19 = vector.shape_cast %18 : vector<1x1x128xf32> to vector<1x128xf32>
    %c0_25 = arith.constant 0 : index
    %c0_26 = arith.constant 0 : index
    %c0_27 = arith.constant 0 : index
    %20 = vector.load %arg10[%c0_25, %c0_26, %c0_27] : memref<2x1x128xf32, #tpu.memory_space<vmem>>, vector<1x1x128xf32>
    %21 = vector.shape_cast %20 : vector<1x1x128xf32> to vector<1x128xf32>
    %c0_28 = arith.constant 0 : index
    %c0_29 = arith.constant 0 : index
    %c0_30 = arith.constant 0 : index
    %22 = vector.load %arg11[%c0_28, %c0_29, %c0_30] : memref<2x1x128xf32, #tpu.memory_space<vmem>>, vector<1x1x128xf32>
    %23 = vector.shape_cast %22 : vector<1x1x128xf32> to vector<1x128xf32>
    %c0_31 = arith.constant 0 : index
    %c0_32 = arith.constant 0 : index
    %c0_33 = arith.constant 0 : index
    %24 = vector.load %arg12[%c0_31, %c0_32, %c0_33] : memref<2x1x128xf32, #tpu.memory_space<vmem>>, vector<1x1x128xf32>
    %25 = vector.shape_cast %24 : vector<1x1x128xf32> to vector<1x128xf32>
    %c0_34 = arith.constant 0 : index
    %c0_35 = arith.constant 0 : index
    %c0_36 = arith.constant 0 : index
    %26 = vector.load %arg13[%c0_34, %c0_35, %c0_36] : memref<2x1x128xf32, #tpu.memory_space<vmem>>, vector<1x1x128xf32>
    %27 = vector.shape_cast %26 : vector<1x1x128xf32> to vector<1x128xf32>
    %c0_37 = arith.constant 0 : index
    %c0_38 = arith.constant 0 : index
    %c0_39 = arith.constant 0 : index
    %28 = vector.load %arg14[%c0_37, %c0_38, %c0_39] : memref<2x1x128xf32, #tpu.memory_space<vmem>>, vector<1x1x128xf32>
    %29 = vector.shape_cast %28 : vector<1x1x128xf32> to vector<1x128xf32>
    %30 = arith.truncf %5 : vector<16x128xf32> to vector<16x128xbf16>
    %cst = arith.constant dense<0.000000e+00> : vector<16x384xf32>
    %31 = tpu.matmul %30, %7, %cst {dimension_numbers = #tpu.dot_dimension_numbers<[1], [0], [0], [1], [0, 0, 1, 1], [], []>} : vector<16x128xbf16>, vector<128x384xbf16>, vector<16x384xf32> -> vector<16x384xf32>
    %32 = vector.broadcast %15 : vector<1x384xf32> to vector<16x384xf32>
    %33 = arith.addf %31, %32 : vector<16x384xf32>
    %34 = vector.extract_strided_slice %33 {offsets = [0, 0], sizes = [16, 128], strides = [1, 1]} : vector<16x384xf32> to vector<16x128xf32>
    %35 = vector.shape_cast %34 : vector<16x128xf32> to vector<2x8x128xf32>
    %36 = arith.truncf %35 : vector<2x8x128xf32> to vector<2x8x128xbf16>
    %37 = vector.extract_strided_slice %33 {offsets = [0, 128], sizes = [16, 128], strides = [1, 1]} : vector<16x384xf32> to vector<16x128xf32>
    %38 = vector.shape_cast %37 : vector<16x128xf32> to vector<2x8x128xf32>
    %39 = arith.truncf %38 : vector<2x8x128xf32> to vector<2x8x128xbf16>
    %40 = vector.extract_strided_slice %33 {offsets = [0, 256], sizes = [16, 128], strides = [1, 1]} : vector<16x384xf32> to vector<16x128xf32>
    %41 = vector.shape_cast %40 : vector<16x128xf32> to vector<2x8x128xf32>
    %42 = arith.truncf %41 : vector<2x8x128xf32> to vector<2x8x128xbf16>
    %43 = vector.extract_strided_slice %36 {offsets = [0, 0, 0], sizes = [2, 8, 32], strides = [1, 1, 1]} : vector<2x8x128xbf16> to vector<2x8x32xbf16>
    %44 = vector.extract_strided_slice %39 {offsets = [0, 0, 0], sizes = [2, 8, 32], strides = [1, 1, 1]} : vector<2x8x128xbf16> to vector<2x8x32xbf16>
    %45 = vector.extract_strided_slice %42 {offsets = [0, 0, 0], sizes = [2, 8, 32], strides = [1, 1, 1]} : vector<2x8x128xbf16> to vector<2x8x32xbf16>
    "tpu.trace_start"() <{level = 10 : i32, message = "bqd,bkd->bqk"}> : () -> ()
    %cst_40 = arith.constant dense<0.000000e+00> : vector<2x8x8xf32>
    %46 = tpu.matmul %43, %44, %cst_40 {dimension_numbers = #tpu.dot_dimension_numbers<[2], [2], [1], [1], [0, 0, 0, 1, 1, 1], [0], [0]>} : vector<2x8x32xbf16>, vector<2x8x32xbf16>, vector<2x8x8xf32> -> vector<2x8x8xf32>
    "tpu.trace_stop"() : () -> ()
    %cst_41 = arith.constant dense<0xFF800000> : vector<2x8xf32>
    %47 = vector.multi_reduction <maximumf>, %46, %cst_41 [2] : vector<2x8x8xf32> to vector<2x8xf32>
    %48 = vector.shape_cast %47 : vector<2x8xf32> to vector<2x8x1xf32>
    %49 = vector.broadcast %48 : vector<2x8x1xf32> to vector<2x8x8xf32>
    %50 = arith.subf %46, %49 : vector<2x8x8xf32>
    %51 = math.exp %50 : vector<2x8x8xf32>
    %cst_42 = arith.constant dense<0.000000e+00> : vector<2x8xf32>
    %52 = vector.multi_reduction <add>, %51, %cst_42 [2] : vector<2x8x8xf32> to vector<2x8xf32>
    %53 = vector.shape_cast %52 : vector<2x8xf32> to vector<2x8x1xf32>
    %54 = tpu.reciprocal %53 {approx = true} : vector<2x8x1xf32> -> vector<2x8x1xf32>
    %55 = vector.broadcast %54 : vector<2x8x1xf32> to vector<2x8x8xf32>
    %56 = arith.mulf %51, %55 : vector<2x8x8xf32>
    %57 = arith.truncf %56 : vector<2x8x8xf32> to vector<2x8x8xbf16>
    "tpu.trace_start"() <{level = 10 : i32, message = "bqk,bkd->bqd"}> : () -> ()
    %cst_43 = arith.constant dense<0.000000e+00> : vector<2x8x32xf32>
    %58 = tpu.matmul %57, %45, %cst_43 {dimension_numbers = #tpu.dot_dimension_numbers<[2], [1], [1], [2], [0, 0, 0, 1, 1, 2], [0], [0]>} : vector<2x8x8xbf16>, vector<2x8x32xbf16>, vector<2x8x32xf32> -> vector<2x8x32xf32>
    "tpu.trace_stop"() : () -> ()
    %59 = vector.extract_strided_slice %36 {offsets = [0, 0, 32], sizes = [2, 8, 32], strides = [1, 1, 1]} : vector<2x8x128xbf16> to vector<2x8x32xbf16>
    %60 = vector.extract_strided_slice %39 {offsets = [0, 0, 32], sizes = [2, 8, 32], strides = [1, 1, 1]} : vector<2x8x128xbf16> to vector<2x8x32xbf16>
    %61 = vector.extract_strided_slice %42 {offsets = [0, 0, 32], sizes = [2, 8, 32], strides = [1, 1, 1]} : vector<2x8x128xbf16> to vector<2x8x32xbf16>
    "tpu.trace_start"() <{level = 10 : i32, message = "bqd,bkd->bqk"}> : () -> ()
    %cst_44 = arith.constant dense<0.000000e+00> : vector<2x8x8xf32>
    %62 = tpu.matmul %59, %60, %cst_44 {dimension_numbers = #tpu.dot_dimension_numbers<[2], [2], [1], [1], [0, 0, 0, 1, 1, 1], [0], [0]>} : vector<2x8x32xbf16>, vector<2x8x32xbf16>, vector<2x8x8xf32> -> vector<2x8x8xf32>
    "tpu.trace_stop"() : () -> ()
    %cst_45 = arith.constant dense<0xFF800000> : vector<2x8xf32>
    %63 = vector.multi_reduction <maximumf>, %62, %cst_45 [2] : vector<2x8x8xf32> to vector<2x8xf32>
    %64 = vector.shape_cast %63 : vector<2x8xf32> to vector<2x8x1xf32>
    %65 = vector.broadcast %64 : vector<2x8x1xf32> to vector<2x8x8xf32>
    %66 = arith.subf %62, %65 : vector<2x8x8xf32>
    %67 = math.exp %66 : vector<2x8x8xf32>
    %cst_46 = arith.constant dense<0.000000e+00> : vector<2x8xf32>
    %68 = vector.multi_reduction <add>, %67, %cst_46 [2] : vector<2x8x8xf32> to vector<2x8xf32>
    %69 = vector.shape_cast %68 : vector<2x8xf32> to vector<2x8x1xf32>
    %70 = tpu.reciprocal %69 {approx = true} : vector<2x8x1xf32> -> vector<2x8x1xf32>
    %71 = vector.broadcast %70 : vector<2x8x1xf32> to vector<2x8x8xf32>
    %72 = arith.mulf %67, %71 : vector<2x8x8xf32>
    %73 = arith.truncf %72 : vector<2x8x8xf32> to vector<2x8x8xbf16>
    "tpu.trace_start"() <{level = 10 : i32, message = "bqk,bkd->bqd"}> : () -> ()
    %cst_47 = arith.constant dense<0.000000e+00> : vector<2x8x32xf32>
    %74 = tpu.matmul %73, %61, %cst_47 {dimension_numbers = #tpu.dot_dimension_numbers<[2], [1], [1], [2], [0, 0, 0, 1, 1, 2], [0], [0]>} : vector<2x8x8xbf16>, vector<2x8x32xbf16>, vector<2x8x32xf32> -> vector<2x8x32xf32>
    "tpu.trace_stop"() : () -> ()
    %75 = vector.extract_strided_slice %36 {offsets = [0, 0, 64], sizes = [2, 8, 32], strides = [1, 1, 1]} : vector<2x8x128xbf16> to vector<2x8x32xbf16>
    %76 = vector.extract_strided_slice %39 {offsets = [0, 0, 64], sizes = [2, 8, 32], strides = [1, 1, 1]} : vector<2x8x128xbf16> to vector<2x8x32xbf16>
    %77 = vector.extract_strided_slice %42 {offsets = [0, 0, 64], sizes = [2, 8, 32], strides = [1, 1, 1]} : vector<2x8x128xbf16> to vector<2x8x32xbf16>
    "tpu.trace_start"() <{level = 10 : i32, message = "bqd,bkd->bqk"}> : () -> ()
    %cst_48 = arith.constant dense<0.000000e+00> : vector<2x8x8xf32>
    %78 = tpu.matmul %75, %76, %cst_48 {dimension_numbers = #tpu.dot_dimension_numbers<[2], [2], [1], [1], [0, 0, 0, 1, 1, 1], [0], [0]>} : vector<2x8x32xbf16>, vector<2x8x32xbf16>, vector<2x8x8xf32> -> vector<2x8x8xf32>
    "tpu.trace_stop"() : () -> ()
    %cst_49 = arith.constant dense<0xFF800000> : vector<2x8xf32>
    %79 = vector.multi_reduction <maximumf>, %78, %cst_49 [2] : vector<2x8x8xf32> to vector<2x8xf32>
    %80 = vector.shape_cast %79 : vector<2x8xf32> to vector<2x8x1xf32>
    %81 = vector.broadcast %80 : vector<2x8x1xf32> to vector<2x8x8xf32>
    %82 = arith.subf %78, %81 : vector<2x8x8xf32>
    %83 = math.exp %82 : vector<2x8x8xf32>
    %cst_50 = arith.constant dense<0.000000e+00> : vector<2x8xf32>
    %84 = vector.multi_reduction <add>, %83, %cst_50 [2] : vector<2x8x8xf32> to vector<2x8xf32>
    %85 = vector.shape_cast %84 : vector<2x8xf32> to vector<2x8x1xf32>
    %86 = tpu.reciprocal %85 {approx = true} : vector<2x8x1xf32> -> vector<2x8x1xf32>
    %87 = vector.broadcast %86 : vector<2x8x1xf32> to vector<2x8x8xf32>
    %88 = arith.mulf %83, %87 : vector<2x8x8xf32>
    %89 = arith.truncf %88 : vector<2x8x8xf32> to vector<2x8x8xbf16>
    "tpu.trace_start"() <{level = 10 : i32, message = "bqk,bkd->bqd"}> : () -> ()
    %cst_51 = arith.constant dense<0.000000e+00> : vector<2x8x32xf32>
    %90 = tpu.matmul %89, %77, %cst_51 {dimension_numbers = #tpu.dot_dimension_numbers<[2], [1], [1], [2], [0, 0, 0, 1, 1, 2], [0], [0]>} : vector<2x8x8xbf16>, vector<2x8x32xbf16>, vector<2x8x32xf32> -> vector<2x8x32xf32>
    "tpu.trace_stop"() : () -> ()
    %91 = vector.extract_strided_slice %36 {offsets = [0, 0, 96], sizes = [2, 8, 32], strides = [1, 1, 1]} : vector<2x8x128xbf16> to vector<2x8x32xbf16>
    %92 = vector.extract_strided_slice %39 {offsets = [0, 0, 96], sizes = [2, 8, 32], strides = [1, 1, 1]} : vector<2x8x128xbf16> to vector<2x8x32xbf16>
    %93 = vector.extract_strided_slice %42 {offsets = [0, 0, 96], sizes = [2, 8, 32], strides = [1, 1, 1]} : vector<2x8x128xbf16> to vector<2x8x32xbf16>
    "tpu.trace_start"() <{level = 10 : i32, message = "bqd,bkd->bqk"}> : () -> ()
    %cst_52 = arith.constant dense<0.000000e+00> : vector<2x8x8xf32>
    %94 = tpu.matmul %91, %92, %cst_52 {dimension_numbers = #tpu.dot_dimension_numbers<[2], [2], [1], [1], [0, 0, 0, 1, 1, 1], [0], [0]>} : vector<2x8x32xbf16>, vector<2x8x32xbf16>, vector<2x8x8xf32> -> vector<2x8x8xf32>
    "tpu.trace_stop"() : () -> ()
    %cst_53 = arith.constant dense<0xFF800000> : vector<2x8xf32>
    %95 = vector.multi_reduction <maximumf>, %94, %cst_53 [2] : vector<2x8x8xf32> to vector<2x8xf32>
    %96 = vector.shape_cast %95 : vector<2x8xf32> to vector<2x8x1xf32>
    %97 = vector.broadcast %96 : vector<2x8x1xf32> to vector<2x8x8xf32>
    %98 = arith.subf %94, %97 : vector<2x8x8xf32>
    %99 = math.exp %98 : vector<2x8x8xf32>
    %cst_54 = arith.constant dense<0.000000e+00> : vector<2x8xf32>
    %100 = vector.multi_reduction <add>, %99, %cst_54 [2] : vector<2x8x8xf32> to vector<2x8xf32>
    %101 = vector.shape_cast %100 : vector<2x8xf32> to vector<2x8x1xf32>
    %102 = tpu.reciprocal %101 {approx = true} : vector<2x8x1xf32> -> vector<2x8x1xf32>
    %103 = vector.broadcast %102 : vector<2x8x1xf32> to vector<2x8x8xf32>
    %104 = arith.mulf %99, %103 : vector<2x8x8xf32>
    %105 = arith.truncf %104 : vector<2x8x8xf32> to vector<2x8x8xbf16>
    "tpu.trace_start"() <{level = 10 : i32, message = "bqk,bkd->bqd"}> : () -> ()
    %cst_55 = arith.constant dense<0.000000e+00> : vector<2x8x32xf32>
    %106 = tpu.matmul %105, %93, %cst_55 {dimension_numbers = #tpu.dot_dimension_numbers<[2], [1], [1], [2], [0, 0, 0, 1, 1, 2], [0], [0]>} : vector<2x8x8xbf16>, vector<2x8x32xbf16>, vector<2x8x32xf32> -> vector<2x8x32xf32>
    "tpu.trace_stop"() : () -> ()
    %107 = tpu.concatenate %58, %74, %90, %106 in 2 : vector<2x8x32xf32>, vector<2x8x32xf32>, vector<2x8x32xf32>, vector<2x8x32xf32> -> vector<2x8x128xf32>
    %108 = vector.shape_cast %107 : vector<2x8x128xf32> to vector<16x128xf32>
    %109 = arith.truncf %108 : vector<16x128xf32> to vector<16x128xbf16>
    %cst_56 = arith.constant dense<0.000000e+00> : vector<16x128xf32>
    %110 = tpu.matmul %109, %9, %cst_56 {dimension_numbers = #tpu.dot_dimension_numbers<[1], [0], [0], [1], [0, 0, 1, 1], [], []>} : vector<16x128xbf16>, vector<128x128xbf16>, vector<16x128xf32> -> vector<16x128xf32>
    %111 = vector.broadcast %19 : vector<1x128xf32> to vector<16x128xf32>
    %112 = arith.addf %110, %111 : vector<16x128xf32>
    %113 = arith.addf %5, %112 : vector<16x128xf32>
    %cst_57 = arith.constant dense<0.000000e+00> : vector<16xf32>
    %114 = vector.multi_reduction <add>, %113, %cst_57 [1] : vector<16x128xf32> to vector<16xf32>
    %115 = vector.shape_cast %114 : vector<16xf32> to vector<16x1xf32>
    %cst_58 = arith.constant 1.280000e+02 : f32
    %116 = vector.broadcast %cst_58 : f32 to vector<16x1xf32>
    %117 = arith.divf %115, %116 : vector<16x1xf32>
    %118 = vector.broadcast %117 : vector<16x1xf32> to vector<16x128xf32>
    %119 = arith.subf %113, %118 : vector<16x128xf32>
    %120 = arith.mulf %119, %119 : vector<16x128xf32>
    %cst_59 = arith.constant dense<0.000000e+00> : vector<16xf32>
    %121 = vector.multi_reduction <add>, %120, %cst_59 [1] : vector<16x128xf32> to vector<16xf32>
    %122 = vector.shape_cast %121 : vector<16xf32> to vector<16x1xf32>
    %cst_60 = arith.constant 1.280000e+02 : f32
    %123 = vector.broadcast %cst_60 : f32 to vector<16x1xf32>
    %124 = arith.divf %122, %123 : vector<16x1xf32>
    %125 = vector.broadcast %117 : vector<16x1xf32> to vector<16x128xf32>
    %126 = arith.subf %113, %125 : vector<16x128xf32>
    %cst_61 = arith.constant 9.99999974E-6 : f32
    %127 = vector.broadcast %cst_61 : f32 to vector<16x1xf32>
    %128 = arith.addf %124, %127 : vector<16x1xf32>
    %129 = math.rsqrt %128 : vector<16x1xf32>
    %130 = vector.broadcast %129 : vector<16x1xf32> to vector<16x128xf32>
    %131 = arith.mulf %126, %130 : vector<16x128xf32>
    %132 = vector.broadcast %21 : vector<1x128xf32> to vector<16x128xf32>
    %133 = arith.mulf %131, %132 : vector<16x128xf32>
    %134 = vector.broadcast %23 : vector<1x128xf32> to vector<16x128xf32>
    %135 = arith.addf %133, %134 : vector<16x128xf32>
    %136 = arith.truncf %135 : vector<16x128xf32> to vector<16x128xbf16>
    %cst_62 = arith.constant dense<0.000000e+00> : vector<16x256xf32>
    %137 = tpu.matmul %136, %11, %cst_62 {dimension_numbers = #tpu.dot_dimension_numbers<[1], [0], [0], [1], [0, 0, 1, 1], [], []>} : vector<16x128xbf16>, vector<128x256xbf16>, vector<16x256xf32> -> vector<16x256xf32>
    %138 = vector.broadcast %17 : vector<1x256xf32> to vector<16x256xf32>
    %139 = arith.addf %137, %138 : vector<16x256xf32>
    %cst_63 = arith.constant 0.000000e+00 : f32
    %140 = vector.broadcast %cst_63 : f32 to vector<16x256xf32>
    %141 = arith.maximumf %139, %140 : vector<16x256xf32>
    %142 = arith.truncf %141 : vector<16x256xf32> to vector<16x256xbf16>
    %cst_64 = arith.constant dense<0.000000e+00> : vector<16x128xf32>
    %143 = tpu.matmul %142, %13, %cst_64 {dimension_numbers = #tpu.dot_dimension_numbers<[1], [0], [0], [1], [0, 0, 1, 1], [], []>} : vector<16x256xbf16>, vector<256x128xbf16>, vector<16x128xf32> -> vector<16x128xf32>
    %144 = vector.broadcast %25 : vector<1x128xf32> to vector<16x128xf32>
    %145 = arith.addf %143, %144 : vector<16x128xf32>
    %146 = arith.addf %135, %145 : vector<16x128xf32>
    %cst_65 = arith.constant dense<0.000000e+00> : vector<16xf32>
    %147 = vector.multi_reduction <add>, %146, %cst_65 [1] : vector<16x128xf32> to vector<16xf32>
    %148 = vector.shape_cast %147 : vector<16xf32> to vector<16x1xf32>
    %cst_66 = arith.constant 1.280000e+02 : f32
    %149 = vector.broadcast %cst_66 : f32 to vector<16x1xf32>
    %150 = arith.divf %148, %149 : vector<16x1xf32>
    %151 = vector.broadcast %150 : vector<16x1xf32> to vector<16x128xf32>
    %152 = arith.subf %146, %151 : vector<16x128xf32>
    %153 = arith.mulf %152, %152 : vector<16x128xf32>
    %cst_67 = arith.constant dense<0.000000e+00> : vector<16xf32>
    %154 = vector.multi_reduction <add>, %153, %cst_67 [1] : vector<16x128xf32> to vector<16xf32>
    %155 = vector.shape_cast %154 : vector<16xf32> to vector<16x1xf32>
    %cst_68 = arith.constant 1.280000e+02 : f32
    %156 = vector.broadcast %cst_68 : f32 to vector<16x1xf32>
    %157 = arith.divf %155, %156 : vector<16x1xf32>
    %158 = vector.broadcast %150 : vector<16x1xf32> to vector<16x128xf32>
    %159 = arith.subf %146, %158 : vector<16x128xf32>
    %cst_69 = arith.constant 9.99999974E-6 : f32
    %160 = vector.broadcast %cst_69 : f32 to vector<16x1xf32>
    %161 = arith.addf %157, %160 : vector<16x1xf32>
    %162 = math.rsqrt %161 : vector<16x1xf32>
    %163 = vector.broadcast %162 : vector<16x1xf32> to vector<16x128xf32>
    %164 = arith.mulf %159, %163 : vector<16x128xf32>
    %165 = vector.broadcast %27 : vector<1x128xf32> to vector<16x128xf32>
    %166 = arith.mulf %164, %165 : vector<16x128xf32>
    %167 = vector.broadcast %29 : vector<1x128xf32> to vector<16x128xf32>
    %168 = arith.addf %166, %167 : vector<16x128xf32>
    %c1 = arith.constant 1 : index
    %c0_70 = arith.constant 0 : index
    %c0_71 = arith.constant 0 : index
    %169 = vector.load %arg3[%c1, %c0_70, %c0_71] : memref<2x128x384xbf16, #tpu.memory_space<vmem>>, vector<1x128x384xbf16>
    %170 = vector.shape_cast %169 : vector<1x128x384xbf16> to vector<128x384xbf16>
    %c1_72 = arith.constant 1 : index
    %c0_73 = arith.constant 0 : index
    %c0_74 = arith.constant 0 : index
    %171 = vector.load %arg4[%c1_72, %c0_73, %c0_74] : memref<2x128x128xbf16, #tpu.memory_space<vmem>>, vector<1x128x128xbf16>
    %172 = vector.shape_cast %171 : vector<1x128x128xbf16> to vector<128x128xbf16>
    %c1_75 = arith.constant 1 : index
    %c0_76 = arith.constant 0 : index
    %c0_77 = arith.constant 0 : index
    %173 = vector.load %arg5[%c1_75, %c0_76, %c0_77] : memref<2x128x256xbf16, #tpu.memory_space<vmem>>, vector<1x128x256xbf16>
    %174 = vector.shape_cast %173 : vector<1x128x256xbf16> to vector<128x256xbf16>
    %c1_78 = arith.constant 1 : index
    %c0_79 = arith.constant 0 : index
    %c0_80 = arith.constant 0 : index
    %175 = vector.load %arg6[%c1_78, %c0_79, %c0_80] : memref<2x256x128xbf16, #tpu.memory_space<vmem>>, vector<1x256x128xbf16>
    %176 = vector.shape_cast %175 : vector<1x256x128xbf16> to vector<256x128xbf16>
    %c1_81 = arith.constant 1 : index
    %c0_82 = arith.constant 0 : index
    %c0_83 = arith.constant 0 : index
    %177 = vector.load %arg7[%c1_81, %c0_82, %c0_83] : memref<2x1x384xf32, #tpu.memory_space<vmem>>, vector<1x1x384xf32>
    %178 = vector.shape_cast %177 : vector<1x1x384xf32> to vector<1x384xf32>
    %c1_84 = arith.constant 1 : index
    %c0_85 = arith.constant 0 : index
    %c0_86 = arith.constant 0 : index
    %179 = vector.load %arg8[%c1_84, %c0_85, %c0_86] : memref<2x1x256xf32, #tpu.memory_space<vmem>>, vector<1x1x256xf32>
    %180 = vector.shape_cast %179 : vector<1x1x256xf32> to vector<1x256xf32>
    %c1_87 = arith.constant 1 : index
    %c0_88 = arith.constant 0 : index
    %c0_89 = arith.constant 0 : index
    %181 = vector.load %arg9[%c1_87, %c0_88, %c0_89] : memref<2x1x128xf32, #tpu.memory_space<vmem>>, vector<1x1x128xf32>
    %182 = vector.shape_cast %181 : vector<1x1x128xf32> to vector<1x128xf32>
    %c1_90 = arith.constant 1 : index
    %c0_91 = arith.constant 0 : index
    %c0_92 = arith.constant 0 : index
    %183 = vector.load %arg10[%c1_90, %c0_91, %c0_92] : memref<2x1x128xf32, #tpu.memory_space<vmem>>, vector<1x1x128xf32>
    %184 = vector.shape_cast %183 : vector<1x1x128xf32> to vector<1x128xf32>
    %c1_93 = arith.constant 1 : index
    %c0_94 = arith.constant 0 : index
    %c0_95 = arith.constant 0 : index
    %185 = vector.load %arg11[%c1_93, %c0_94, %c0_95] : memref<2x1x128xf32, #tpu.memory_space<vmem>>, vector<1x1x128xf32>
    %186 = vector.shape_cast %185 : vector<1x1x128xf32> to vector<1x128xf32>
    %c1_96 = arith.constant 1 : index
    %c0_97 = arith.constant 0 : index
    %c0_98 = arith.constant 0 : index
    %187 = vector.load %arg12[%c1_96, %c0_97, %c0_98] : memref<2x1x128xf32, #tpu.memory_space<vmem>>, vector<1x1x128xf32>
    %188 = vector.shape_cast %187 : vector<1x1x128xf32> to vector<1x128xf32>
    %c1_99 = arith.constant 1 : index
    %c0_100 = arith.constant 0 : index
    %c0_101 = arith.constant 0 : index
    %189 = vector.load %arg13[%c1_99, %c0_100, %c0_101] : memref<2x1x128xf32, #tpu.memory_space<vmem>>, vector<1x1x128xf32>
    %190 = vector.shape_cast %189 : vector<1x1x128xf32> to vector<1x128xf32>
    %c1_102 = arith.constant 1 : index
    %c0_103 = arith.constant 0 : index
    %c0_104 = arith.constant 0 : index
    %191 = vector.load %arg14[%c1_102, %c0_103, %c0_104] : memref<2x1x128xf32, #tpu.memory_space<vmem>>, vector<1x1x128xf32>
    %192 = vector.shape_cast %191 : vector<1x1x128xf32> to vector<1x128xf32>
    %193 = arith.truncf %168 : vector<16x128xf32> to vector<16x128xbf16>
    %cst_105 = arith.constant dense<0.000000e+00> : vector<16x384xf32>
    %194 = tpu.matmul %193, %170, %cst_105 {dimension_numbers = #tpu.dot_dimension_numbers<[1], [0], [0], [1], [0, 0, 1, 1], [], []>} : vector<16x128xbf16>, vector<128x384xbf16>, vector<16x384xf32> -> vector<16x384xf32>
    %195 = vector.broadcast %178 : vector<1x384xf32> to vector<16x384xf32>
    %196 = arith.addf %194, %195 : vector<16x384xf32>
    %197 = vector.extract_strided_slice %196 {offsets = [0, 0], sizes = [16, 128], strides = [1, 1]} : vector<16x384xf32> to vector<16x128xf32>
    %198 = vector.shape_cast %197 : vector<16x128xf32> to vector<2x8x128xf32>
    %199 = arith.truncf %198 : vector<2x8x128xf32> to vector<2x8x128xbf16>
    %200 = vector.extract_strided_slice %196 {offsets = [0, 128], sizes = [16, 128], strides = [1, 1]} : vector<16x384xf32> to vector<16x128xf32>
    %201 = vector.shape_cast %200 : vector<16x128xf32> to vector<2x8x128xf32>
    %202 = arith.truncf %201 : vector<2x8x128xf32> to vector<2x8x128xbf16>
    %203 = vector.extract_strided_slice %196 {offsets = [0, 256], sizes = [16, 128], strides = [1, 1]} : vector<16x384xf32> to vector<16x128xf32>
    %204 = vector.shape_cast %203 : vector<16x128xf32> to vector<2x8x128xf32>
    %205 = arith.truncf %204 : vector<2x8x128xf32> to vector<2x8x128xbf16>
    %206 = vector.extract_strided_slice %199 {offsets = [0, 0, 0], sizes = [2, 8, 32], strides = [1, 1, 1]} : vector<2x8x128xbf16> to vector<2x8x32xbf16>
    %207 = vector.extract_strided_slice %202 {offsets = [0, 0, 0], sizes = [2, 8, 32], strides = [1, 1, 1]} : vector<2x8x128xbf16> to vector<2x8x32xbf16>
    %208 = vector.extract_strided_slice %205 {offsets = [0, 0, 0], sizes = [2, 8, 32], strides = [1, 1, 1]} : vector<2x8x128xbf16> to vector<2x8x32xbf16>
    "tpu.trace_start"() <{level = 10 : i32, message = "bqd,bkd->bqk"}> : () -> ()
    %cst_106 = arith.constant dense<0.000000e+00> : vector<2x8x8xf32>
    %209 = tpu.matmul %206, %207, %cst_106 {dimension_numbers = #tpu.dot_dimension_numbers<[2], [2], [1], [1], [0, 0, 0, 1, 1, 1], [0], [0]>} : vector<2x8x32xbf16>, vector<2x8x32xbf16>, vector<2x8x8xf32> -> vector<2x8x8xf32>
    "tpu.trace_stop"() : () -> ()
    %cst_107 = arith.constant dense<0xFF800000> : vector<2x8xf32>
    %210 = vector.multi_reduction <maximumf>, %209, %cst_107 [2] : vector<2x8x8xf32> to vector<2x8xf32>
    %211 = vector.shape_cast %210 : vector<2x8xf32> to vector<2x8x1xf32>
    %212 = vector.broadcast %211 : vector<2x8x1xf32> to vector<2x8x8xf32>
    %213 = arith.subf %209, %212 : vector<2x8x8xf32>
    %214 = math.exp %213 : vector<2x8x8xf32>
    %cst_108 = arith.constant dense<0.000000e+00> : vector<2x8xf32>
    %215 = vector.multi_reduction <add>, %214, %cst_108 [2] : vector<2x8x8xf32> to vector<2x8xf32>
    %216 = vector.shape_cast %215 : vector<2x8xf32> to vector<2x8x1xf32>
    %217 = tpu.reciprocal %216 {approx = true} : vector<2x8x1xf32> -> vector<2x8x1xf32>
    %218 = vector.broadcast %217 : vector<2x8x1xf32> to vector<2x8x8xf32>
    %219 = arith.mulf %214, %218 : vector<2x8x8xf32>
    %220 = arith.truncf %219 : vector<2x8x8xf32> to vector<2x8x8xbf16>
    "tpu.trace_start"() <{level = 10 : i32, message = "bqk,bkd->bqd"}> : () -> ()
    %cst_109 = arith.constant dense<0.000000e+00> : vector<2x8x32xf32>
    %221 = tpu.matmul %220, %208, %cst_109 {dimension_numbers = #tpu.dot_dimension_numbers<[2], [1], [1], [2], [0, 0, 0, 1, 1, 2], [0], [0]>} : vector<2x8x8xbf16>, vector<2x8x32xbf16>, vector<2x8x32xf32> -> vector<2x8x32xf32>
    "tpu.trace_stop"() : () -> ()
    %222 = vector.extract_strided_slice %199 {offsets = [0, 0, 32], sizes = [2, 8, 32], strides = [1, 1, 1]} : vector<2x8x128xbf16> to vector<2x8x32xbf16>
    %223 = vector.extract_strided_slice %202 {offsets = [0, 0, 32], sizes = [2, 8, 32], strides = [1, 1, 1]} : vector<2x8x128xbf16> to vector<2x8x32xbf16>
    %224 = vector.extract_strided_slice %205 {offsets = [0, 0, 32], sizes = [2, 8, 32], strides = [1, 1, 1]} : vector<2x8x128xbf16> to vector<2x8x32xbf16>
    "tpu.trace_start"() <{level = 10 : i32, message = "bqd,bkd->bqk"}> : () -> ()
    %cst_110 = arith.constant dense<0.000000e+00> : vector<2x8x8xf32>
    %225 = tpu.matmul %222, %223, %cst_110 {dimension_numbers = #tpu.dot_dimension_numbers<[2], [2], [1], [1], [0, 0, 0, 1, 1, 1], [0], [0]>} : vector<2x8x32xbf16>, vector<2x8x32xbf16>, vector<2x8x8xf32> -> vector<2x8x8xf32>
    "tpu.trace_stop"() : () -> ()
    %cst_111 = arith.constant dense<0xFF800000> : vector<2x8xf32>
    %226 = vector.multi_reduction <maximumf>, %225, %cst_111 [2] : vector<2x8x8xf32> to vector<2x8xf32>
    %227 = vector.shape_cast %226 : vector<2x8xf32> to vector<2x8x1xf32>
    %228 = vector.broadcast %227 : vector<2x8x1xf32> to vector<2x8x8xf32>
    %229 = arith.subf %225, %228 : vector<2x8x8xf32>
    %230 = math.exp %229 : vector<2x8x8xf32>
    %cst_112 = arith.constant dense<0.000000e+00> : vector<2x8xf32>
    %231 = vector.multi_reduction <add>, %230, %cst_112 [2] : vector<2x8x8xf32> to vector<2x8xf32>
    %232 = vector.shape_cast %231 : vector<2x8xf32> to vector<2x8x1xf32>
    %233 = tpu.reciprocal %232 {approx = true} : vector<2x8x1xf32> -> vector<2x8x1xf32>
    %234 = vector.broadcast %233 : vector<2x8x1xf32> to vector<2x8x8xf32>
    %235 = arith.mulf %230, %234 : vector<2x8x8xf32>
    %236 = arith.truncf %235 : vector<2x8x8xf32> to vector<2x8x8xbf16>
    "tpu.trace_start"() <{level = 10 : i32, message = "bqk,bkd->bqd"}> : () -> ()
    %cst_113 = arith.constant dense<0.000000e+00> : vector<2x8x32xf32>
    %237 = tpu.matmul %236, %224, %cst_113 {dimension_numbers = #tpu.dot_dimension_numbers<[2], [1], [1], [2], [0, 0, 0, 1, 1, 2], [0], [0]>} : vector<2x8x8xbf16>, vector<2x8x32xbf16>, vector<2x8x32xf32> -> vector<2x8x32xf32>
    "tpu.trace_stop"() : () -> ()
    %238 = vector.extract_strided_slice %199 {offsets = [0, 0, 64], sizes = [2, 8, 32], strides = [1, 1, 1]} : vector<2x8x128xbf16> to vector<2x8x32xbf16>
    %239 = vector.extract_strided_slice %202 {offsets = [0, 0, 64], sizes = [2, 8, 32], strides = [1, 1, 1]} : vector<2x8x128xbf16> to vector<2x8x32xbf16>
    %240 = vector.extract_strided_slice %205 {offsets = [0, 0, 64], sizes = [2, 8, 32], strides = [1, 1, 1]} : vector<2x8x128xbf16> to vector<2x8x32xbf16>
    "tpu.trace_start"() <{level = 10 : i32, message = "bqd,bkd->bqk"}> : () -> ()
    %cst_114 = arith.constant dense<0.000000e+00> : vector<2x8x8xf32>
    %241 = tpu.matmul %238, %239, %cst_114 {dimension_numbers = #tpu.dot_dimension_numbers<[2], [2], [1], [1], [0, 0, 0, 1, 1, 1], [0], [0]>} : vector<2x8x32xbf16>, vector<2x8x32xbf16>, vector<2x8x8xf32> -> vector<2x8x8xf32>
    "tpu.trace_stop"() : () -> ()
    %cst_115 = arith.constant dense<0xFF800000> : vector<2x8xf32>
    %242 = vector.multi_reduction <maximumf>, %241, %cst_115 [2] : vector<2x8x8xf32> to vector<2x8xf32>
    %243 = vector.shape_cast %242 : vector<2x8xf32> to vector<2x8x1xf32>
    %244 = vector.broadcast %243 : vector<2x8x1xf32> to vector<2x8x8xf32>
    %245 = arith.subf %241, %244 : vector<2x8x8xf32>
    %246 = math.exp %245 : vector<2x8x8xf32>
    %cst_116 = arith.constant dense<0.000000e+00> : vector<2x8xf32>
    %247 = vector.multi_reduction <add>, %246, %cst_116 [2] : vector<2x8x8xf32> to vector<2x8xf32>
    %248 = vector.shape_cast %247 : vector<2x8xf32> to vector<2x8x1xf32>
    %249 = tpu.reciprocal %248 {approx = true} : vector<2x8x1xf32> -> vector<2x8x1xf32>
    %250 = vector.broadcast %249 : vector<2x8x1xf32> to vector<2x8x8xf32>
    %251 = arith.mulf %246, %250 : vector<2x8x8xf32>
    %252 = arith.truncf %251 : vector<2x8x8xf32> to vector<2x8x8xbf16>
    "tpu.trace_start"() <{level = 10 : i32, message = "bqk,bkd->bqd"}> : () -> ()
    %cst_117 = arith.constant dense<0.000000e+00> : vector<2x8x32xf32>
    %253 = tpu.matmul %252, %240, %cst_117 {dimension_numbers = #tpu.dot_dimension_numbers<[2], [1], [1], [2], [0, 0, 0, 1, 1, 2], [0], [0]>} : vector<2x8x8xbf16>, vector<2x8x32xbf16>, vector<2x8x32xf32> -> vector<2x8x32xf32>
    "tpu.trace_stop"() : () -> ()
    %254 = vector.extract_strided_slice %199 {offsets = [0, 0, 96], sizes = [2, 8, 32], strides = [1, 1, 1]} : vector<2x8x128xbf16> to vector<2x8x32xbf16>
    %255 = vector.extract_strided_slice %202 {offsets = [0, 0, 96], sizes = [2, 8, 32], strides = [1, 1, 1]} : vector<2x8x128xbf16> to vector<2x8x32xbf16>
    %256 = vector.extract_strided_slice %205 {offsets = [0, 0, 96], sizes = [2, 8, 32], strides = [1, 1, 1]} : vector<2x8x128xbf16> to vector<2x8x32xbf16>
    "tpu.trace_start"() <{level = 10 : i32, message = "bqd,bkd->bqk"}> : () -> ()
    %cst_118 = arith.constant dense<0.000000e+00> : vector<2x8x8xf32>
    %257 = tpu.matmul %254, %255, %cst_118 {dimension_numbers = #tpu.dot_dimension_numbers<[2], [2], [1], [1], [0, 0, 0, 1, 1, 1], [0], [0]>} : vector<2x8x32xbf16>, vector<2x8x32xbf16>, vector<2x8x8xf32> -> vector<2x8x8xf32>
    "tpu.trace_stop"() : () -> ()
    %cst_119 = arith.constant dense<0xFF800000> : vector<2x8xf32>
    %258 = vector.multi_reduction <maximumf>, %257, %cst_119 [2] : vector<2x8x8xf32> to vector<2x8xf32>
    %259 = vector.shape_cast %258 : vector<2x8xf32> to vector<2x8x1xf32>
    %260 = vector.broadcast %259 : vector<2x8x1xf32> to vector<2x8x8xf32>
    %261 = arith.subf %257, %260 : vector<2x8x8xf32>
    %262 = math.exp %261 : vector<2x8x8xf32>
    %cst_120 = arith.constant dense<0.000000e+00> : vector<2x8xf32>
    %263 = vector.multi_reduction <add>, %262, %cst_120 [2] : vector<2x8x8xf32> to vector<2x8xf32>
    %264 = vector.shape_cast %263 : vector<2x8xf32> to vector<2x8x1xf32>
    %265 = tpu.reciprocal %264 {approx = true} : vector<2x8x1xf32> -> vector<2x8x1xf32>
    %266 = vector.broadcast %265 : vector<2x8x1xf32> to vector<2x8x8xf32>
    %267 = arith.mulf %262, %266 : vector<2x8x8xf32>
    %268 = arith.truncf %267 : vector<2x8x8xf32> to vector<2x8x8xbf16>
    "tpu.trace_start"() <{level = 10 : i32, message = "bqk,bkd->bqd"}> : () -> ()
    %cst_121 = arith.constant dense<0.000000e+00> : vector<2x8x32xf32>
    %269 = tpu.matmul %268, %256, %cst_121 {dimension_numbers = #tpu.dot_dimension_numbers<[2], [1], [1], [2], [0, 0, 0, 1, 1, 2], [0], [0]>} : vector<2x8x8xbf16>, vector<2x8x32xbf16>, vector<2x8x32xf32> -> vector<2x8x32xf32>
    "tpu.trace_stop"() : () -> ()
    %270 = tpu.concatenate %221, %237, %253, %269 in 2 : vector<2x8x32xf32>, vector<2x8x32xf32>, vector<2x8x32xf32>, vector<2x8x32xf32> -> vector<2x8x128xf32>
    %271 = vector.shape_cast %270 : vector<2x8x128xf32> to vector<16x128xf32>
    %272 = arith.truncf %271 : vector<16x128xf32> to vector<16x128xbf16>
    %cst_122 = arith.constant dense<0.000000e+00> : vector<16x128xf32>
    %273 = tpu.matmul %272, %172, %cst_122 {dimension_numbers = #tpu.dot_dimension_numbers<[1], [0], [0], [1], [0, 0, 1, 1], [], []>} : vector<16x128xbf16>, vector<128x128xbf16>, vector<16x128xf32> -> vector<16x128xf32>
    %274 = vector.broadcast %182 : vector<1x128xf32> to vector<16x128xf32>
    %275 = arith.addf %273, %274 : vector<16x128xf32>
    %276 = arith.addf %168, %275 : vector<16x128xf32>
    %cst_123 = arith.constant dense<0.000000e+00> : vector<16xf32>
    %277 = vector.multi_reduction <add>, %276, %cst_123 [1] : vector<16x128xf32> to vector<16xf32>
    %278 = vector.shape_cast %277 : vector<16xf32> to vector<16x1xf32>
    %cst_124 = arith.constant 1.280000e+02 : f32
    %279 = vector.broadcast %cst_124 : f32 to vector<16x1xf32>
    %280 = arith.divf %278, %279 : vector<16x1xf32>
    %281 = vector.broadcast %280 : vector<16x1xf32> to vector<16x128xf32>
    %282 = arith.subf %276, %281 : vector<16x128xf32>
    %283 = arith.mulf %282, %282 : vector<16x128xf32>
    %cst_125 = arith.constant dense<0.000000e+00> : vector<16xf32>
    %284 = vector.multi_reduction <add>, %283, %cst_125 [1] : vector<16x128xf32> to vector<16xf32>
    %285 = vector.shape_cast %284 : vector<16xf32> to vector<16x1xf32>
    %cst_126 = arith.constant 1.280000e+02 : f32
    %286 = vector.broadcast %cst_126 : f32 to vector<16x1xf32>
    %287 = arith.divf %285, %286 : vector<16x1xf32>
    %288 = vector.broadcast %280 : vector<16x1xf32> to vector<16x128xf32>
    %289 = arith.subf %276, %288 : vector<16x128xf32>
    %cst_127 = arith.constant 9.99999974E-6 : f32
    %290 = vector.broadcast %cst_127 : f32 to vector<16x1xf32>
    %291 = arith.addf %287, %290 : vector<16x1xf32>
    %292 = math.rsqrt %291 : vector<16x1xf32>
    %293 = vector.broadcast %292 : vector<16x1xf32> to vector<16x128xf32>
    %294 = arith.mulf %289, %293 : vector<16x128xf32>
    %295 = vector.broadcast %184 : vector<1x128xf32> to vector<16x128xf32>
    %296 = arith.mulf %294, %295 : vector<16x128xf32>
    %297 = vector.broadcast %186 : vector<1x128xf32> to vector<16x128xf32>
    %298 = arith.addf %296, %297 : vector<16x128xf32>
    %299 = arith.truncf %298 : vector<16x128xf32> to vector<16x128xbf16>
    %cst_128 = arith.constant dense<0.000000e+00> : vector<16x256xf32>
    %300 = tpu.matmul %299, %174, %cst_128 {dimension_numbers = #tpu.dot_dimension_numbers<[1], [0], [0], [1], [0, 0, 1, 1], [], []>} : vector<16x128xbf16>, vector<128x256xbf16>, vector<16x256xf32> -> vector<16x256xf32>
    %301 = vector.broadcast %180 : vector<1x256xf32> to vector<16x256xf32>
    %302 = arith.addf %300, %301 : vector<16x256xf32>
    %cst_129 = arith.constant 0.000000e+00 : f32
    %303 = vector.broadcast %cst_129 : f32 to vector<16x256xf32>
    %304 = arith.maximumf %302, %303 : vector<16x256xf32>
    %305 = arith.truncf %304 : vector<16x256xf32> to vector<16x256xbf16>
    %cst_130 = arith.constant dense<0.000000e+00> : vector<16x128xf32>
    %306 = tpu.matmul %305, %176, %cst_130 {dimension_numbers = #tpu.dot_dimension_numbers<[1], [0], [0], [1], [0, 0, 1, 1], [], []>} : vector<16x256xbf16>, vector<256x128xbf16>, vector<16x128xf32> -> vector<16x128xf32>
    %307 = vector.broadcast %188 : vector<1x128xf32> to vector<16x128xf32>
    %308 = arith.addf %306, %307 : vector<16x128xf32>
    %309 = arith.addf %298, %308 : vector<16x128xf32>
    %cst_131 = arith.constant dense<0.000000e+00> : vector<16xf32>
    %310 = vector.multi_reduction <add>, %309, %cst_131 [1] : vector<16x128xf32> to vector<16xf32>
    %311 = vector.shape_cast %310 : vector<16xf32> to vector<16x1xf32>
    %cst_132 = arith.constant 1.280000e+02 : f32
    %312 = vector.broadcast %cst_132 : f32 to vector<16x1xf32>
    %313 = arith.divf %311, %312 : vector<16x1xf32>
    %314 = vector.broadcast %313 : vector<16x1xf32> to vector<16x128xf32>
    %315 = arith.subf %309, %314 : vector<16x128xf32>
    %316 = arith.mulf %315, %315 : vector<16x128xf32>
    %cst_133 = arith.constant dense<0.000000e+00> : vector<16xf32>
    %317 = vector.multi_reduction <add>, %316, %cst_133 [1] : vector<16x128xf32> to vector<16xf32>
    %318 = vector.shape_cast %317 : vector<16xf32> to vector<16x1xf32>
    %cst_134 = arith.constant 1.280000e+02 : f32
    %319 = vector.broadcast %cst_134 : f32 to vector<16x1xf32>
    %320 = arith.divf %318, %319 : vector<16x1xf32>
    %321 = vector.broadcast %313 : vector<16x1xf32> to vector<16x128xf32>
    %322 = arith.subf %309, %321 : vector<16x128xf32>
    %cst_135 = arith.constant 9.99999974E-6 : f32
    %323 = vector.broadcast %cst_135 : f32 to vector<16x1xf32>
    %324 = arith.addf %320, %323 : vector<16x1xf32>
    %325 = math.rsqrt %324 : vector<16x1xf32>
    %326 = vector.broadcast %325 : vector<16x1xf32> to vector<16x128xf32>
    %327 = arith.mulf %322, %326 : vector<16x128xf32>
    %328 = vector.broadcast %190 : vector<1x128xf32> to vector<16x128xf32>
    %329 = arith.mulf %327, %328 : vector<16x128xf32>
    %330 = vector.broadcast %192 : vector<1x128xf32> to vector<16x128xf32>
    %331 = arith.addf %329, %330 : vector<16x128xf32>
    %332 = vector.shape_cast %331 : vector<16x128xf32> to vector<2x8x128xf32>
    %c0_136 = arith.constant 0 : index
    %c0_137 = arith.constant 0 : index
    %c0_138 = arith.constant 0 : index
    %333 = vector.load %arg15[%c0_136, %c0_137, %c0_138] : memref<2x8x128xf32, #tpu.memory_space<vmem>>, vector<2x8x128xf32>
    tpu.vector_store %arg15[%c0_136, %c0_137, %c0_138], %332 {strides = array<i32>} : memref<2x8x128xf32, #tpu.memory_space<vmem>>, vector<2x8x128xf32>,
    return
  }
  func.func @transform_0(%arg0: i32) -> (i32, i32, i32) {
    %c0_i32 = arith.constant 0 : i32
    %c0_i32_0 = arith.constant 0 : i32
    %c0_i32_1 = arith.constant 0 : i32
    return %arg0, %c0_i32, %c0_i32_0 : i32, i32, i32
  }
  func.func @transform_1(%arg0: i32) -> (i32, i32) {
    %c0_i32 = arith.constant 0 : i32
    %c0_i32_0 = arith.constant 0 : i32
    %c0_i32_1 = arith.constant 0 : i32
    return %c0_i32, %c0_i32_0 : i32, i32
  }
  func.func @transform_2(%arg0: i32) -> (i32, i32, i32) {
    %c0_i32 = arith.constant 0 : i32
    %c0_i32_0 = arith.constant 0 : i32
    %c0_i32_1 = arith.constant 0 : i32
    %c0_i32_2 = arith.constant 0 : i32
    return %c0_i32, %c0_i32_0, %c0_i32_1 : i32, i32, i32
  }
  func.func @transform_3(%arg0: i32) -> (i32, i32, i32) {
    %c0_i32 = arith.constant 0 : i32
    %c0_i32_0 = arith.constant 0 : i32
    %c0_i32_1 = arith.constant 0 : i32
    %c0_i32_2 = arith.constant 0 : i32
    return %c0_i32, %c0_i32_0, %c0_i32_1 : i32, i32, i32
  }
  func.func @transform_4(%arg0: i32) -> (i32, i32, i32) {
    %c0_i32 = arith.constant 0 : i32
    %c0_i32_0 = arith.constant 0 : i32
    %c0_i32_1 = arith.constant 0 : i32
    %c0_i32_2 = arith.constant 0 : i32
    return %c0_i32, %c0_i32_0, %c0_i32_1 : i32, i32, i32
  }
  func.func @transform_5(%arg0: i32) -> (i32, i32, i32) {
    %c0_i32 = arith.constant 0 : i32
    %c0_i32_0 = arith.constant 0 : i32
    %c0_i32_1 = arith.constant 0 : i32
    %c0_i32_2 = arith.constant 0 : i32
    return %c0_i32, %c0_i32_0, %c0_i32_1 : i32, i32, i32
  }
  func.func @transform_6(%arg0: i32) -> (i32, i32, i32) {
    %c0_i32 = arith.constant 0 : i32
    %c0_i32_0 = arith.constant 0 : i32
    %c0_i32_1 = arith.constant 0 : i32
    %c0_i32_2 = arith.constant 0 : i32
    return %c0_i32, %c0_i32_0, %c0_i32_1 : i32, i32, i32
  }
  func.func @transform_7(%arg0: i32) -> (i32, i32, i32) {
    %c0_i32 = arith.constant 0 : i32
    %c0_i32_0 = arith.constant 0 : i32
    %c0_i32_1 = arith.constant 0 : i32
    %c0_i32_2 = arith.constant 0 : i32
    return %c0_i32, %c0_i32_0, %c0_i32_1 : i32, i32, i32
  }
  func.func @transform_8(%arg0: i32) -> (i32, i32, i32) {
    %c0_i32 = arith.constant 0 : i32
    %c0_i32_0 = arith.constant 0 : i32
    %c0_i32_1 = arith.constant 0 : i32
    %c0_i32_2 = arith.constant 0 : i32
    return %c0_i32, %c0_i32_0, %c0_i32_1 : i32, i32, i32
  }
  func.func @transform_9(%arg0: i32) -> (i32, i32, i32) {
    %c0_i32 = arith.constant 0 : i32
    %c0_i32_0 = arith.constant 0 : i32
    %c0_i32_1 = arith.constant 0 : i32
    %c0_i32_2 = arith.constant 0 : i32
    return %c0_i32, %c0_i32_0, %c0_i32_1 : i32, i32, i32
  }
  func.func @transform_10(%arg0: i32) -> (i32, i32, i32) {
    %c0_i32 = arith.constant 0 : i32
    %c0_i32_0 = arith.constant 0 : i32
    %c0_i32_1 = arith.constant 0 : i32
    %c0_i32_2 = arith.constant 0 : i32
    return %c0_i32, %c0_i32_0, %c0_i32_1 : i32, i32, i32
  }
  func.func @transform_11(%arg0: i32) -> (i32, i32, i32) {
    %c0_i32 = arith.constant 0 : i32
    %c0_i32_0 = arith.constant 0 : i32
    %c0_i32_1 = arith.constant 0 : i32
    %c0_i32_2 = arith.constant 0 : i32
    return %c0_i32, %c0_i32_0, %c0_i32_1 : i32, i32, i32
  }
  func.func @transform_12(%arg0: i32) -> (i32, i32, i32) {
    %c0_i32 = arith.constant 0 : i32
    %c0_i32_0 = arith.constant 0 : i32
    %c0_i32_1 = arith.constant 0 : i32
    %c0_i32_2 = arith.constant 0 : i32
    return %c0_i32, %c0_i32_0, %c0_i32_1 : i32, i32, i32
  }
  func.func @transform_13(%arg0: i32) -> (i32, i32, i32) {
    %c0_i32 = arith.constant 0 : i32
    %c0_i32_0 = arith.constant 0 : i32
    %c0_i32_1 = arith.constant 0 : i32
    %c0_i32_2 = arith.constant 0 : i32
    return %c0_i32, %c0_i32_0, %c0_i32_1 : i32, i32, i32
  }
  func.func @transform_14(%arg0: i32) -> (i32, i32, i32) {
    %c0_i32 = arith.constant 0 : i32
    %c0_i32_0 = arith.constant 0 : i32
    %c0_i32_1 = arith.constant 0 : i32
    return %arg0, %c0_i32, %c0_i32_0 : i32, i32, i32
  }
}

</mosaic_0001>

<bundles_post_ra>
// kernel: tpu_custom_call.1
= control target key start
LH: loop header
LB: loop body
LE: loop exit
PB: predicated region body
PF: predicated region fallthrough
CT: control target
= control target key end

     0   :  { %19 = vsyncpa [#allocation3], 0  ;;  %s5254_s0 = inlined_call_operand.hbm [shape: f32[2,8,128], index: 0, kind: input, shape index: {}]   ;;  %s5255_s1 = inlined_call_operand.hbm [shape: f32[8,128], index: 1, kind: input, shape index: {}]   ;;  %s5256_s2 = inlined_call_operand.hbm [shape: bf16[2,128,384], index: 2, kind: input, shape index: {}]   ;;  %s5257_s3 = inlined_call_operand.hbm [shape: bf16[2,128,128], index: 3, kind: input, shape index: {}]   ;;  %s5258_s4 = inlined_call_operand.hbm [shape: bf16[2,128,256], index: 4, kind: input, shape index: {}]   ;;  %s5259_s5 = inlined_call_operand.hbm [shape: bf16[2,256,128], index: 5, kind: input, shape index: {}]   ;;  %s5260_s6 = inlined_call_operand.vmem [shape: f32[2,1,384], index: 6, kind: input, shape index: {}]   ;;  %s5261_s7 = inlined_call_operand.vmem [shape: f32[2,1,256], index: 7, kind: input, shape index: {}]   ;;  %s5262_s8 = inlined_call_operand.vmem [shape: f32[2,1,128], index: 8, kind: input, shape index: {}]   ;;  %s5263_s9 = inlined_call_operand.vmem [shape: f32[2,1,128], index: 9, kind: input, shape index: {}]   ;;  %s5264_s10 = inlined_call_operand.vmem [shape: f32[2,1,128], index: 10, kind: input, shape index: {}]   ;;  %s5265_s11 = inlined_call_operand.vmem [shape: f32[2,1,128], index: 11, kind: input, shape index: {}]   ;;  %s5266_s12 = inlined_call_operand.vmem [shape: f32[2,1,128], index: 12, kind: input, shape index: {}]   ;;  %s5267_s13 = inlined_call_operand.vmem [shape: f32[2,1,128], index: 13, kind: input, shape index: {}]   ;;  %s5268_s14 = inlined_call_operand.hbm [shape: f32[2,8,128], index: 14, kind: output, shape index: {}]  }
   0x1   :  { %20 = vsyncpa [#allocation6], 0 }
   0x2   :  { %21 = vsyncpa [#allocation9], 0 }
   0x3   :  { %22 = vsyncpa [#allocation12], 0 }
   0x4   :  { %23 = vsyncpa [#allocation4], 0  ;;  %s4614_s29 = smov [#allocation5]   ;;  %s4615_s15 = smov [#allocation8]  }
   0x5   :  { %s42_s30 = sshll.u32 %s4614_s29, 4  ;;  %s63_s16 = sshll.u32 %s4615_s15, 4  ;;  %s43_s30 = int_to_ptr.vmem [resolvable:$true] %s42_s30  ;;  %s64_s16 = int_to_ptr.vmem [resolvable:$true] %s63_s16 }
   0x6   :  { %s4472_s17 = scalar_lea.vmem %s43_s30, 128  ;;  %p4477_p1 = scmp.lt.s32.totalorder %s43_s30, %s43_s30 }
   0x7   :  { %p4473_p0 = scmp.ne.s32.totalorder %s43_s30, %s4472_s17  ;;  %p4478_p2 = scmp.lt.s32.totalorder %s4472_s17, %s4472_s17 }
   0x9   :  { %p4479_p3 = por %p4478_p2, %p4477_p1 }
   0xb   :  { %p4480_p4 = pnand %p4479_p3, %p4473_p0 }
   0xd   :  { %4483 = shalt.err (!%p4480_p4)
}
   0xe   :  { %45 = dma.hbm_to_vmem [thread:$0]  %s5255_s1, 128, %s43_s30, [#allocation6]  }
   0xf   :  { %s4492_s20 = scalar_lea.vmem %s64_s16, 2048  ;;  %p4497_p6 = scmp.lt.s32.totalorder %s64_s16, %s64_s16 }
  0x10   :  { %p4493_p5 = scmp.ne.s32.totalorder %s64_s16, %s4492_s20  ;;  %p4498_p7 = scmp.lt.s32.totalorder %s4492_s20, %s4492_s20 }
  0x12   :  { %p4499_p8 = por %p4498_p7, %p4497_p6 }
  0x14   :  { %p4500_p9 = pnand %p4499_p8, %p4493_p5 }
  0x16   :  { %4503 = shalt.err (!%p4500_p9)
}
  0x17   :  { %s4616_s21 = smov 64   ;;  %s4617_s22 = smov 4  }
  0x18   :  { %69 = dma.hbm_to_vmem [thread:$0]  %s5257_s3, 2048, %s64_s16, [#allocation9], %s4616_s21, %s4616_s21, %s4617_s22  }
  0x19   :  { %s4618_s25 = smov [#allocation2]  }
  0x1a   :  { %s29_s26 = sshll.u32 %s4618_s25, 4  ;;  %s30_s26 = int_to_ptr.vmem [resolvable:$true] %s29_s26 }
  0x1b   :  { %s4512_s1 = scalar_lea.vmem %s30_s26, 256  ;;  %p4517_p11 = scmp.lt.s32.totalorder %s30_s26, %s30_s26 }
  0x1c   :  { %p4513_p10 = scmp.ne.s32.totalorder %s30_s26, %s4512_s1  ;;  %p4518_p12 = scmp.lt.s32.totalorder %s4512_s1, %s4512_s1 }
  0x1e   :  { %p4519_p13 = por %p4518_p12, %p4517_p11 }
  0x20   :  { %p4520_p0 = pnand %p4519_p13, %p4513_p10 }
  0x22   :  { %4523 = shalt.err (!%p4520_p0)
}
  0x23   :  { %s4619_s27 = smov 128   ;;  %s4620_s28 = smov 8  }
  0x24   :  { %35 = dma.hbm_to_vmem [thread:$0]  %s5254_s0, 256, %s30_s26, [#allocation3], %s4619_s27, %s4619_s27, %s4620_s28  }
  0x25   :  { %s4621_s3 = smov [#allocation7]  }
  0x26   :  { %s51_s15 = sshll.u32 %s4621_s3, 4  ;;  %s52_s15 = int_to_ptr.vmem [resolvable:$true] %s51_s15 }
  0x27   :  { %s4532_s16 = scalar_lea.vmem %s52_s15, 6144  ;;  %p4537_p2 = scmp.lt.s32.totalorder %s52_s15, %s52_s15 }
  0x28   :  { %p4533_p1 = scmp.ne.s32.totalorder %s52_s15, %s4532_s16  ;;  %p4538_p3 = scmp.lt.s32.totalorder %s4532_s16, %s4532_s16 }
  0x2a   :  { %p4539_p4 = por %p4538_p3, %p4537_p2 }
  0x2c   :  { %p4540_p5 = pnand %p4539_p4, %p4533_p1 }
  0x2e   :  { %4543 = shalt.err (!%p4540_p5)
}
  0x2f   :  { %s4622_s17 = smov 192   ;;  %s4623_s18 = smov 12  }
  0x30   :  { %57 = dma.hbm_to_vmem [thread:$0]  %s5256_s2, 6144, %s52_s15, [#allocation6], %s4622_s17, %s4622_s17, %s4623_s18  }
  0x31   :  { %s4624_s23 = smov [#allocation10]   ;;  %s4625_s25 = smov [#allocation11]  }
  0x32   :  { %s75_s24 = sshll.u32 %s4624_s23, 4  ;;  %s87_s0 = sshll.u32 %s4625_s25, 4  ;;  %s76_s24 = int_to_ptr.vmem [resolvable:$true] %s75_s24  ;;  %s88_s0 = int_to_ptr.vmem [resolvable:$true] %s87_s0 }
  0x33   :  { %s4552_s26 = scalar_lea.vmem %s76_s24, 4096  ;;  %p4557_p7 = scmp.lt.s32.totalorder %s76_s24, %s76_s24 }
  0x34   :  { %p4553_p6 = scmp.ne.s32.totalorder %s76_s24, %s4552_s26  ;;  %p4558_p8 = scmp.lt.s32.totalorder %s4552_s26, %s4552_s26 }
  0x36   :  { %p4559_p9 = por %p4558_p8, %p4557_p7 }
  0x38   :  { %p4560_p10 = pnand %p4559_p9, %p4553_p6 }
  0x3a   :  { %4563 = shalt.err (!%p4560_p10)
}
  0x3b   :  { %81 = dma.hbm_to_vmem [thread:$0]  %s5258_s4, 4096, %s76_s24, [#allocation9], %s4619_s27, %s4619_s27, %s4620_s28  }
  0x3c   :  { %s4572_s2 = scalar_lea.vmem %s88_s0, 4096  ;;  %p4577_p12 = scmp.lt.s32.totalorder %s88_s0, %s88_s0 }
  0x3d   :  { %p4573_p11 = scmp.ne.s32.totalorder %s88_s0, %s4572_s2  ;;  %p4578_p13 = scmp.lt.s32.totalorder %s4572_s2, %s4572_s2 }
  0x3f   :  { %p4579_p0 = por %p4578_p13, %p4577_p12 }
  0x41   :  { %p4580_p1 = pnand %p4579_p0, %p4573_p11 }
  0x43   :  { %4583 = shalt.err (!%p4580_p1)
}
  0x44   :  { %93 = dma.hbm_to_vmem [thread:$0]  %s5259_s5, 4096, %s88_s0, [#allocation12], %s4616_s21, %s4616_s21, %s4617_s22  }
  0x45   :  { %4604 = dma.done.wait [#allocation3], 256  }
  0x46   :  { %4605 = vsyncadd [#allocation3], 4294967040 }
  0x47   :  { %4606 = dma.done.wait [#allocation6], 6272  }
  0x48   :  { %4607 = vsyncadd [#allocation6], 4294961024 }
  0x49   :  { %4608 = dma.done.wait [#allocation9], 6144  }
  0x4a   :  { %4609 = vsyncadd [#allocation9], 4294961152 }
  0x4b   :  { %4610 = dma.done.wait [#allocation12], 4096  }
  0x4c   :  { %4611 = vsyncadd [#allocation12], 4294963200  ;;  %v4626_v0 = vmov 0   ;;  %v4627_v1 = vmov 0.0   ;;  %v4224_v2 = vld [vmem:[#allocation7 + $0xac] ss:$12 sps:$4 sm:$0xff]   ;;  %v240_v32 = vlaneseq }
  0x4d   :  { %415 = vmatprep.mubr.bf16.mxu0 %v4626_v0  ;;  %3904 = vmatprep.subr.bf16.mxu1 %v4627_v1  ;;  %v4226_v3 = vld [vmem:[#allocation7 + $0xa8] ss:$12 sps:$4 sm:$0xff]   ;;  %v4229_v5 = vld [vmem:[#allocation7 + $0x90] ss:$12 sps:$4 sm:$0xff]   ;;  %v4232_v7 = vld [vmem:[#allocation7 + $0x78] ss:$12 sps:$4 sm:$0xff]  }
  0x4e   :  { %383 = vmatprep.subr.bf16.mxu0 %v4224_v2  ;;  %v4227_v4 = vld [vmem:[#allocation7 + $0x94] ss:$12 sps:$4 sm:$0xff]   ;;  %v4230_v6 = vld [vmem:[#allocation7 + $0x7c] ss:$12 sps:$4 sm:$0xff]   ;;  %v4233_v8 = vld [vmem:[#allocation7 + $0x64] ss:$12 sps:$4 sm:$0xff]  }
  0x4f   :  { %384 = vmatpush1.bf16.msra.mxu0 %v4226_v3  ;;  %v4235_v9 = vld [vmem:[#allocation7 + $0x60] ss:$12 sps:$4 sm:$0xff]   ;;  %v4248_v11 = vld [vmem:[#allocation7 + $0xb0] ss:$12 sps:$4 sm:$0xff]   ;;  %v4249_v12 = vld [vmem:[#allocation7 + $0x98] ss:$12 sps:$4 sm:$0xff]  }
  0x50   :  { %385 = vmatprep.subr.bf16.mxu0 %v4227_v4  ;;  %v4236_v10 = vld [vmem:[#allocation7 + $0x4c] ss:$12 sps:$4 sm:$0xff]   ;;  %3905 = vmatpush3.bf16.msra.mxu1 %v4248_v11  ;;  %v4238_v13 = vld [vmem:[#allocation7 + $0x48] ss:$12 sps:$4 sm:$0xff]   ;;  %v4241_v16 = vld [vmem:[#allocation7 + $0x30] ss:$12 sps:$4 sm:$0xff]  }
  0x51   :  { %3906 = vmatprep.subr.bf16.mxu1 %v4627_v1  ;;  %v4239_v14 = vld [vmem:[#allocation7 + $0x34] ss:$12 sps:$4 sm:$0xff]   ;;  %v4242_v17 = vld [vmem:[#allocation7 + $0x1c] ss:$12 sps:$4 sm:$0xff]   ;;  %v4244_v19 = vld [vmem:[#allocation7 + $0x18] ss:$12 sps:$4 sm:$0xff]  }
  0x52   :  { %v4250_v15 = vld [vmem:[#allocation7 + $0x80] ss:$12 sps:$4 sm:$0xff]   ;;  %v4251_v18 = vld [vmem:[#allocation7 + $0x68] ss:$12 sps:$4 sm:$0xff]   ;;  %v131_v22 = vld [vmem:[#allocation5] sm:$0xff]  ;;  %vm4628_vm0 = vmmov 0  }
  0x53   :  { %386 = vmatpush1.bf16.msra.mxu0 %v4229_v5  ;;  %v129_v20 = vld [vmem:[#allocation2] sm:$0xff]  ;;  %v130_v21 = vld [vmem:[#allocation2 + $0x8] sm:$0xff]  ;;  %v4253_v28 = vld [vmem:[#allocation7 + $0x38] ss:$12 sps:$4 sm:$0xff]   ;;  %3920 = vmatprep.mubr.msk.bf16.mxu1 %vm4628_vm0, %v4627_v1  ;;  %v4760_v33 = vshrl.u32 %v240_v32, 7  ;;  %vm473_vm1 = vcmask 261120  }
  0x54   :  { %387 = vmatprep.subr.bf16.mxu0 %v4230_v6  ;;  %3907 = vmatpush3.bf16.msra.mxu1 %v4249_v12  ;;  %v4245_v23 = vld [vmem:[#allocation7 + $0x4] ss:$12 sps:$4 sm:$0xff]   ;;  %v4247_v25 = vld [vmem:[#allocation7] ss:$12 sps:$4 sm:$0xff]   ;;  %v4742_v26 = vadd.f32 %v131_v22, %v129_v20  ;;  %v4744_v27 = vadd.f32 %v131_v22, %v130_v21  ;;  %v4255_v31 = vld [vmem:[#allocation7 + $0x8] ss:$12 sps:$4 sm:$0xff]  }
  0x55   :  { %3908 = vmatprep.subr.bf16.mxu1 %v4627_v1  ;;  %v4252_v24 = vld [vmem:[#allocation7 + $0x50] ss:$12 sps:$4 sm:$0xff]   ;;  %v4254_v30 = vld [vmem:[#allocation7 + $0x20] ss:$12 sps:$4 sm:$0xff]   ;;  %v4763_v34 = vsub.s32 1, %v4760_v33  ;;  %v4770_v38 = vsub.s32 0, %v4760_v33 }
  0x56   :  { %v238_v29 = vpack.c.bf16 %v4744_v27, %v4742_v26  ;;  %v230_v35 = vld [vmem:[%s5260_s6] sm:$0x7]  ;;  %v250_v53 = vsub.s32 2, %v4760_v33  ;;  %vm594_vm2 = vcmask 1043456   ;;  %vm566_vm3 = vcmask 64512   ;;  %s4629_s22 = smov 96  }
  0x57   :  { %388 = vmatpush1.bf16.msra.mxu0 %v4232_v7  ;;  %v247_v36 = vrot.slane %v230_v35, %v4763_v34  ;;  %v243_v42 = vrot.slane %v230_v35, %v4770_v38  ;;  %s4630_s15 = smov 32   ;;  %vm1376_vm4 = vcmask 523264   ;;  %vm1379_vm5 = vcmask 785408   ;;  %s4631_s20 = smov [#allocation13]  }
  0x58   :  { %389 = vmatprep.subr.bf16.mxu0 %v4233_v8  ;;  %3909 = vmatpush3.bf16.msra.mxu1 %v4250_v15  ;;  %v251_v54 = vrot.slane %v230_v35, %v250_v53  ;;  %s3565_s23 = sshll.u32 %s4631_s20, 4  ;;  %s3566_s23 = int_to_ptr.vmem [resolvable:$true] %s3565_s23 }
  0x59   :  { %3910 = vmatprep.subr.bf16.mxu1 %v4627_v1  ;;  %s4584_s24 = scalar_lea.vmem %s3566_s23, 256  ;;  %p4589_p3 = scmp.lt.s32.totalorder %s3566_s23, %s3566_s23 }
  0x5a   :  { %p4585_p2 = scmp.ne.s32.totalorder %s3566_s23, %s4584_s24  ;;  %p4590_p4 = scmp.lt.s32.totalorder %s4584_s24, %s4584_s24 }
  0x5b   :  { %390 = vmatpush1.bf16.msra.mxu0 %v4235_v9 }
  0x5c   :  { %391 = vmatprep.subr.bf16.mxu0 %v4236_v10  ;;  %3911 = vmatpush3.bf16.msra.mxu1 %v4251_v18  ;;  %p4591_p5 = por %p4590_p4, %p4589_p3 }
  0x5d   :  { %3912 = vmatprep.subr.bf16.mxu1 %v4627_v1 }
  0x5e   :  { %p4592_p6 = pnand %p4591_p5, %p4585_p2 }
  0x5f   :  { %392 = vmatpush1.bf16.msra.mxu0 %v4238_v13 }
  0x60   :  { %393 = vmatprep.subr.bf16.mxu0 %v4239_v14  ;;  %3913 = vmatpush3.bf16.msra.mxu1 %v4252_v24 }
  0x61   :  { %3914 = vmatprep.subr.bf16.mxu1 %v4627_v1 }
  0x63   :  { %394 = vmatpush1.bf16.msra.mxu0 %v4241_v16 }
  0x64   :  { %395 = vmatprep.subr.bf16.mxu0 %v4242_v17  ;;  %3915 = vmatpush3.bf16.msra.mxu1 %v4253_v28 }
  0x65   :  { %3916 = vmatprep.subr.bf16.mxu1 %v4627_v1 }
  0x67   :  { %396 = vmatpush1.bf16.msra.mxu0 %v4244_v19 }
  0x68   :  { %397 = vmatprep.subr.bf16.mxu0 %v4245_v23  ;;  %3917 = vmatpush3.bf16.msra.mxu1 %v4254_v30 }
  0x69   :  { %3918 = vmatprep.subr.bf16.mxu1 %v4627_v1 }
  0x6b   :  { %398 = vmatpush1.bf16.msra.mxu0 %v4247_v25 }
  0x6c   :  { %3948 = vmatprep.subr.bf16.mxu0 %v4627_v1  ;;  %3919 = vmatpush3.bf16.msra.mxu1 %v4255_v31 }
  0x6d   :  { %3924 = vmatprep.subr.bf16.mxu1 %v4627_v1 }
  0x6e   :  { %416 = vmatmul.mubr.bf16.vlgmr.msra.gmra.mxu0 %v238_v29 }
  0x6f   :  { %3950 = vmatprep.mubr.msk.bf16.mxu0 %vm4628_vm0, %v4627_v1  ;;  %3921 = vmatmul.mubr.bf16.vlgmr.msra.gmra.mxu1 %v238_v29 }
  0x70   :  { %3926 = vmatprep.mubr.msk.bf16.mxu1 %vm4628_vm0, %v4627_v1 }
 0x12e   :  { %v417_v37 = vpop.f32.mrf.mxu0 }
 0x12f   :  { %v418_v47 = vadd.f32 %v417_v37, %v243_v42  ;;  %v460_v55 = vpop.f32.mrf.mxu1 }
 0x130   :  { %v419_v39 = vpop.f32.mrf.mxu0  ;;  %v461_v56 = vadd.f32 %v460_v55, %v251_v54 }
 0x131   :  { %v420_v40 = vadd.f32 %v419_v39, %v247_v36  ;;  %v4780_v49 = vpack.c.bf16 %v418_v47, %v418_v47  ;;  %v3922_v57 = vpop.f32.mrf.mxu1 }
 0x132   :  { %v421_v41 = vpop.f32.mrf.mxu0  ;;  %v4798_v58 = vpack.c.bf16 %v461_v56, %v461_v56 }
 0x133   :  { %v4773_v43 = vpack.c.bf16 %v420_v40, %v420_v40  ;;  %v422_v51 = vadd.f32 %v421_v41, %v243_v42  ;;  %v463_v59 = vpop.f32.mrf.mxu1 }
 0x134   :  { %v423_v44 = vpop.f32.mrf.mxu0  ;;  %v464_v60 = vadd.f32 %v463_v59, %v251_v54  ;;  %v596_v61 = vsel %vm594_vm2, %v4798_v58, 0 }
 0x135   :  { %v424_v45 = vadd.f32 %v423_v44, %v247_v36  ;;  %v478_v46 = vsel %vm473_vm1, %v4773_v43, 0  ;;  %v4789_v52 = vpack.c.bf16 %v422_v51, %v422_v51  ;;  %v3923_v62 = vpop.f32.mrf.mxu1 }
 0x136   :  { %3925 = vmatpush3.bf16.xpose.msra.mxu1 %v478_v46  ;;  %v4817_v25 = vpack.c.bf16 %v464_v60, %v464_v60 }
 0x137   :  { %3930 = vmatprep.subr.bf16.mxu1 %v4627_v1  ;;  %v4778_v48 = vpack.c.bf16 %v424_v45, %v424_v45 }
 0x138   :  { %v642_v30 = vsel %vm594_vm2, %v4817_v25, 0 }
 0x139   :  { %v524_v50 = vsel %vm473_vm1, %v4778_v48, 0 }
 0x13d   :  { %3927 = vmatmul.mubr.msk.bf16.vlgmr.msra.gmra.mxu1 %vm473_vm1, %v4780_v49 }
 0x13e   :  { %3931 = vmatpush3.bf16.xpose.msra.mxu1 %v524_v50  ;;  %3932 = vmatprep.mubr.msk.bf16.mxu1 %vm4628_vm0, %v4627_v1 }
 0x13f   :  { %3936 = vmatprep.subr.bf16.mxu1 %v4627_v1 }
 0x145   :  { %3933 = vmatmul.mubr.msk.bf16.vlgmr.msra.gmra.mxu1 %vm473_vm1, %v4789_v52 }
 0x146   :  { %3938 = vmatprep.mubr.msk.bf16.mxu1 %vm4628_vm0, %v4627_v1  ;;  %3937 = vmatpush3.bf16.msra.mxu1 %v596_v61 }
 0x147   :  { %3942 = vmatprep.subr.bf16.mxu1 %v4627_v1 }
 0x1fd   :  { %v514_v63 = vpop.f32.mrf.mxu1 }
 0x1fe   :  { %v567_v2 = vsel %vm566_vm3, %v514_v63, -inf }
 0x1ff   :  { %568 = vmax.xlane.f32.xlu0 %v567_v2  ;;  %v3928_v3 = vpop.f32.mrf.mxu1 }
 0x201   :  { %v517_v4 = vpop.f32.mrf.mxu1 }
 0x203   :  { %v3929_v5 = vpop.f32.mrf.mxu1 }
 0x205   :  { %v560_v6 = vpop.f32.mrf.mxu1 }
 0x206   :  { %v570_v7 = vsel %vm566_vm3, %v560_v6, -inf }
 0x207   :  { %571 = vmax.xlane.f32.xlu0 %v570_v7  ;;  %v3934_v8 = vpop.f32.mrf.mxu1 }
 0x209   :  { %v563_v9 = vpop.f32.mrf.mxu1 }
 0x20b   :  { %v3935_v10 = vpop.f32.mrf.mxu1 }
 0x21d   :  { %688 = vrot.lane.b32.xlu0 %v4773_v43, %s4629_s22 }
 0x288   :  { %v569_v11 = vpop.xlane.xlu0 %568 }
 0x289   :  { %v573_v12 = vsub.f32 %v514_v63, %v569_v11 }
 0x28b   :  { %v575_v13 = vmul.f32 1.442695, %v573_v12 }
 0x28d   :  { %4384 = vpow2.f32 %v575_v13 }
 0x290   :  { %v572_v14 = vpop.xlane.xlu0 %571 }
 0x291   :  { %v574_v19 = vsub.f32 %v560_v6, %v572_v14 }
 0x293   :  { %v577_v20 = vmul.f32 1.442695, %v574_v19 }
 0x294   :  { %v689_v15 = vpop.permute.xlu0 %688 }
 0x295   :  { %v694_v16 = vsel %vm473_vm1, %v689_v15, 0  ;;  %4386 = vpow2.f32 %v577_v20 }
 0x296   :  { %3949 = vmatpush3.bf16.xpose.msra.mxu0 %v694_v16 }
 0x297   :  { %3960 = vmatprep.subr.bf16.mxu0 %v4627_v1 }
 0x29a   :  { %v4385_v17 = vpop.eup %4384 }
 0x29b   :  { %v579_v18 = vsel %vm566_vm3, %v4385_v17, 0.0 }
 0x29c   :  { %580 = vadd.xlane.f32.xlu1 %v579_v18 }
 0x2a2   :  { %v4387_v21 = vpop.eup %4386 }
 0x2a3   :  { %v582_v22 = vsel %vm566_vm3, %v4387_v21, 0.0 }
 0x2ad   :  { %740 = vrot.lane.b32.xlu1 %v4778_v48, %s4629_s22 }
 0x2d1   :  { %583 = vadd.xlane.f32.xlu1 %v582_v22 }
 0x2e2   :  { %685 = vrot.lane.b32.xlu1 %v4780_v49, %s4629_s22 }
 0x2e6   :  { %737 = vrot.lane.b32.xlu1 %v4789_v52, %s4629_s22 }
 0x325   :  { %v581_v23 = vpop.xlane.xlu1 %580 }
 0x326   :  { %4388 = vrcp.f32 %v581_v23 }
 0x329   :  { %v741_v31 = vpop.permute.xlu1 %740 }
 0x32a   :  { %v746_v40 = vsel %vm473_vm1, %v741_v31, 0 }
 0x333   :  { %v4389_v24 = vpop.eup %4388 }
 0x334   :  { %v587_v28 = vmul.f32 %v4389_v24, %v4385_v17 }
 0x336   :  { %v589_v29 = vpack.c.bf16 %v587_v28, %v587_v28 }
 0x338   :  { %3939 = vmatmul.mubr.msk.bf16.vlgmr.msra.gmra.mxu1 %vm566_vm3, %v589_v29 }
 0x339   :  { %3943 = vmatpush3.bf16.msra.mxu1 %v642_v30  ;;  %3944 = vmatprep.mubr.msk.bf16.mxu1 %vm4628_vm0, %v4627_v1 }
 0x33a   :  { %3954 = vmatprep.subr.bf16.mxu1 %v4627_v1 }
 0x35a   :  { %v584_v32 = vpop.xlane.xlu1 %583 }
 0x35b   :  { %4390 = vrcp.f32 %v584_v32 }
 0x35e   :  { %v686_v35 = vpop.permute.xlu1 %685 }
 0x35f   :  { %3951 = vmatmul.mubr.msk.bf16.vlgmr.msra.gmra.mxu0 %vm473_vm1, %v686_v35 }
 0x360   :  { %3962 = vmatprep.mubr.msk.bf16.mxu0 %vm4628_vm0, %v4627_v1 }
 0x362   :  { %v738_v41 = vpop.permute.xlu1 %737 }
 0x368   :  { %v4391_v36 = vpop.eup %4390 }
 0x369   :  { %v588_v37 = vmul.f32 %v4391_v36, %v4387_v21 }
 0x36b   :  { %v590_v39 = vpack.c.bf16 %v588_v37, %v588_v37 }
 0x36d   :  { %3945 = vmatmul.mubr.msk.bf16.vlgmr.msra.gmra.mxu1 %vm566_vm3, %v590_v39 }
 0x36e   :  { %3955 = vmatpush3.bf16.xpose.msra.mxu1 %v746_v40  ;;  %3956 = vmatprep.mubr.msk.bf16.mxu1 %vm4628_vm0, %v4627_v1 }
 0x36f   :  { %3966 = vmatprep.subr.bf16.mxu1 %v4627_v1 }
 0x375   :  { %3957 = vmatmul.mubr.msk.bf16.vlgmr.msra.gmra.mxu1 %vm473_vm1, %v738_v41 }
 0x376   :  { %3968 = vmatprep.mubr.msk.bf16.mxu1 %vm4628_vm0, %v4627_v1 }
 0x3f8   :  { %v4836_v42 = vpop.f32.mrf.mxu1 }
 0x3fa   :  { %v3940_v44 = vpop.f32.mrf.mxu1 }
 0x3fc   :  { %v635_v45 = vpop.f32.mrf.mxu1 }
 0x3fe   :  { %v3941_v46 = vpop.f32.mrf.mxu1 }
 0x41f   :  { %v730_v47 = vpop.f32.mrf.mxu0 }
 0x420   :  { %v788_v50 = vsel %vm566_vm3, %v730_v47, -inf }
 0x421   :  { %789 = vmax.xlane.f32.xlu0 %v788_v50  ;;  %v3952_v51 = vpop.f32.mrf.mxu0 }
 0x423   :  { %v733_v54 = vpop.f32.mrf.mxu0 }
 0x425   :  { %v3953_v55 = vpop.f32.mrf.mxu0 }
 0x42d   :  { %v4839_v56 = vpop.f32.mrf.mxu1 }
 0x42f   :  { %v3946_v57 = vpop.f32.mrf.mxu1 }
 0x431   :  { %v681_v59 = vpop.f32.mrf.mxu1 }
 0x433   :  { %v3947_v60 = vpop.f32.mrf.mxu1 }
 0x435   :  { %v782_v61 = vpop.f32.mrf.mxu1 }
 0x436   :  { %v791_v62 = vsel %vm566_vm3, %v782_v61, -inf }
 0x437   :  { %792 = vmax.xlane.f32.xlu1 %v791_v62  ;;  %v3958_v63 = vpop.f32.mrf.mxu1 }
 0x439   :  { %v785_v2 = vpop.f32.mrf.mxu1 }
 0x43b   :  { %v3959_v3 = vpop.f32.mrf.mxu1 }
 0x448   :  { %862 = vrot.lane.b32.xlu1 %v4817_v25, %s4629_s22 }
 0x44c   :  { %912 = vrot.lane.b32.xlu1 %v4773_v43, %s4616_s21 }
 0x450   :  { %962 = vrot.lane.b32.xlu1 %v4778_v48, %s4616_s21 }
 0x454   :  { %960 = vrot.lane.b32.xlu1 %v4789_v52, %s4616_s21 }
 0x4aa   :  { %v790_v4 = vpop.xlane.xlu0 %789 }
 0x4ab   :  { %v794_v5 = vsub.f32 %v730_v47, %v790_v4 }
 0x4ad   :  { %v796_v6 = vmul.f32 1.442695, %v794_v5 }
 0x4af   :  { %4392 = vpow2.f32 %v796_v6 }
 0x4bc   :  { %v4393_v7 = vpop.eup %4392 }
 0x4bd   :  { %v800_v8 = vsel %vm566_vm3, %v4393_v7, 0.0 }
 0x4be   :  { %801 = vadd.xlane.f32.xlu0 %v800_v8 }
 0x4c0   :  { %v793_v9 = vpop.xlane.xlu1 %792 }
 0x4c1   :  { %v795_v10 = vsub.f32 %v782_v61, %v793_v9 }
 0x4c3   :  { %v798_v11 = vmul.f32 1.442695, %v795_v10 }
 0x4c4   :  { %v863_v12 = vpop.permute.xlu1 %862 }
 0x4c5   :  { %4394 = vpow2.f32 %v798_v11  ;;  %v868_v13 = vsel %vm594_vm2, %v863_v12, 0 }
 0x4c6   :  { %3967 = vmatpush3.bf16.msra.mxu1 %v868_v13 }
 0x4c7   :  { %3978 = vmatprep.subr.bf16.mxu1 %v4627_v1 }
 0x4c8   :  { %v913_v22 = vpop.permute.xlu1 %912 }
 0x4c9   :  { %v918_v24 = vsel %vm473_vm1, %v913_v22, 0 }
 0x4cc   :  { %v963_v30 = vpop.permute.xlu1 %962 }
 0x4cd   :  { %v968_v35 = vsel %vm473_vm1, %v963_v30, 0 }
 0x4d0   :  { %v961_v36 = vpop.permute.xlu1 %960 }
 0x4d2   :  { %v4395_v14 = vpop.eup %4394 }
 0x4d3   :  { %v803_v15 = vsel %vm566_vm3, %v4395_v14, 0.0 }
 0x4d4   :  { %804 = vadd.xlane.f32.xlu0 %v803_v15 }
 0x4ea   :  { %813 = vrot.lane.b32.xlu0 %v4798_v58, %s4629_s22 }
 0x4ee   :  { %910 = vrot.lane.b32.xlu0 %v4780_v49, %s4616_s21 }
 0x547   :  { %v802_v16 = vpop.xlane.xlu0 %801 }
 0x548   :  { %4396 = vrcp.f32 %v802_v16 }
 0x555   :  { %v4397_v17 = vpop.eup %4396 }
 0x556   :  { %v808_v19 = vmul.f32 %v4397_v17, %v4393_v7 }
 0x558   :  { %v810_v23 = vpack.c.bf16 %v808_v19, %v808_v19 }
 0x55d   :  { %v805_v18 = vpop.xlane.xlu0 %804 }
 0x55e   :  { %4398 = vrcp.f32 %v805_v18 }
 0x561   :  { %v814_v20 = vpop.permute.xlu0 %813 }
 0x562   :  { %v819_v21 = vsel %vm594_vm2, %v814_v20, 0 }
 0x563   :  { %3961 = vmatpush3.bf16.msra.mxu0 %v819_v21 }
 0x564   :  { %3972 = vmatprep.subr.bf16.mxu0 %v4627_v1 }
 0x565   :  { %v911_v31 = vpop.permute.xlu0 %910 }
 0x566   :  { %3963 = vmatmul.mubr.msk.bf16.vlgmr.msra.gmra.mxu0 %vm566_vm3, %v810_v23 }
 0x567   :  { %3973 = vmatpush3.bf16.xpose.msra.mxu0 %v918_v24  ;;  %3974 = vmatprep.mubr.msk.bf16.mxu0 %vm4628_vm0, %v4627_v1 }
 0x568   :  { %3984 = vmatprep.subr.bf16.mxu0 %v4627_v1 }
 0x56b   :  { %v4399_v28 = vpop.eup %4398 }
 0x56c   :  { %v809_v29 = vmul.f32 %v4399_v28, %v4395_v14 }
 0x56e   :  { %3975 = vmatmul.mubr.msk.bf16.vlgmr.msra.gmra.mxu0 %vm473_vm1, %v911_v31  ;;  %v811_v32 = vpack.c.bf16 %v809_v29, %v809_v29 }
 0x56f   :  { %3986 = vmatprep.mubr.msk.bf16.mxu0 %vm4628_vm0, %v4627_v1 }
 0x570   :  { %3969 = vmatmul.mubr.msk.bf16.vlgmr.msra.gmra.mxu1 %vm566_vm3, %v811_v32 }
 0x571   :  { %3979 = vmatpush3.bf16.xpose.msra.mxu1 %v968_v35  ;;  %3980 = vmatprep.mubr.msk.bf16.mxu1 %vm4628_vm0, %v4627_v1 }
 0x572   :  { %3990 = vmatprep.subr.bf16.mxu1 %v4627_v1 }
 0x578   :  { %3981 = vmatmul.mubr.msk.bf16.vlgmr.msra.gmra.mxu1 %vm473_vm1, %v961_v36 }
 0x579   :  { %3992 = vmatprep.mubr.msk.bf16.mxu1 %vm4628_vm0, %v4627_v1 }
 0x626   :  { %v4876_v37 = vpop.f32.mrf.mxu0 }
 0x628   :  { %v3964_v39 = vpop.f32.mrf.mxu0 }
 0x62a   :  { %v858_v40 = vpop.f32.mrf.mxu0 }
 0x62c   :  { %v3965_v41 = vpop.f32.mrf.mxu0 }
 0x62e   :  { %v954_v44 = vpop.f32.mrf.mxu0 }
 0x62f   :  { %v1010_v45 = vsel %vm566_vm3, %v954_v44, -inf }
 0x630   :  { %1011 = vmax.xlane.f32.xlu0 %v1010_v45  ;;  %v4879_v46 = vpop.f32.mrf.mxu1  ;;  %v3976_v47 = vpop.f32.mrf.mxu0 }
 0x631   :  { %v4194_v50 = vpack.i.bf16 %v4879_v46, %v4876_v37 }
 0x632   :  { %v3970_v51 = vpop.f32.mrf.mxu1  ;;  %v957_v54 = vpop.f32.mrf.mxu0 }
 0x634   :  { %v907_v55 = vpop.f32.mrf.mxu1  ;;  %v3977_v57 = vpop.f32.mrf.mxu0 }
 0x636   :  { %v3971_v59 = vpop.f32.mrf.mxu1 }
 0x638   :  { %v1004_v60 = vpop.f32.mrf.mxu1 }
 0x639   :  { %v1013_v61 = vsel %vm566_vm3, %v1004_v60, -inf }
 0x63a   :  { %1014 = vmax.xlane.f32.xlu1 %v1013_v61  ;;  %v3982_v62 = vpop.f32.mrf.mxu1 }
 0x63c   :  { %v1007_v63 = vpop.f32.mrf.mxu1 }
 0x63e   :  { %v3983_v2 = vpop.f32.mrf.mxu1 }
 0x64b   :  { %1082 = vrot.lane.b32.xlu1 %v4817_v25, %s4616_s21 }
 0x64f   :  { %1132 = vrot.lane.b32.xlu1 %v4773_v43, %s4630_s15 }
 0x653   :  { %1182 = vrot.lane.b32.xlu1 %v4778_v48, %s4630_s15 }
 0x657   :  { %1180 = vrot.lane.b32.xlu1 %v4789_v52, %s4630_s15 }
 0x6b9   :  { %v1012_v3 = vpop.xlane.xlu0 %1011 }
 0x6ba   :  { %v1016_v4 = vsub.f32 %v954_v44, %v1012_v3 }
 0x6bc   :  { %v1018_v5 = vmul.f32 1.442695, %v1016_v4 }
 0x6be   :  { %4400 = vpow2.f32 %v1018_v5 }
 0x6c3   :  { %v1015_v6 = vpop.xlane.xlu1 %1014 }
 0x6c4   :  { %v1017_v7 = vsub.f32 %v1004_v60, %v1015_v6 }
 0x6c6   :  { %v1020_v8 = vmul.f32 1.442695, %v1017_v7 }
 0x6c7   :  { %v1083_v9 = vpop.permute.xlu1 %1082 }
 0x6c8   :  { %4402 = vpow2.f32 %v1020_v8  ;;  %v1088_v10 = vsel %vm594_vm2, %v1083_v9, 0 }
 0x6c9   :  { %3991 = vmatpush3.bf16.msra.mxu1 %v1088_v10 }
 0x6ca   :  { %4002 = vmatprep.subr.bf16.mxu1 %v4627_v1 }
 0x6cb   :  { %v4401_v43 = vpop.eup %4400  ;;  %v1133_v18 = vpop.permute.xlu1 %1132 }
 0x6cc   :  { %v1022_v48 = vsel %vm566_vm3, %v4401_v43, 0.0  ;;  %v1138_v20 = vsel %vm473_vm1, %v1133_v18, 0  ;;  %v4259_v18 = vld [vmem:[#allocation8 + $0x20] sm:$0xff]  }
 0x6cd   :  { %1023 = vadd.xlane.f32.xlu0 %v1022_v48 }
 0x6cf   :  { %v1183_v22 = vpop.permute.xlu1 %1182 }
 0x6d0   :  { %v1188_v28 = vsel %vm473_vm1, %v1183_v22, 0  ;;  %v4263_v22 = vld [vmem:[#allocation8] sm:$0xff]  }
 0x6d3   :  { %v1181_v29 = vpop.permute.xlu1 %1180 }
 0x6d5   :  { %v4403_v11 = vpop.eup %4402 }
 0x6d6   :  { %v1025_v52 = vsel %vm566_vm3, %v4403_v11, 0.0 }
 0x6d7   :  { %1026 = vadd.xlane.f32.xlu0 %v1025_v52 }
 0x6ed   :  { %1034 = vrot.lane.b32.xlu0 %v4798_v58, %s4616_s21 }
 0x6f1   :  { %1130 = vrot.lane.b32.xlu0 %v4780_v49, %s4630_s15 }
 0x756   :  { %v1024_v12 = vpop.xlane.xlu0 %1023 }
 0x757   :  { %4404 = vrcp.f32 %v1024_v12 }
 0x760   :  { %v1027_v13 = vpop.xlane.xlu0 %1026 }
 0x761   :  { %4406 = vrcp.f32 %v1027_v13 }
 0x764   :  { %v4405_v14 = vpop.eup %4404  ;;  %v1035_v15 = vpop.permute.xlu0 %1034 }
 0x765   :  { %v1040_v16 = vsel %vm594_vm2, %v1035_v15, 0  ;;  %v1030_v17 = vmul.f32 %v4405_v14, %v4401_v43  ;;  %v4256_v15 = vld [vmem:[#allocation8 + $0x38] sm:$0xff]  }
 0x766   :  { %3985 = vmatpush3.bf16.msra.mxu0 %v1040_v16  ;;  %v4257_v16 = vld [vmem:[#allocation8 + $0x30] sm:$0xff]  }
 0x767   :  { %v1032_v19 = vpack.c.bf16 %v1030_v17, %v1030_v17  ;;  %3996 = vmatprep.subr.bf16.mxu0 %v4627_v1  ;;  %v4258_v17 = vld [vmem:[#allocation8 + $0x28] sm:$0xff]  }
 0x768   :  { %v1131_v23 = vpop.permute.xlu0 %1130 }
 0x769   :  { %3987 = vmatmul.mubr.msk.bf16.vlgmr.msra.gmra.mxu0 %vm566_vm3, %v1032_v19  ;;  %v4260_v19 = vld [vmem:[#allocation8 + $0x18] sm:$0xff]  }
 0x76a   :  { %3997 = vmatpush3.bf16.xpose.msra.mxu0 %v1138_v20  ;;  %3998 = vmatprep.mubr.msk.bf16.mxu0 %vm4628_vm0, %v4627_v1  ;;  %v4261_v20 = vld [vmem:[#allocation8 + $0x10] sm:$0xff]  }
 0x76b   :  { %4008 = vmatprep.subr.bf16.mxu0 %v4627_v1 }
 0x76e   :  { %v4407_v49 = vpop.eup %4406 }
 0x76f   :  { %v1031_v21 = vmul.f32 %v4407_v49, %v4403_v11  ;;  %v4262_v49 = vld [vmem:[#allocation8 + $0x8] sm:$0xff]  }
 0x771   :  { %3999 = vmatmul.mubr.msk.bf16.vlgmr.msra.gmra.mxu0 %vm473_vm1, %v1131_v23  ;;  %v1033_v24 = vpack.c.bf16 %v1031_v21, %v1031_v21 }
 0x772   :  { %4010 = vmatprep.mubr.msk.bf16.mxu0 %vm4628_vm0, %v4627_v1 }
 0x773   :  { %3993 = vmatmul.mubr.msk.bf16.vlgmr.msra.gmra.mxu1 %vm566_vm3, %v1033_v24 }
 0x774   :  { %4003 = vmatpush3.bf16.xpose.msra.mxu1 %v1188_v28  ;;  %4004 = vmatprep.mubr.msk.bf16.mxu1 %vm4628_vm0, %v4627_v1 }
 0x775   :  { %4014 = vmatprep.subr.bf16.mxu1 %v4627_v1 }
 0x77b   :  { %4005 = vmatmul.mubr.msk.bf16.vlgmr.msra.gmra.mxu1 %vm473_vm1, %v1181_v29 }
 0x77c   :  { %4016 = vmatprep.mubr.msk.bf16.mxu1 %vm4628_vm0, %v4627_v1 }
 0x829   :  { %v1076_v30 = vpop.f32.mrf.mxu0 }
 0x82b   :  { %v3988_v31 = vpop.f32.mrf.mxu0 }
 0x82d   :  { %v1079_v32 = vpop.f32.mrf.mxu0 }
 0x82f   :  { %v3989_v35 = vpop.f32.mrf.mxu0 }
 0x831   :  { %v1174_v36 = vpop.f32.mrf.mxu0 }
 0x832   :  { %v1230_v39 = vsel %vm566_vm3, %v1174_v36, -inf }
 0x833   :  { %1231 = vmax.xlane.f32.xlu0 %v1230_v39  ;;  %v1124_v40 = vpop.f32.mrf.mxu1  ;;  %v4000_v41 = vpop.f32.mrf.mxu0 }
 0x834   :  { %v4199_v62 = vpack.i.bf16 %v1124_v40, %v1076_v30 }
 0x835   :  { %v3994_v44 = vpop.f32.mrf.mxu1  ;;  %v1177_v45 = vpop.f32.mrf.mxu0 }
 0x837   :  { %v1127_v47 = vpop.f32.mrf.mxu1  ;;  %v4001_v51 = vpop.f32.mrf.mxu0 }
 0x839   :  { %v3995_v54 = vpop.f32.mrf.mxu1 }
 0x83b   :  { %v1224_v55 = vpop.f32.mrf.mxu1 }
 0x83c   :  { %v1233_v57 = vsel %vm566_vm3, %v1224_v55, -inf }
 0x83d   :  { %1234 = vmax.xlane.f32.xlu1 %v1233_v57  ;;  %v4006_v59 = vpop.f32.mrf.mxu1 }
 0x83f   :  { %v1227_v60 = vpop.f32.mrf.mxu1 }
 0x841   :  { %v4007_v61 = vpop.f32.mrf.mxu1 }
 0x84e   :  { %1302 = vrot.lane.b32.xlu1 %v4817_v25, %s4630_s15 }
 0x852   :  { %4195 = vrot.lane.b32.xlu1 %v4194_v50, %s4630_s15 }
 0x856   :  { %4200 = vrot.lane.b32.xlu1 %v4199_v62, %s4616_s21 }
 0x8bc   :  { %v1232_v63 = vpop.xlane.xlu0 %1231 }
 0x8bd   :  { %v1236_v2 = vsub.f32 %v1174_v36, %v1232_v63 }
 0x8bf   :  { %v1238_v3 = vmul.f32 1.442695, %v1236_v2  ;;  %v3620_v2 = vld [vmem:[%s5262_s8] ss:$0 sm:$0xff] }
 0x8c1   :  { %4408 = vpow2.f32 %v1238_v3 }
 0x8c6   :  { %v1235_v4 = vpop.xlane.xlu1 %1234 }
 0x8c7   :  { %v1237_v5 = vsub.f32 %v1224_v55, %v1235_v4 }
 0x8c9   :  { %v1240_v6 = vmul.f32 1.442695, %v1237_v5 }
 0x8ca   :  { %v1303_v7 = vpop.permute.xlu1 %1302 }
 0x8cb   :  { %4410 = vpow2.f32 %v1240_v6  ;;  %v1308_v8 = vsel %vm594_vm2, %v1303_v7, 0 }
 0x8cc   :  { %4015 = vmatpush3.bf16.msra.mxu1 %v1308_v8 }
 0x8ce   :  { %v4409_v25 = vpop.eup %4408  ;;  %v4196_v36 = vpop.permute.xlu1 %4195 }
 0x8cf   :  { %v1242_v9 = vsel %vm566_vm3, %v4409_v25, 0.0  ;;  %v4198_v40 = vunpack.i.h.bf16 %v4196_v36  ;;  %v4197_v41 = vunpack.i.l.bf16 %v4196_v36  ;;  %v4297_v36 = vld [vmem:[#allocation11 + $0x18] sm:$0xff]  }
 0x8d0   :  { %1243 = vadd.xlane.f32.xlu0 %v1242_v9  ;;  %v4266_v9 = vld [vmem:[#allocation10 + $0x74] ss:$8 sps:$4 sm:$0xff]  }
 0x8d1   :  { %v1375_v51 = vsel %vm473_vm1, %v4839_v56, %v4198_v40  ;;  %v1374_v54 = vsel %vm473_vm1, %v4836_v42, %v4197_v41  ;;  %1611 = vmatprep.subr.bf16.mxu1 %v4266_v9 }
 0x8d2   :  { %v4201_v39 = vpop.permute.xlu1 %4200 }
 0x8d3   :  { %v4203_v44 = vunpack.i.h.bf16 %v4201_v39  ;;  %v4202_v45 = vunpack.i.l.bf16 %v4201_v39 }
 0x8d5   :  { %v1377_v59 = vsel %vm1376_vm4, %v1374_v54, %v4202_v45  ;;  %v1378_v60 = vsel %vm1376_vm4, %v1375_v51, %v4203_v44 }
 0x8d8   :  { %v4411_v37 = vpop.eup %4410 }
 0x8d9   :  { %v1245_v46 = vsel %vm566_vm3, %v4411_v37, 0.0 }
 0x8da   :  { %1246 = vadd.xlane.f32.xlu0 %v1245_v46 }
 0x8f0   :  { %1254 = vrot.lane.b32.xlu0 %v4798_v58, %s4630_s15 }
 0x959   :  { %v1244_v50 = vpop.xlane.xlu0 %1243 }
 0x95a   :  { %4412 = vrcp.f32 %v1244_v50 }
 0x963   :  { %v1247_v10 = vpop.xlane.xlu0 %1246 }
 0x964   :  { %4414 = vrcp.f32 %v1247_v10 }
 0x967   :  { %v4413_v43 = vpop.eup %4412  ;;  %v1255_v48 = vpop.permute.xlu0 %1254 }
 0x968   :  { %v1260_v11 = vsel %vm594_vm2, %v1255_v48, 0  ;;  %v1250_v52 = vmul.f32 %v4413_v43, %v4409_v25  ;;  %v4264_v25 = vld [vmem:[#allocation10 + $0x70] ss:$8 sps:$4 sm:$0xff]  }
 0x969   :  { %4009 = vmatpush3.bf16.msra.mxu0 %v1260_v11  ;;  %v4269_v11 = vld [vmem:[#allocation10 + $0x64] ss:$8 sps:$4 sm:$0xff]  }
 0x96a   :  { %v1252_v12 = vpack.c.bf16 %v1250_v52, %v1250_v52  ;;  %4020 = vmatprep.subr.bf16.mxu0 %v4627_v1  ;;  %v4267_v52 = vld [vmem:[#allocation10 + $0x60] ss:$8 sps:$4 sm:$0xff]  }
 0x96c   :  { %4011 = vmatmul.mubr.msk.bf16.vlgmr.msra.gmra.mxu0 %vm566_vm3, %v1252_v12  ;;  %v4272_v12 = vld [vmem:[#allocation10 + $0x54] ss:$8 sps:$4 sm:$0xff]  }
 0x96d   :  { %4036 = vmatprep.mubr.msk.bf16.mxu0 %vm4628_vm0, %v4627_v1  ;;  %4021 = vmatpush3.bf16.msra.mxu0 %v4256_v15  ;;  %v4278_v15 = vld [vmem:[#allocation10 + $0x34] ss:$8 sps:$4 sm:$0xff]  }
 0x96e   :  { %4022 = vmatprep.subr.bf16.mxu0 %v4627_v1 }
 0x971   :  { %v4415_v13 = vpop.eup %4414  ;;  %4023 = vmatpush3.bf16.msra.mxu0 %v4257_v16  ;;  %v4276_v16 = vld [vmem:[#allocation10 + $0x30] ss:$8 sps:$4 sm:$0xff]  }
 0x972   :  { %v1251_v58 = vmul.f32 %v4415_v13, %v4411_v37  ;;  %4024 = vmatprep.subr.bf16.mxu0 %v4627_v1  ;;  %v4270_v13 = vld [vmem:[#allocation10 + $0x50] ss:$8 sps:$4 sm:$0xff]  }
 0x974   :  { %v1253_v14 = vpack.c.bf16 %v1251_v58, %v1251_v58  ;;  %v4273_v58 = vld [vmem:[#allocation10 + $0x40] ss:$8 sps:$4 sm:$0xff]  }
 0x975   :  { %4025 = vmatpush3.bf16.msra.mxu0 %v4258_v17  ;;  %v4281_v17 = vld [vmem:[#allocation10 + $0x24] ss:$8 sps:$4 sm:$0xff]  }
 0x976   :  { %4017 = vmatmul.mubr.msk.bf16.vlgmr.msra.gmra.mxu1 %vm566_vm3, %v1253_v14  ;;  %4026 = vmatprep.subr.bf16.mxu0 %v4627_v1  ;;  %v4275_v14 = vld [vmem:[#allocation10 + $0x44] ss:$8 sps:$4 sm:$0xff]  }
 0x977   :  { %1643 = vmatprep.mubr.bf16.mxu1 %v4626_v0  ;;  %1612 = vmatpush1.bf16.msra.mxu1 %v4264_v25 }
 0x978   :  { %1613 = vmatprep.subr.bf16.mxu1 %v4269_v11 }
 0x979   :  { %4027 = vmatpush3.bf16.msra.mxu0 %v4259_v18  ;;  %v4279_v18 = vld [vmem:[#allocation10 + $0x20] ss:$8 sps:$4 sm:$0xff]  }
 0x97a   :  { %4028 = vmatprep.subr.bf16.mxu0 %v4627_v1 }
 0x97b   :  { %1614 = vmatpush1.bf16.msra.mxu1 %v4267_v52 }
 0x97c   :  { %1615 = vmatprep.subr.bf16.mxu1 %v4272_v12 }
 0x97d   :  { %4029 = vmatpush3.bf16.msra.mxu0 %v4260_v19  ;;  %v4284_v19 = vld [vmem:[#allocation10 + $0x14] ss:$8 sps:$4 sm:$0xff]  }
 0x97e   :  { %4030 = vmatprep.subr.bf16.mxu0 %v4627_v1 }
 0x97f   :  { %1616 = vmatpush1.bf16.msra.mxu1 %v4270_v13 }
 0x980   :  { %1617 = vmatprep.subr.bf16.mxu1 %v4275_v14 }
 0x981   :  { %4031 = vmatpush3.bf16.msra.mxu0 %v4261_v20  ;;  %v4282_v20 = vld [vmem:[#allocation10 + $0x10] ss:$8 sps:$4 sm:$0xff]  }
 0x982   :  { %4032 = vmatprep.subr.bf16.mxu0 %v4627_v1 }
 0x983   :  { %1618 = vmatpush1.bf16.msra.mxu1 %v4273_v58 }
 0x984   :  { %1619 = vmatprep.subr.bf16.mxu1 %v4278_v15 }
 0x985   :  { %4033 = vmatpush3.bf16.msra.mxu0 %v4262_v49  ;;  %v4287_v49 = vld [vmem:[#allocation10 + $0x4] ss:$8 sps:$4 sm:$0xff]  }
 0x986   :  { %4034 = vmatprep.subr.bf16.mxu0 %v4627_v1 }
 0x987   :  { %1620 = vmatpush1.bf16.msra.mxu1 %v4276_v16  ;;  %v3647_v16 = vld [vmem:[%s5265_s11] ss:$0 sm:$0xff] }
 0x988   :  { %1621 = vmatprep.subr.bf16.mxu1 %v4281_v17 }
 0x989   :  { %4035 = vmatpush3.bf16.msra.mxu0 %v4263_v22  ;;  %v4288_v22 = vld [vmem:[#allocation11 + $0x78] sm:$0xff]  }
 0x98a   :  { %3810 = vmatprep.subr.bf16.mxu0 %v4288_v22 }
 0x98b   :  { %1622 = vmatpush1.bf16.msra.mxu1 %v4279_v18 }
 0x98c   :  { %1623 = vmatprep.subr.bf16.mxu1 %v4284_v19 }
 0x98f   :  { %1624 = vmatpush1.bf16.msra.mxu1 %v4282_v20 }
 0x990   :  { %1625 = vmatprep.subr.bf16.mxu1 %v4287_v49 }
 0xa2c   :  { %v1296_v21 = vpop.f32.mrf.mxu0 }
 0xa2e   :  { %v4012_v23 = vpop.f32.mrf.mxu0 }
 0xa2f   :  { %v4289_v23 = vld [vmem:[#allocation11 + $0x38] sm:$0xff]  }
 0xa30   :  { %v1299_v24 = vpop.f32.mrf.mxu0 }
 0xa31   :  { %v4290_v24 = vld [vmem:[#allocation11 + $0x70] sm:$0xff]  }
 0xa32   :  { %v4013_v28 = vpop.f32.mrf.mxu0 }
 0xa33   :  { %v4291_v28 = vld [vmem:[#allocation11 + $0x30] sm:$0xff]  }
 0xa36   :  { %v1344_v29 = vpop.f32.mrf.mxu1 }
 0xa37   :  { %v4204_v30 = vpack.i.bf16 %v1344_v29, %v1296_v21  ;;  %v4285_v21 = vld [vmem:[#allocation10] ss:$8 sps:$4 sm:$0xff]  }
 0xa38   :  { %v4018_v31 = vpop.f32.mrf.mxu1  ;;  %1626 = vmatpush1.bf16.msra.mxu1 %v4285_v21  ;;  %v4292_v29 = vld [vmem:[#allocation11 + $0x68] sm:$0xff]  }
 0xa39   :  { %4205 = vrot.lane.b32.xlu0 %v4204_v30, %s4629_s22  ;;  %v4293_v30 = vld [vmem:[#allocation11 + $0x28] sm:$0xff]   ;;  %v4294_v31 = vld [vmem:[#allocation11 + $0x60] sm:$0xff]  }
 0xa3a   :  { %v1347_v32 = vpop.f32.mrf.mxu1 }
 0xa3b   :  { %v4295_v32 = vld [vmem:[#allocation11 + $0x20] sm:$0xff]  }
 0xa3c   :  { %v4019_v35 = vpop.f32.mrf.mxu1 }
 0xa3d   :  { %v4296_v35 = vld [vmem:[#allocation11 + $0x58] sm:$0xff]  }
 0xaab   :  { %v4206_v47 = vpop.permute.xlu0 %4205 }
 0xaac   :  { %v4208_v55 = vunpack.i.h.bf16 %v4206_v47  ;;  %v4207_v57 = vunpack.i.l.bf16 %v4206_v47 }
 0xaae   :  { %v1381_v61 = vsel %vm1379_vm5, %v1378_v60, %v4208_v55  ;;  %v1380_v62 = vsel %vm1379_vm5, %v1377_v59, %v4207_v57  ;;  %v3629_v55 = vld [vmem:[%s5263_s9] ss:$0 sm:$0xff] }
 0xaaf   :  { %v1382_v63 = vpack.c.bf16 %v1381_v61, %v1380_v62  ;;  %v3630_v61 = vld [vmem:[%s5264_s10] ss:$0 sm:$0xff] }
 0xab1   :  { %4037 = vmatmul.mubr.bf16.vlgmr.msra.gmra.mxu0 %v1382_v63 }
 0xab2   :  { %3811 = vmatpush3.bf16.msra.mxu0 %v4289_v23 }
 0xab3   :  { %3812 = vmatprep.subr.bf16.mxu0 %v4290_v24 }
 0xab6   :  { %3813 = vmatpush3.bf16.msra.mxu0 %v4291_v28  ;;  %v4304_v28 = vld [vmem:[#allocation7 + $0x168] ss:$12 sps:$4 sm:$0xff]  }
 0xab7   :  { %3814 = vmatprep.subr.bf16.mxu0 %v4292_v29  ;;  %v4306_v29 = vld [vmem:[#allocation7 + $0x16c] ss:$12 sps:$4 sm:$0xff]  }
 0xab8   :  { %2104 = vmatprep.subr.bf16.mxu1 %v4306_v29 }
 0xaba   :  { %3815 = vmatpush3.bf16.msra.mxu0 %v4293_v30  ;;  %v4307_v30 = vld [vmem:[#allocation7 + $0x170] ss:$12 sps:$4 sm:$0xff]  }
 0xabb   :  { %3816 = vmatprep.subr.bf16.mxu0 %v4294_v31 }
 0xabe   :  { %3817 = vmatpush3.bf16.msra.mxu0 %v4295_v32 }
 0xabf   :  { %3818 = vmatprep.subr.bf16.mxu0 %v4296_v35 }
 0xac2   :  { %3819 = vmatpush3.bf16.msra.mxu0 %v4297_v36 }
 0xb71   :  { %v1471_v56 = vpop.f32.mrf.mxu0 }
 0xb72   :  { %v1472_v3 = vadd.f32 %v3620_v2, %v1471_v56 }
 0xb73   :  { %v4038_v4 = vpop.f32.mrf.mxu0 }
 0xb74   :  { %v1478_v42 = vadd.f32 %v1472_v3, %v4742_v26  ;;  %v4298_v3 = vld [vmem:[#allocation11 + $0x50] sm:$0xff]  }
 0xb75   :  { %v1474_v5 = vpop.f32.mrf.mxu0  ;;  %v4299_v4 = vld [vmem:[#allocation11 + $0x10] sm:$0xff]   ;;  %3820 = vmatprep.subr.bf16.mxu0 %v4298_v3 }
 0xb76   :  { %v1475_v6 = vadd.f32 %v3620_v2, %v1474_v5  ;;  %1480 = vadd.xlane.f32.xlu1 %v1478_v42  ;;  %3821 = vmatpush3.bf16.msra.mxu0 %v4299_v4  ;;  %v4301_v5 = vld [vmem:[#allocation11 + $0x8] sm:$0xff]   ;;  %v4324_v3 = vld [vmem:[#allocation7 + $0xf0] ss:$12 sps:$4 sm:$0xff]   ;;  %v4327_v4 = vld [vmem:[#allocation7 + $0xf8] ss:$12 sps:$4 sm:$0xff]  }
 0xb77   :  { %v4039_v7 = vpop.f32.mrf.mxu0 }
 0xb78   :  { %v1479_v8 = vadd.f32 %v1475_v6, %v4744_v27  ;;  %v4302_v6 = vld [vmem:[#allocation11 + $0x40] sm:$0xff]  }
 0xb79   :  { %v4303_v7 = vld [vmem:[#allocation11] sm:$0xff]  }
 0xb7a   :  { %1482 = vadd.xlane.f32.xlu0 %v1479_v8 }
 0xbff   :  { %v1481_v37 = vpop.xlane.xlu1 %1480 }
 0xc00   :  { %v1485_v46 = vmul.f32 0.0078125, %v1481_v37 }
 0xc02   :  { %v4960_v50 = vsub.f32 %v1478_v42, %v1485_v46  ;;  %v4300_v42 = vld [vmem:[#allocation11 + $0x48] sm:$0xff]  }
 0xc03   :  { %v1483_v10 = vpop.xlane.xlu0 %1482  ;;  %3822 = vmatprep.subr.bf16.mxu0 %v4300_v42  ;;  %v4330_v42 = vld [vmem:[#allocation7 + $0xdc] ss:$12 sps:$4 sm:$0xff]  }
 0xc04   :  { %v1486_v43 = vmul.f32 0.0078125, %v1483_v10  ;;  %v1489_v26 = vmul.f32 %v4960_v50, %v4960_v50  ;;  %3823 = vmatpush3.bf16.msra.mxu0 %v4301_v5  ;;  %v4328_v5 = vld [vmem:[#allocation7 + $0xd8] ss:$12 sps:$4 sm:$0xff]  }
 0xc05   :  { %3824 = vmatprep.subr.bf16.mxu0 %v4302_v6  ;;  %v4331_v6 = vld [vmem:[#allocation7 + $0xe0] ss:$12 sps:$4 sm:$0xff]  }
 0xc06   :  { %v4964_v48 = vsub.f32 %v1479_v8, %v1486_v43  ;;  %1491 = vadd.xlane.f32.xlu0 %v1489_v26  ;;  %v231_v8 = vld [vmem:[%s5261_s7] sm:$0x3] }
 0xc07   :  { %v1528_v9 = vrot.slane %v231_v8, %v4763_v34  ;;  %v1524_v37 = vrot.slane %v231_v8, %v4770_v38  ;;  %v4332_v8 = vld [vmem:[#allocation7 + $0xc0] ss:$12 sps:$4 sm:$0xff]  }
 0xc08   :  { %v1490_v27 = vmul.f32 %v4964_v48, %v4964_v48  ;;  %3825 = vmatpush3.bf16.msra.mxu0 %v4303_v7  ;;  %v4334_v7 = vld [vmem:[#allocation7 + $0xc4] ss:$12 sps:$4 sm:$0xff]  }
 0xc09   :  { %4040 = vmatprep.subr.bf16.mxu0 %v4627_v1 }
 0xc0a   :  { %1493 = vadd.xlane.f32.xlu0 %v1490_v27 }
 0xc8f   :  { %v1492_v39 = vpop.xlane.xlu0 %1491 }
 0xc90   :  { %v1495_v40 = vmul.f32 0.0078125, %v1492_v39 }
 0xc92   :  { %v1497_v41 = vadd.f32 1e-05, %v1495_v40 }
 0xc93   :  { %v1494_v44 = vpop.xlane.xlu0 %1493 }
 0xc94   :  { %4416 = vrsqrt.f32 %v1497_v41  ;;  %v1496_v45 = vmul.f32 0.0078125, %v1494_v44 }
 0xc96   :  { %v1498_v47 = vadd.f32 1e-05, %v1496_v45  ;;  %v4310_v45 = vld [vmem:[#allocation7 + $0x154] ss:$12 sps:$4 sm:$0xff]  }
 0xc98   :  { %4418 = vrsqrt.f32 %v1498_v47  ;;  %v4308_v47 = vld [vmem:[#allocation7 + $0x150] ss:$12 sps:$4 sm:$0xff]  }
 0xca1   :  { %v4417_v51 = vpop.eup %4416 }
 0xca2   :  { %v1501_v54 = vmul.f32 %v4417_v51, %v4960_v50  ;;  %v4311_v51 = vld [vmem:[#allocation7 + $0x158] ss:$12 sps:$4 sm:$0xff]  }
 0xca4   :  { %v1509_v60 = vmul.f32 %v3629_v55, %v1501_v54  ;;  %v4314_v54 = vld [vmem:[#allocation7 + $0x13c] ss:$12 sps:$4 sm:$0xff]  }
 0xca5   :  { %v4419_v57 = vpop.eup %4418 }
 0xca6   :  { %v1502_v59 = vmul.f32 %v4419_v57, %v4964_v48  ;;  %v1517_v63 = vadd.f32 %v3630_v61, %v1509_v60  ;;  %v4315_v57 = vld [vmem:[#allocation7 + $0x140] ss:$12 sps:$4 sm:$0xff]   ;;  %v4318_v60 = vld [vmem:[#allocation7 + $0x124] ss:$12 sps:$4 sm:$0xff]  }
 0xca8   :  { %v1510_v62 = vmul.f32 %v3629_v55, %v1502_v59  ;;  %v4312_v55 = vld [vmem:[#allocation7 + $0x138] ss:$12 sps:$4 sm:$0xff]   ;;  %v4316_v59 = vld [vmem:[#allocation7 + $0x120] ss:$12 sps:$4 sm:$0xff]  }
 0xcaa   :  { %v1518_v2 = vadd.f32 %v3630_v61, %v1510_v62  ;;  %v4319_v61 = vld [vmem:[#allocation7 + $0x128] ss:$12 sps:$4 sm:$0xff]   ;;  %v4322_v62 = vld [vmem:[#allocation7 + $0x10c] ss:$12 sps:$4 sm:$0xff]  }
 0xcac   :  { %v1519_v56 = vpack.c.bf16 %v1518_v2, %v1517_v63 }
 0xcae   :  { %1644 = vmatmul.mubr.bf16.vlgmr.msra.gmra.mxu1 %v1519_v56  ;;  %v4326_v56 = vld [vmem:[#allocation7 + $0xf4] ss:$12 sps:$4 sm:$0xff]  }
 0xcaf   :  { %2136 = vmatprep.mubr.bf16.mxu1 %v4626_v0  ;;  %2105 = vmatpush1.bf16.msra.mxu1 %v4304_v28 }
 0xcb0   :  { %2106 = vmatprep.subr.bf16.mxu1 %v4310_v45 }
 0xcb3   :  { %2107 = vmatpush1.bf16.msra.mxu1 %v4308_v47 }
 0xcb4   :  { %2108 = vmatprep.subr.bf16.mxu1 %v4314_v54 }
 0xcb7   :  { %2109 = vmatpush1.bf16.msra.mxu1 %v4312_v55 }
 0xcb8   :  { %2110 = vmatprep.subr.bf16.mxu1 %v4318_v60 }
 0xcbb   :  { %2111 = vmatpush1.bf16.msra.mxu1 %v4316_v59 }
 0xcbc   :  { %2112 = vmatprep.subr.bf16.mxu1 %v4322_v62 }
 0xd6e   :  { %v1645_v25 = vpop.f32.mrf.mxu1 }
 0xd6f   :  { %v1646_v26 = vadd.f32 %v1645_v25, %v1524_v37  ;;  %v4335_v25 = vld [vmem:[#allocation7 + $0xc8] ss:$12 sps:$4 sm:$0xff]  }
 0xd70   :  { %v1647_v46 = vpop.f32.mrf.mxu1 }
 0xd71   :  { %v1648_v10 = vadd.f32 %v1647_v46, %v1528_v9  ;;  %v1654_v13 = vmax.f32 %v1646_v26, 0.0 }
 0xd72   :  { %v1649_v50 = vpop.f32.mrf.mxu1 }
 0xd73   :  { %v1650_v43 = vadd.f32 %v1649_v50, %v1524_v37  ;;  %v1655_v52 = vmax.f32 %v1648_v10, 0.0 }
 0xd74   :  { %v1651_v48 = vpop.f32.mrf.mxu1 }
 0xd75   :  { %v1652_v27 = vadd.f32 %v1651_v48, %v1528_v9  ;;  %v1656_v11 = vmax.f32 %v1650_v43, 0.0 }
 0xd77   :  { %v1657_v12 = vmax.f32 %v1652_v27, 0.0  ;;  %v1658_v14 = vpack.c.bf16 %v1656_v11, %v1654_v13  ;;  %v3664_v27 = vld [vmem:[%s5266_s12] ss:$0 sm:$0xff] }
 0xd78   :  { %v3665_v13 = vld [vmem:[%s5267_s13] ss:$0 sm:$0xff] }
 0xd79   :  { %v1659_v58 = vpack.c.bf16 %v1657_v12, %v1655_v52 }
 0xd7b   :  { %1794 = vmatprep.mubr.bf16.mxu0 %v1659_v58 }
 0xd7c   :  { %1795 = vmatmul.mubr.bf16.vlgmr.msra.gmra.mxu0 %v1658_v14 }
 0xd7d   :  { %4056 = vmatprep.mubr.msk.bf16.mxu0 %vm4628_vm0, %v4627_v1  ;;  %4041 = vmatpush3.bf16.msra.mxu0 %v4307_v30 }
 0xd7e   :  { %4042 = vmatprep.subr.bf16.mxu0 %v4627_v1 }
 0xd81   :  { %4043 = vmatpush3.bf16.msra.mxu0 %v4311_v51 }
 0xd82   :  { %4044 = vmatprep.subr.bf16.mxu0 %v4627_v1 }
 0xd85   :  { %4045 = vmatpush3.bf16.msra.mxu0 %v4315_v57 }
 0xd86   :  { %4046 = vmatprep.subr.bf16.mxu0 %v4627_v1 }
 0xd89   :  { %4047 = vmatpush3.bf16.msra.mxu0 %v4319_v61 }
 0xd8a   :  { %4048 = vmatprep.subr.bf16.mxu0 %v4627_v1 }
 0xe3c   :  { %v3826_v15 = vpop.f32.mrf.mxu0 }
 0xe3e   :  { %v3827_v17 = vpop.f32.mrf.mxu0 }
 0xe3f   :  { %v3828_v18 = vadd.f32 %v3827_v17, %v3826_v15  ;;  %v3666_v17 = vld [vmem:[%s5260_s6 + $0x3] sm:$0x7] }
 0xe40   :  { %v3829_v19 = vpop.f32.mrf.mxu0  ;;  %v1964_v29 = vrot.slane %v3666_v17, %v4770_v38 }
 0xe41   :  { %v1797_v20 = vadd.f32 %v3828_v18, %v3647_v16  ;;  %v1968_v18 = vrot.slane %v3666_v17, %v4763_v34 }
 0xe42   :  { %v3830_v49 = vpop.f32.mrf.mxu0 }
 0xe43   :  { %v3831_v21 = vadd.f32 %v3830_v49, %v3829_v19  ;;  %v1803_v22 = vadd.f32 %v1797_v20, %v1517_v63  ;;  %v4320_v63 = vld [vmem:[#allocation7 + $0x108] ss:$12 sps:$4 sm:$0xff]  }
 0xe44   :  { %2113 = vmatpush1.bf16.msra.mxu1 %v4320_v63 }
 0xe45   :  { %v1800_v23 = vadd.f32 %v3831_v21, %v3647_v16  ;;  %1805 = vadd.xlane.f32.xlu1 %v1803_v22  ;;  %2114 = vmatprep.subr.bf16.mxu1 %v4326_v56 }
 0xe47   :  { %v1804_v24 = vadd.f32 %v1800_v23, %v1518_v2  ;;  %v4323_v2 = vld [vmem:[#allocation7 + $0x110] ss:$12 sps:$4 sm:$0xff]  }
 0xe48   :  { %4049 = vmatpush3.bf16.msra.mxu0 %v4323_v2  ;;  %2115 = vmatpush1.bf16.msra.mxu1 %v4324_v3 }
 0xe49   :  { %1807 = vadd.xlane.f32.xlu0 %v1804_v24  ;;  %4050 = vmatprep.subr.bf16.mxu0 %v4627_v1 }
 0xe4a   :  { %2116 = vmatprep.subr.bf16.mxu1 %v4330_v42 }
 0xe4c   :  { %4051 = vmatpush3.bf16.msra.mxu0 %v4327_v4  ;;  %2117 = vmatpush1.bf16.msra.mxu1 %v4328_v5 }
 0xe4d   :  { %4052 = vmatprep.subr.bf16.mxu0 %v4627_v1  ;;  %2118 = vmatprep.subr.bf16.mxu1 %v4334_v7 }
 0xe50   :  { %4053 = vmatpush3.bf16.msra.mxu0 %v4331_v6  ;;  %2119 = vmatpush1.bf16.msra.mxu1 %v4332_v8 }
 0xe51   :  { %4054 = vmatprep.subr.bf16.mxu0 %v4627_v1  ;;  %4060 = vmatprep.subr.bf16.mxu1 %v4627_v1 }
 0xe54   :  { %4055 = vmatpush3.bf16.msra.mxu0 %v4335_v25 }
 0xe55   :  { %4084 = vmatprep.subr.bf16.mxu0 %v4627_v1 }
 0xece   :  { %v1806_v31 = vpop.xlane.xlu1 %1805 }
 0xecf   :  { %v1809_v32 = vmul.f32 0.0078125, %v1806_v31 }
 0xed1   :  { %v4989_v35 = vsub.f32 %v1803_v22, %v1809_v32  ;;  %v1972_v22 = vrot.slane %v3666_v17, %v250_v53 }
 0xed2   :  { %v1808_v36 = vpop.xlane.xlu0 %1807 }
 0xed3   :  { %v1810_v39 = vmul.f32 0.0078125, %v1808_v36  ;;  %v1813_v40 = vmul.f32 %v4989_v35, %v4989_v35 }
 0xed5   :  { %v4993_v41 = vsub.f32 %v1804_v24, %v1810_v39  ;;  %1815 = vadd.xlane.f32.xlu1 %v1813_v40 }
 0xed7   :  { %v1814_v44 = vmul.f32 %v4993_v41, %v4993_v41 }
 0xed9   :  { %1817 = vadd.xlane.f32.xlu0 %v1814_v44 }
 0xf5e   :  { %v1816_v9 = vpop.xlane.xlu1 %1815 }
 0xf5f   :  { %v1819_v37 = vmul.f32 0.0078125, %v1816_v9 }
 0xf61   :  { %v1821_v46 = vadd.f32 1e-05, %v1819_v37 }
 0xf62   :  { %v1818_v50 = vpop.xlane.xlu0 %1817 }
 0xf63   :  { %4420 = vrsqrt.f32 %v1821_v46  ;;  %v1820_v10 = vmul.f32 0.0078125, %v1818_v50 }
 0xf65   :  { %v1822_v43 = vadd.f32 1e-05, %v1820_v10 }
 0xf67   :  { %4422 = vrsqrt.f32 %v1822_v43 }
 0xf70   :  { %v4421_v26 = vpop.eup %4420 }
 0xf71   :  { %v1825_v48 = vmul.f32 %v4421_v26, %v4989_v35 }
 0xf73   :  { %v1833_v12 = vmul.f32 %v3664_v27, %v1825_v48 }
 0xf74   :  { %v4423_v11 = vpop.eup %4422 }
 0xf75   :  { %v1826_v52 = vmul.f32 %v4423_v11, %v4993_v41  ;;  %v5013_v14 = vadd.f32 %v3665_v13, %v1833_v12 }
 0xf77   :  { %v1834_v58 = vmul.f32 %v3664_v27, %v1826_v52 }
 0xf79   :  { %v5015_v15 = vadd.f32 %v3665_v13, %v1834_v58 }
 0xf7b   :  { %v1959_v16 = vpack.c.bf16 %v5015_v15, %v5013_v14 }
 0xf7d   :  { %2137 = vmatmul.mubr.bf16.vlgmr.msra.gmra.mxu1 %v1959_v16  ;;  %4057 = vmatmul.mubr.bf16.vlgmr.msra.gmra.mxu0 %v1959_v16 }
 0xf7e   :  { %4062 = vmatprep.mubr.msk.bf16.mxu1 %vm4628_vm0, %v4627_v1  ;;  %4086 = vmatprep.mubr.msk.bf16.mxu0 %vm4628_vm0, %v4627_v1 }
0x103d   :  { %v2138_v19 = vpop.f32.mrf.mxu1  ;;  %v2181_v20 = vpop.f32.mrf.mxu0 }
0x103e   :  { %v2139_v40 = vadd.f32 %v2138_v19, %v1964_v29  ;;  %v2182_v41 = vadd.f32 %v2181_v20, %v1972_v22 }
0x103f   :  { %v2140_v49 = vpop.f32.mrf.mxu1  ;;  %v4058_v21 = vpop.f32.mrf.mxu0 }
0x1040   :  { %v2141_v23 = vadd.f32 %v2140_v49, %v1968_v18  ;;  %v5039_v53 = vpack.c.bf16 %v2139_v40, %v2139_v40  ;;  %v5048_v47 = vpack.c.bf16 %v2182_v41, %v2182_v41 }
0x1041   :  { %v2142_v24 = vpop.f32.mrf.mxu1  ;;  %v2184_v28 = vpop.f32.mrf.mxu0 }
0x1042   :  { %v5030_v30 = vpack.c.bf16 %v2141_v23, %v2141_v23  ;;  %v5032_v31 = vadd.f32 %v2184_v28, %v1972_v22  ;;  %v2143_v45 = vadd.f32 %v2142_v24, %v1964_v29  ;;  %v2314_v54 = vsel %vm594_vm2, %v5048_v47, 0 }
0x1043   :  { %v2144_v32 = vpop.f32.mrf.mxu1  ;;  %v4059_v35 = vpop.f32.mrf.mxu0 }
0x1044   :  { %v2145_v36 = vadd.f32 %v2144_v32, %v1968_v18  ;;  %v2198_v39 = vsel %vm473_vm1, %v5030_v30, 0  ;;  %v5050_v51 = vpack.c.bf16 %v2143_v45, %v2143_v45  ;;  %v5078_v11 = vpack.c.bf16 %v5032_v31, %v5032_v31 }
0x1045   :  { %4061 = vmatpush3.bf16.xpose.msra.mxu1 %v2198_v39 }
0x1046   :  { %4066 = vmatprep.subr.bf16.mxu1 %v4627_v1  ;;  %v5037_v33 = vpack.c.bf16 %v2145_v36, %v2145_v36  ;;  %v2360_v13 = vsel %vm594_vm2, %v5078_v11, 0 }
0x1048   :  { %v2244_v44 = vsel %vm473_vm1, %v5037_v33, 0 }
0x104c   :  { %4063 = vmatmul.mubr.msk.bf16.vlgmr.msra.gmra.mxu1 %vm473_vm1, %v5039_v53 }
0x104d   :  { %4067 = vmatpush3.bf16.xpose.msra.mxu1 %v2244_v44  ;;  %4068 = vmatprep.mubr.msk.bf16.mxu1 %vm4628_vm0, %v4627_v1 }
0x104e   :  { %4072 = vmatprep.subr.bf16.mxu1 %v4627_v1 }
0x1054   :  { %4069 = vmatmul.mubr.msk.bf16.vlgmr.msra.gmra.mxu1 %vm473_vm1, %v5050_v51 }
0x1055   :  { %4073 = vmatpush3.bf16.msra.mxu1 %v2314_v54  ;;  %4074 = vmatprep.mubr.msk.bf16.mxu1 %vm4628_vm0, %v4627_v1 }
0x1056   :  { %4078 = vmatprep.subr.bf16.mxu1 %v4627_v1 }
0x110c   :  { %v2234_v55 = vpop.f32.mrf.mxu1 }
0x110d   :  { %v2286_v57 = vsel %vm566_vm3, %v2234_v55, -inf }
0x110e   :  { %2287 = vmax.xlane.f32.xlu1 %v2286_v57  ;;  %v4064_v59 = vpop.f32.mrf.mxu1 }
0x1110   :  { %v2237_v60 = vpop.f32.mrf.mxu1 }
0x1112   :  { %v4065_v61 = vpop.f32.mrf.mxu1 }
0x1114   :  { %v2280_v62 = vpop.f32.mrf.mxu1 }
0x1115   :  { %v2289_v63 = vsel %vm566_vm3, %v2280_v62, -inf }
0x1116   :  { %2290 = vmax.xlane.f32.xlu0 %v2289_v63  ;;  %v4070_v2 = vpop.f32.mrf.mxu1 }
0x1118   :  { %v2283_v56 = vpop.f32.mrf.mxu1 }
0x111a   :  { %v4071_v3 = vpop.f32.mrf.mxu1 }
0x1197   :  { %v2288_v4 = vpop.xlane.xlu1 %2287 }
0x1198   :  { %v2292_v42 = vsub.f32 %v2234_v55, %v2288_v4 }
0x119a   :  { %v2294_v5 = vmul.f32 1.442695, %v2292_v42 }
0x119c   :  { %4424 = vpow2.f32 %v2294_v5 }
0x119f   :  { %v2291_v6 = vpop.xlane.xlu0 %2290 }
0x11a0   :  { %v2293_v7 = vsub.f32 %v2280_v62, %v2291_v6 }
0x11a2   :  { %v2296_v8 = vmul.f32 1.442695, %v2293_v7 }
0x11a4   :  { %4426 = vpow2.f32 %v2296_v8 }
0x11a9   :  { %v4425_v25 = vpop.eup %4424 }
0x11aa   :  { %v2298_v9 = vsel %vm566_vm3, %v4425_v25, 0.0 }
0x11ab   :  { %2299 = vadd.xlane.f32.xlu1 %v2298_v9 }
0x11b1   :  { %v4427_v37 = vpop.eup %4426 }
0x11b2   :  { %v2301_v46 = vsel %vm566_vm3, %v4427_v37, 0.0 }
0x11b3   :  { %2302 = vadd.xlane.f32.xlu0 %v2301_v46 }
0x11bc   :  { %2406 = vrot.lane.b32.xlu1 %v5030_v30, %s4629_s22 }
0x11c0   :  { %2403 = vrot.lane.b32.xlu1 %v5039_v53, %s4629_s22 }
0x11c4   :  { %2455 = vrot.lane.b32.xlu1 %v5050_v51, %s4629_s22 }
0x11c9   :  { %2458 = vrot.lane.b32.xlu0 %v5037_v33, %s4629_s22 }
0x1234   :  { %v2300_v50 = vpop.xlane.xlu1 %2299 }
0x1235   :  { %4428 = vrcp.f32 %v2300_v50 }
0x1238   :  { %v2407_v10 = vpop.permute.xlu1 %2406 }
0x1239   :  { %v2412_v43 = vsel %vm473_vm1, %v2407_v10, 0 }
0x123a   :  { %4085 = vmatpush3.bf16.xpose.msra.mxu0 %v2412_v43 }
0x123b   :  { %4096 = vmatprep.subr.bf16.mxu0 %v4627_v1 }
0x123c   :  { %v2303_v26 = vpop.xlane.xlu0 %2302  ;;  %v2404_v48 = vpop.permute.xlu1 %2403 }
0x123d   :  { %4430 = vrcp.f32 %v2303_v26 }
0x1240   :  { %v2459_v17 = vpop.permute.xlu0 %2458  ;;  %v2456_v20 = vpop.permute.xlu1 %2455 }
0x1241   :  { %4087 = vmatmul.mubr.msk.bf16.vlgmr.msra.gmra.mxu0 %vm473_vm1, %v2404_v48  ;;  %v2464_v19 = vsel %vm473_vm1, %v2459_v17, 0 }
0x1242   :  { %v4429_v27 = vpop.eup %4428  ;;  %4098 = vmatprep.mubr.msk.bf16.mxu0 %vm4628_vm0, %v4627_v1 }
0x1243   :  { %v2306_v52 = vmul.f32 %v4429_v27, %v4425_v25 }
0x1245   :  { %v2308_v12 = vpack.c.bf16 %v2306_v52, %v2306_v52 }
0x1247   :  { %4075 = vmatmul.mubr.msk.bf16.vlgmr.msra.gmra.mxu1 %vm566_vm3, %v2308_v12 }
0x1248   :  { %4079 = vmatpush3.bf16.msra.mxu1 %v2360_v13  ;;  %4080 = vmatprep.mubr.msk.bf16.mxu1 %vm4628_vm0, %v4627_v1 }
0x1249   :  { %4090 = vmatprep.subr.bf16.mxu1 %v4627_v1 }
0x124a   :  { %v4431_v58 = vpop.eup %4430 }
0x124b   :  { %v2307_v16 = vmul.f32 %v4431_v58, %v4427_v37 }
0x124d   :  { %v2309_v18 = vpack.c.bf16 %v2307_v16, %v2307_v16 }
0x124f   :  { %4081 = vmatmul.mubr.msk.bf16.vlgmr.msra.gmra.mxu1 %vm566_vm3, %v2309_v18 }
0x1250   :  { %4091 = vmatpush3.bf16.xpose.msra.mxu1 %v2464_v19  ;;  %4092 = vmatprep.mubr.msk.bf16.mxu1 %vm4628_vm0, %v4627_v1 }
0x1251   :  { %4102 = vmatprep.subr.bf16.mxu1 %v4627_v1 }
0x1257   :  { %4093 = vmatmul.mubr.msk.bf16.vlgmr.msra.gmra.mxu1 %vm473_vm1, %v2456_v20 }
0x1258   :  { %4104 = vmatprep.mubr.msk.bf16.mxu1 %vm4628_vm0, %v4627_v1 }
0x1301   :  { %v2448_v49 = vpop.f32.mrf.mxu0 }
0x1302   :  { %v2506_v21 = vsel %vm566_vm3, %v2448_v49, -inf }
0x1303   :  { %2507 = vmax.xlane.f32.xlu1 %v2506_v21  ;;  %v4088_v22 = vpop.f32.mrf.mxu0 }
0x1305   :  { %v2451_v23 = vpop.f32.mrf.mxu0 }
0x1307   :  { %v5095_v24 = vpop.f32.mrf.mxu1  ;;  %v4089_v28 = vpop.f32.mrf.mxu0 }
0x1309   :  { %v4076_v29 = vpop.f32.mrf.mxu1 }
0x130b   :  { %v2353_v31 = vpop.f32.mrf.mxu1 }
0x130d   :  { %v4077_v32 = vpop.f32.mrf.mxu1 }
0x130f   :  { %v5097_v35 = vpop.f32.mrf.mxu1 }
0x1311   :  { %v4082_v36 = vpop.f32.mrf.mxu1 }
0x1313   :  { %v2399_v39 = vpop.f32.mrf.mxu1 }
0x1314   :  { %2531 = vrot.lane.b32.xlu1 %v5048_v47, %s4629_s22 }
0x1315   :  { %v4083_v40 = vpop.f32.mrf.mxu1 }
0x1317   :  { %v2500_v41 = vpop.f32.mrf.mxu1 }
0x1318   :  { %2630 = vrot.lane.b32.xlu1 %v5030_v30, %s4616_s21  ;;  %v2509_v44 = vsel %vm566_vm3, %v2500_v41, -inf }
0x1319   :  { %2510 = vmax.xlane.f32.xlu0 %v2509_v44  ;;  %v4094_v45 = vpop.f32.mrf.mxu1 }
0x131b   :  { %v2503_v54 = vpop.f32.mrf.mxu1 }
0x131c   :  { %2680 = vrot.lane.b32.xlu1 %v5037_v33, %s4616_s21 }
0x131d   :  { %v4095_v55 = vpop.f32.mrf.mxu1 }
0x1320   :  { %2628 = vrot.lane.b32.xlu1 %v5039_v53, %s4616_s21 }
0x138c   :  { %v2508_v57 = vpop.xlane.xlu1 %2507 }
0x138d   :  { %v2512_v59 = vsub.f32 %v2448_v49, %v2508_v57 }
0x138f   :  { %v2514_v60 = vmul.f32 1.442695, %v2512_v59 }
0x1390   :  { %v2532_v61 = vpop.permute.xlu1 %2531 }
0x1391   :  { %4432 = vpow2.f32 %v2514_v60  ;;  %v2537_v62 = vsel %vm594_vm2, %v2532_v61, 0 }
0x1392   :  { %4097 = vmatpush3.bf16.msra.mxu0 %v2537_v62 }
0x1393   :  { %4108 = vmatprep.subr.bf16.mxu0 %v4627_v1 }
0x1394   :  { %v2631_v8 = vpop.permute.xlu1 %2630 }
0x1395   :  { %v2636_v37 = vsel %vm473_vm1, %v2631_v8, 0 }
0x1398   :  { %v2681_v46 = vpop.permute.xlu1 %2680 }
0x1399   :  { %v2686_v12 = vsel %vm473_vm1, %v2681_v46, 0 }
0x139c   :  { %v2629_v10 = vpop.permute.xlu1 %2628 }
0x139e   :  { %v4433_v63 = vpop.eup %4432 }
0x139f   :  { %v2518_v2 = vsel %vm566_vm3, %v4433_v63, 0.0 }
0x13a0   :  { %2519 = vadd.xlane.f32.xlu0 %v2518_v2 }
0x13a2   :  { %v2511_v56 = vpop.xlane.xlu0 %2510 }
0x13a3   :  { %v2513_v3 = vsub.f32 %v2500_v41, %v2511_v56 }
0x13a5   :  { %v2516_v4 = vmul.f32 1.442695, %v2513_v3 }
0x13a7   :  { %4434 = vpow2.f32 %v2516_v4 }
0x13b4   :  { %v4435_v42 = vpop.eup %4434 }
0x13b5   :  { %v2521_v5 = vsel %vm566_vm3, %v4435_v42, 0.0 }
0x13b6   :  { %2522 = vadd.xlane.f32.xlu0 %v2521_v5 }
0x13cc   :  { %2580 = vrot.lane.b32.xlu0 %v5078_v11, %s4629_s22 }
0x13d0   :  { %2678 = vrot.lane.b32.xlu0 %v5050_v51, %s4616_s21 }
0x1429   :  { %v2520_v6 = vpop.xlane.xlu0 %2519 }
0x142a   :  { %4436 = vrcp.f32 %v2520_v6 }
0x1437   :  { %v4437_v7 = vpop.eup %4436 }
0x1438   :  { %v2526_v25 = vmul.f32 %v4437_v7, %v4433_v63 }
0x143a   :  { %v2528_v9 = vpack.c.bf16 %v2526_v25, %v2526_v25 }
0x143c   :  { %4099 = vmatmul.mubr.msk.bf16.vlgmr.msra.gmra.mxu0 %vm566_vm3, %v2528_v9 }
0x143d   :  { %4109 = vmatpush3.bf16.xpose.msra.mxu0 %v2636_v37  ;;  %4110 = vmatprep.mubr.msk.bf16.mxu0 %vm4628_vm0, %v4627_v1 }
0x143e   :  { %4120 = vmatprep.subr.bf16.mxu0 %v4627_v1 }
0x143f   :  { %v2523_v50 = vpop.xlane.xlu0 %2522 }
0x1440   :  { %4438 = vrcp.f32 %v2523_v50 }
0x1443   :  { %v2581_v43 = vpop.permute.xlu0 %2580 }
0x1444   :  { %v2586_v26 = vsel %vm594_vm2, %v2581_v43, 0  ;;  %4111 = vmatmul.mubr.msk.bf16.vlgmr.msra.gmra.mxu0 %vm473_vm1, %v2629_v10 }
0x1445   :  { %4103 = vmatpush3.bf16.msra.mxu1 %v2586_v26  ;;  %4122 = vmatprep.mubr.msk.bf16.mxu0 %vm4628_vm0, %v4627_v1 }
0x1446   :  { %4114 = vmatprep.subr.bf16.mxu1 %v4627_v1 }
0x1447   :  { %v2679_v13 = vpop.permute.xlu0 %2678 }
0x144d   :  { %v4439_v48 = vpop.eup %4438 }
0x144e   :  { %v2527_v27 = vmul.f32 %v4439_v48, %v4435_v42 }
0x1450   :  { %v2529_v52 = vpack.c.bf16 %v2527_v27, %v2527_v27 }
0x1452   :  { %4105 = vmatmul.mubr.msk.bf16.vlgmr.msra.gmra.mxu1 %vm566_vm3, %v2529_v52 }
0x1453   :  { %4115 = vmatpush3.bf16.xpose.msra.mxu1 %v2686_v12  ;;  %4116 = vmatprep.mubr.msk.bf16.mxu1 %vm4628_vm0, %v4627_v1 }
0x1454   :  { %4126 = vmatprep.subr.bf16.mxu1 %v4627_v1 }
0x145a   :  { %4117 = vmatmul.mubr.msk.bf16.vlgmr.msra.gmra.mxu1 %vm473_vm1, %v2679_v13 }
0x145b   :  { %4128 = vmatprep.mubr.msk.bf16.mxu1 %vm4628_vm0, %v4627_v1 }
0x14fc   :  { %v5134_v58 = vpop.f32.mrf.mxu0 }
0x14fe   :  { %v4100_v16 = vpop.f32.mrf.mxu0 }
0x1500   :  { %v2576_v17 = vpop.f32.mrf.mxu0 }
0x1502   :  { %v4101_v18 = vpop.f32.mrf.mxu0 }
0x1504   :  { %v2672_v19 = vpop.f32.mrf.mxu0 }
0x1505   :  { %v2728_v20 = vsel %vm566_vm3, %v2672_v19, -inf }
0x1506   :  { %2729 = vmax.xlane.f32.xlu1 %v2728_v20  ;;  %v4112_v49 = vpop.f32.mrf.mxu0 }
0x1508   :  { %v2675_v21 = vpop.f32.mrf.mxu0 }
0x150a   :  { %v4113_v22 = vpop.f32.mrf.mxu0 }
0x1512   :  { %v5137_v23 = vpop.f32.mrf.mxu1 }
0x1513   :  { %v4209_v28 = vpack.i.bf16 %v5137_v23, %v5134_v58 }
0x1514   :  { %v4106_v29 = vpop.f32.mrf.mxu1 }
0x1516   :  { %v2625_v31 = vpop.f32.mrf.mxu1 }
0x1517   :  { %2752 = vrot.lane.b32.xlu1 %v5048_v47, %s4616_s21 }
0x1518   :  { %v4107_v32 = vpop.f32.mrf.mxu1 }
0x151a   :  { %v2722_v36 = vpop.f32.mrf.mxu1 }
0x151b   :  { %2850 = vrot.lane.b32.xlu1 %v5030_v30, %s4630_s15  ;;  %v2731_v39 = vsel %vm566_vm3, %v2722_v36, -inf }
0x151c   :  { %2732 = vmax.xlane.f32.xlu0 %v2731_v39  ;;  %v4118_v40 = vpop.f32.mrf.mxu1 }
0x151e   :  { %v2725_v41 = vpop.f32.mrf.mxu1 }
0x151f   :  { %2900 = vrot.lane.b32.xlu1 %v5037_v33, %s4630_s15 }
0x1520   :  { %v4119_v44 = vpop.f32.mrf.mxu1 }
0x1523   :  { %2848 = vrot.lane.b32.xlu1 %v5039_v53, %s4630_s15 }
0x158f   :  { %v2730_v45 = vpop.xlane.xlu1 %2729 }
0x1590   :  { %v2734_v54 = vsub.f32 %v2672_v19, %v2730_v45 }
0x1592   :  { %v2736_v55 = vmul.f32 1.442695, %v2734_v54 }
0x1593   :  { %v2753_v57 = vpop.permute.xlu1 %2752 }
0x1594   :  { %4440 = vpow2.f32 %v2736_v55  ;;  %v2758_v59 = vsel %vm594_vm2, %v2753_v57, 0 }
0x1595   :  { %4121 = vmatpush3.bf16.msra.mxu0 %v2758_v59 }
0x1596   :  { %4132 = vmatprep.subr.bf16.mxu0 %v4627_v1 }
0x1597   :  { %v2851_v3 = vpop.permute.xlu1 %2850 }
0x1598   :  { %v2856_v5 = vsel %vm473_vm1, %v2851_v3, 0  ;;  %v4337_v3 = vld [vmem:[#allocation8 + $0x70] sm:$0xff]  }
0x159b   :  { %v2901_v6 = vpop.permute.xlu1 %2900 }
0x159c   :  { %v2906_v50 = vsel %vm473_vm1, %v2901_v6, 0  ;;  %v4341_v6 = vld [vmem:[#allocation8 + $0x50] sm:$0xff]  }
0x15a1   :  { %v4441_v30 = vpop.eup %4440 }
0x15a2   :  { %v2740_v60 = vsel %vm566_vm3, %v4441_v30, 0.0 }
0x15a3   :  { %2741 = vadd.xlane.f32.xlu0 %v2740_v60 }
0x15a5   :  { %v2733_v61 = vpop.xlane.xlu0 %2732 }
0x15a6   :  { %v2735_v33 = vsub.f32 %v2722_v36, %v2733_v61 }
0x15a8   :  { %v2738_v62 = vmul.f32 1.442695, %v2735_v33 }
0x15aa   :  { %4442 = vpow2.f32 %v2738_v62 }
0x15b7   :  { %v4443_v63 = vpop.eup %4442 }
0x15b8   :  { %v2743_v53 = vsel %vm566_vm3, %v4443_v63, 0.0 }
0x15b9   :  { %2744 = vadd.xlane.f32.xlu0 %v2743_v53 }
0x15cf   :  { %2800 = vrot.lane.b32.xlu0 %v5078_v11, %s4616_s21 }
0x15d3   :  { %2898 = vrot.lane.b32.xlu0 %v5050_v51, %s4630_s15  ;;  %v2849_v51 = vpop.permute.xlu1 %2848 }
0x162c   :  { %v2742_v2 = vpop.xlane.xlu0 %2741 }
0x162d   :  { %4444 = vrcp.f32 %v2742_v2 }
0x163a   :  { %v4445_v56 = vpop.eup %4444 }
0x163b   :  { %v2748_v4 = vmul.f32 %v4445_v56, %v4441_v30 }
0x163d   :  { %v2750_v42 = vpack.c.bf16 %v2748_v4, %v2748_v4  ;;  %v4338_v4 = vld [vmem:[#allocation8 + $0x68] sm:$0xff]  }
0x163f   :  { %4123 = vmatmul.mubr.msk.bf16.vlgmr.msra.gmra.mxu0 %vm566_vm3, %v2750_v42  ;;  %v4339_v42 = vld [vmem:[#allocation8 + $0x60] sm:$0xff]  }
0x1640   :  { %4133 = vmatpush3.bf16.xpose.msra.mxu0 %v2856_v5  ;;  %4134 = vmatprep.mubr.msk.bf16.mxu0 %vm4628_vm0, %v4627_v1  ;;  %v4340_v5 = vld [vmem:[#allocation8 + $0x58] sm:$0xff]  }
0x1641   :  { %4144 = vmatprep.subr.bf16.mxu0 %v4627_v1 }
0x1642   :  { %v2745_v7 = vpop.xlane.xlu0 %2744 }
0x1643   :  { %4446 = vrcp.f32 %v2745_v7 }
0x1646   :  { %v2801_v8 = vpop.permute.xlu0 %2800 }
0x1647   :  { %v2806_v25 = vsel %vm594_vm2, %v2801_v8, 0  ;;  %4135 = vmatmul.mubr.msk.bf16.vlgmr.msra.gmra.mxu0 %vm473_vm1, %v2849_v51 }
0x1648   :  { %4127 = vmatpush3.bf16.msra.mxu1 %v2806_v25  ;;  %4146 = vmatprep.mubr.msk.bf16.mxu0 %vm4628_vm0, %v4627_v1 }
0x1649   :  { %4138 = vmatprep.subr.bf16.mxu1 %v4627_v1 }
0x164a   :  { %v2899_v10 = vpop.permute.xlu0 %2898 }
0x1650   :  { %v4447_v9 = vpop.eup %4446 }
0x1651   :  { %v2749_v37 = vmul.f32 %v4447_v9, %v4443_v63  ;;  %v4343_v9 = vld [vmem:[#allocation8 + $0x40] sm:$0xff]  }
0x1653   :  { %v2751_v46 = vpack.c.bf16 %v2749_v37, %v2749_v37 }
0x1655   :  { %4129 = vmatmul.mubr.msk.bf16.vlgmr.msra.gmra.mxu1 %vm566_vm3, %v2751_v46 }
0x1656   :  { %4139 = vmatpush3.bf16.xpose.msra.mxu1 %v2906_v50  ;;  %4140 = vmatprep.mubr.msk.bf16.mxu1 %vm4628_vm0, %v4627_v1 }
0x1657   :  { %4150 = vmatprep.subr.bf16.mxu1 %v4627_v1 }
0x165d   :  { %4141 = vmatmul.mubr.msk.bf16.vlgmr.msra.gmra.mxu1 %vm473_vm1, %v2899_v10 }
0x165e   :  { %4152 = vmatprep.mubr.msk.bf16.mxu1 %vm4628_vm0, %v4627_v1 }
0x16ff   :  { %v2794_v43 = vpop.f32.mrf.mxu0 }
0x1701   :  { %v4124_v26 = vpop.f32.mrf.mxu0 }
0x1703   :  { %v2797_v48 = vpop.f32.mrf.mxu0 }
0x1705   :  { %v4125_v27 = vpop.f32.mrf.mxu0 }
0x1707   :  { %v2892_v52 = vpop.f32.mrf.mxu0 }
0x1708   :  { %v2948_v12 = vsel %vm566_vm3, %v2892_v52, -inf }
0x1709   :  { %2949 = vmax.xlane.f32.xlu1 %v2948_v12  ;;  %v4136_v13 = vpop.f32.mrf.mxu0 }
0x170b   :  { %v2895_v16 = vpop.f32.mrf.mxu0 }
0x170d   :  { %v4137_v17 = vpop.f32.mrf.mxu0 }
0x1715   :  { %v2842_v18 = vpop.f32.mrf.mxu1 }
0x1716   :  { %v4214_v31 = vpack.i.bf16 %v2842_v18, %v2794_v43 }
0x1717   :  { %v4130_v19 = vpop.f32.mrf.mxu1 }
0x1719   :  { %v2845_v20 = vpop.f32.mrf.mxu1 }
0x171a   :  { %2972 = vrot.lane.b32.xlu1 %v5048_v47, %s4630_s15 }
0x171b   :  { %v4131_v49 = vpop.f32.mrf.mxu1 }
0x171d   :  { %v2942_v21 = vpop.f32.mrf.mxu1 }
0x171e   :  { %4210 = vrot.lane.b32.xlu1 %v4209_v28, %s4630_s15  ;;  %v2951_v22 = vsel %vm566_vm3, %v2942_v21, -inf }
0x171f   :  { %2952 = vmax.xlane.f32.xlu0 %v2951_v22  ;;  %v4142_v29 = vpop.f32.mrf.mxu1 }
0x1721   :  { %v2945_v32 = vpop.f32.mrf.mxu1 }
0x1722   :  { %4215 = vrot.lane.b32.xlu1 %v4214_v31, %s4616_s21  ;;  %v3714_v31 = vld [vmem:[%s5262_s8 + $0x1] ss:$0 sm:$0xff] }
0x1723   :  { %v4143_v36 = vpop.f32.mrf.mxu1 }
0x1792   :  { %v2950_v39 = vpop.xlane.xlu1 %2949 }
0x1793   :  { %v2954_v40 = vsub.f32 %v2892_v52, %v2950_v39 }
0x1795   :  { %v2956_v41 = vmul.f32 1.442695, %v2954_v40 }
0x1796   :  { %v2973_v47 = vpop.permute.xlu1 %2972 }
0x1797   :  { %4448 = vpow2.f32 %v2956_v41  ;;  %v2978_v44 = vsel %vm594_vm2, %v2973_v47, 0 }
0x1798   :  { %4145 = vmatpush3.bf16.msra.mxu0 %v2978_v44  ;;  %v4344_v44 = vld [vmem:[#allocation10 + $0xf0] ss:$8 sps:$4 sm:$0xff]  }
0x1799   :  { %4156 = vmatprep.subr.bf16.mxu0 %v4627_v1 }
0x179a   :  { %v4211_v26 = vpop.permute.xlu1 %4210 }
0x179b   :  { %v4213_v27 = vunpack.i.h.bf16 %v4211_v26  ;;  %v4212_v52 = vunpack.i.l.bf16 %v4211_v26 }
0x179d   :  { %v3093_v16 = vsel %vm473_vm1, %v5097_v35, %v4213_v27  ;;  %v3092_v17 = vsel %vm473_vm1, %v5095_v24, %v4212_v52 }
0x179e   :  { %v4216_v48 = vpop.permute.xlu1 %4215 }
0x179f   :  { %v4218_v12 = vunpack.i.h.bf16 %v4216_v48  ;;  %v4217_v13 = vunpack.i.l.bf16 %v4216_v48 }
0x17a1   :  { %v3095_v20 = vsel %vm1376_vm4, %v3093_v16, %v4218_v12  ;;  %v3094_v49 = vsel %vm1376_vm4, %v3092_v17, %v4217_v13  ;;  %v3723_v13 = vld [vmem:[%s5263_s9 + $0x1] ss:$0 sm:$0xff] }
0x17a4   :  { %v4449_v58 = vpop.eup %4448 }
0x17a5   :  { %v2960_v23 = vsel %vm566_vm3, %v4449_v58, 0.0 }
0x17a6   :  { %2961 = vadd.xlane.f32.xlu0 %v2960_v23 }
0x17a8   :  { %v2953_v28 = vpop.xlane.xlu0 %2952 }
0x17a9   :  { %v2955_v45 = vsub.f32 %v2942_v21, %v2953_v28 }
0x17ab   :  { %v2958_v54 = vmul.f32 1.442695, %v2955_v45 }
0x17ad   :  { %4450 = vpow2.f32 %v2958_v54 }
0x17ba   :  { %v4451_v55 = vpop.eup %4450 }
0x17bb   :  { %v2963_v57 = vsel %vm566_vm3, %v4451_v55, 0.0 }
0x17bc   :  { %2964 = vadd.xlane.f32.xlu0 %v2963_v57 }
0x17d2   :  { %3020 = vrot.lane.b32.xlu0 %v5078_v11, %s4630_s15  ;;  %v4336_v11 = vld [vmem:[#allocation8 + $0x78] sm:$0xff]  }
0x182f   :  { %v2962_v59 = vpop.xlane.xlu0 %2961 }
0x1830   :  { %4452 = vrcp.f32 %v2962_v59  ;;  %v4349_v59 = vld [vmem:[#allocation10 + $0xe4] ss:$8 sps:$4 sm:$0xff]  }
0x183d   :  { %v4453_v30 = vpop.eup %4452 }
0x183e   :  { %v2968_v60 = vmul.f32 %v4453_v30, %v4449_v58  ;;  %v4346_v58 = vld [vmem:[#allocation10 + $0xf4] ss:$8 sps:$4 sm:$0xff]   ;;  %v4347_v30 = vld [vmem:[#allocation10 + $0xe0] ss:$8 sps:$4 sm:$0xff]  }
0x1840   :  { %v2970_v61 = vpack.c.bf16 %v2968_v60, %v2968_v60  ;;  %v4352_v60 = vld [vmem:[#allocation10 + $0xd4] ss:$8 sps:$4 sm:$0xff]  }
0x1842   :  { %4147 = vmatmul.mubr.msk.bf16.vlgmr.msra.gmra.mxu0 %vm566_vm3, %v2970_v61  ;;  %v4350_v61 = vld [vmem:[#allocation10 + $0xd0] ss:$8 sps:$4 sm:$0xff]  }
0x1843   :  { %4172 = vmatprep.mubr.msk.bf16.mxu0 %vm4628_vm0, %v4627_v1  ;;  %4157 = vmatpush3.bf16.msra.mxu0 %v4336_v11  ;;  %v4364_v11 = vld [vmem:[#allocation10 + $0x94] ss:$8 sps:$4 sm:$0xff]  }
0x1844   :  { %4158 = vmatprep.subr.bf16.mxu0 %v4627_v1 }
0x1845   :  { %v2965_v33 = vpop.xlane.xlu0 %2964 }
0x1846   :  { %4454 = vrcp.f32 %v2965_v33  ;;  %v4353_v33 = vld [vmem:[#allocation10 + $0xc0] ss:$8 sps:$4 sm:$0xff]  }
0x1847   :  { %4159 = vmatpush3.bf16.msra.mxu0 %v4337_v3  ;;  %v4362_v3 = vld [vmem:[#allocation10 + $0x90] ss:$8 sps:$4 sm:$0xff]  }
0x1848   :  { %4160 = vmatprep.subr.bf16.mxu0 %v4627_v1 }
0x1849   :  { %v3021_v62 = vpop.permute.xlu0 %3020 }
0x184a   :  { %v3026_v63 = vsel %vm594_vm2, %v3021_v62, 0  ;;  %v4355_v62 = vld [vmem:[#allocation10 + $0xc4] ss:$8 sps:$4 sm:$0xff]  }
0x184b   :  { %4151 = vmatpush3.bf16.msra.mxu1 %v3026_v63  ;;  %4161 = vmatpush3.bf16.msra.mxu0 %v4338_v4  ;;  %v4358_v63 = vld [vmem:[#allocation10 + $0xb4] ss:$8 sps:$4 sm:$0xff]   ;;  %v4367_v4 = vld [vmem:[#allocation10 + $0x84] ss:$8 sps:$4 sm:$0xff]  }
0x184c   :  { %4162 = vmatprep.subr.bf16.mxu0 %v4627_v1  ;;  %3326 = vmatprep.subr.bf16.mxu1 %v4346_v58 }
0x184f   :  { %4163 = vmatpush3.bf16.msra.mxu0 %v4339_v42  ;;  %v4365_v42 = vld [vmem:[#allocation10 + $0x80] ss:$8 sps:$4 sm:$0xff]  }
0x1850   :  { %4164 = vmatprep.subr.bf16.mxu0 %v4627_v1 }
0x1853   :  { %v4455_v53 = vpop.eup %4454  ;;  %4165 = vmatpush3.bf16.msra.mxu0 %v4340_v5  ;;  %v4368_v5 = vld [vmem:[#allocation11 + $0xf8] sm:$0xff]  }
0x1854   :  { %v2969_v2 = vmul.f32 %v4455_v53, %v4451_v55  ;;  %4166 = vmatprep.subr.bf16.mxu0 %v4627_v1  ;;  %v4356_v53 = vld [vmem:[#allocation10 + $0xb0] ss:$8 sps:$4 sm:$0xff]  }
0x1856   :  { %v2971_v56 = vpack.c.bf16 %v2969_v2, %v2969_v2  ;;  %v4361_v2 = vld [vmem:[#allocation10 + $0xa4] ss:$8 sps:$4 sm:$0xff]  }
0x1857   :  { %4167 = vmatpush3.bf16.msra.mxu0 %v4341_v6  ;;  %v4369_v6 = vld [vmem:[#allocation11 + $0xb8] sm:$0xff]  }
0x1858   :  { %4153 = vmatmul.mubr.msk.bf16.vlgmr.msra.gmra.mxu1 %vm566_vm3, %v2971_v56  ;;  %4168 = vmatprep.subr.bf16.mxu0 %v4627_v1  ;;  %v4359_v56 = vld [vmem:[#allocation10 + $0xa0] ss:$8 sps:$4 sm:$0xff]  }
0x1859   :  { %3358 = vmatprep.mubr.bf16.mxu1 %v4626_v0  ;;  %v4342_v0 = vld [vmem:[#allocation8 + $0x48] sm:$0xff]   ;;  %3327 = vmatpush1.bf16.msra.mxu1 %v4344_v44 }
0x185a   :  { %3328 = vmatprep.subr.bf16.mxu1 %v4349_v59 }
0x185b   :  { %4169 = vmatpush3.bf16.msra.mxu0 %v4342_v0  ;;  %v4370_v0 = vld [vmem:[#allocation11 + $0xf0] sm:$0xff]  }
0x185c   :  { %4170 = vmatprep.subr.bf16.mxu0 %v4627_v1 }
0x185d   :  { %3329 = vmatpush1.bf16.msra.mxu1 %v4347_v30 }
0x185e   :  { %3330 = vmatprep.subr.bf16.mxu1 %v4352_v60 }
0x185f   :  { %4171 = vmatpush3.bf16.msra.mxu0 %v4343_v9  ;;  %v4375_v9 = vld [vmem:[#allocation11 + $0xa0] sm:$0xff]  }
0x1860   :  { %3882 = vmatprep.subr.bf16.mxu0 %v4368_v5 }
0x1861   :  { %3331 = vmatpush1.bf16.msra.mxu1 %v4350_v61 }
0x1862   :  { %3332 = vmatprep.subr.bf16.mxu1 %v4355_v62 }
0x1865   :  { %3333 = vmatpush1.bf16.msra.mxu1 %v4353_v33 }
0x1866   :  { %3334 = vmatprep.subr.bf16.mxu1 %v4358_v63 }
0x1869   :  { %3335 = vmatpush1.bf16.msra.mxu1 %v4356_v53 }
0x186a   :  { %3336 = vmatprep.subr.bf16.mxu1 %v4361_v2 }
0x186d   :  { %3337 = vmatpush1.bf16.msra.mxu1 %v4359_v56 }
0x186e   :  { %3338 = vmatprep.subr.bf16.mxu1 %v4364_v11 }
0x1871   :  { %3339 = vmatpush1.bf16.msra.mxu1 %v4362_v3 }
0x1872   :  { %3340 = vmatprep.subr.bf16.mxu1 %v4367_v4 }
0x1875   :  { %3341 = vmatpush1.bf16.msra.mxu1 %v4365_v42 }
0x1902   :  { %v3014_v7 = vpop.f32.mrf.mxu0 }
0x1904   :  { %v4148_v51 = vpop.f32.mrf.mxu0 }
0x1905   :  { %v4372_v51 = vld [vmem:[#allocation11 + $0xe8] sm:$0xff]  }
0x1906   :  { %v3017_v8 = vpop.f32.mrf.mxu0 }
0x1907   :  { %v4373_v8 = vld [vmem:[#allocation11 + $0xa8] sm:$0xff]  }
0x1908   :  { %v4149_v25 = vpop.f32.mrf.mxu0 }
0x1909   :  { %v4374_v25 = vld [vmem:[#allocation11 + $0xe0] sm:$0xff]  }
0x1918   :  { %v3062_v37 = vpop.f32.mrf.mxu1 }
0x1919   :  { %v4219_v46 = vpack.i.bf16 %v3062_v37, %v3014_v7  ;;  %v4371_v7 = vld [vmem:[#allocation11 + $0xb0] sm:$0xff]   ;;  %v4376_v37 = vld [vmem:[#allocation11 + $0xd8] sm:$0xff]  }
0x191a   :  { %v4154_v50 = vpop.f32.mrf.mxu1 }
0x191b   :  { %4220 = vrot.lane.b32.xlu1 %v4219_v46, %s4629_s22  ;;  %v4377_v46 = vld [vmem:[#allocation11 + $0x98] sm:$0xff]  }
0x191c   :  { %v3065_v10 = vpop.f32.mrf.mxu1 }
0x191e   :  { %v4155_v43 = vpop.f32.mrf.mxu1 }
0x198d   :  { %v4221_v1 = vpop.permute.xlu1 %4220 }
0x198e   :  { %v4223_v18 = vunpack.i.h.bf16 %v4221_v1  ;;  %v4222_v19 = vunpack.i.l.bf16 %v4221_v1 }
0x1990   :  { %v3097_v21 = vsel %vm1379_vm5, %v3095_v20, %v4223_v18  ;;  %v3096_v22 = vsel %vm1379_vm5, %v3094_v49, %v4222_v19  ;;  %v3724_v18 = vld [vmem:[%s5264_s10 + $0x1] ss:$0 sm:$0xff] }
0x1991   :  { %v3098_v29 = vpack.c.bf16 %v3097_v21, %v3096_v22  ;;  %v4378_v22 = vld [vmem:[#allocation11 + $0xd0] sm:$0xff]  }
0x1993   :  { %4173 = vmatmul.mubr.bf16.vlgmr.msra.gmra.mxu0 %v3098_v29  ;;  %v4379_v29 = vld [vmem:[#allocation11 + $0x90] sm:$0xff]  }
0x1994   :  { %3883 = vmatpush3.bf16.msra.mxu0 %v4369_v6 }
0x1995   :  { %3884 = vmatprep.subr.bf16.mxu0 %v4370_v0 }
0x1998   :  { %3885 = vmatpush3.bf16.msra.mxu0 %v4371_v7 }
0x1999   :  { %3886 = vmatprep.subr.bf16.mxu0 %v4372_v51 }
0x199c   :  { %3887 = vmatpush3.bf16.msra.mxu0 %v4373_v8 }
0x199d   :  { %3888 = vmatprep.subr.bf16.mxu0 %v4374_v25 }
0x19a0   :  { %3889 = vmatpush3.bf16.msra.mxu0 %v4375_v9 }
0x19a1   :  { %3890 = vmatprep.subr.bf16.mxu0 %v4376_v37 }
0x19a4   :  { %3891 = vmatpush3.bf16.msra.mxu0 %v4377_v46 }
0x19a5   :  { %3892 = vmatprep.subr.bf16.mxu0 %v4378_v22 }
0x19a8   :  { %3893 = vmatpush3.bf16.msra.mxu0 %v4379_v29 }
0x1a53   :  { %v3187_v35 = vpop.f32.mrf.mxu0 }
0x1a54   :  { %v3188_v32 = vadd.f32 %v3714_v31, %v3187_v35  ;;  %v4381_v35 = vld [vmem:[#allocation11 + $0x88] sm:$0xff]  }
0x1a55   :  { %v4174_v36 = vpop.f32.mrf.mxu0 }
0x1a56   :  { %v3194_v24 = vadd.f32 %v3188_v32, %v5013_v14  ;;  %v4382_v32 = vld [vmem:[#allocation11 + $0xc0] sm:$0xff]  }
0x1a57   :  { %v3190_v39 = vpop.f32.mrf.mxu0  ;;  %v4383_v36 = vld [vmem:[#allocation11 + $0x80] sm:$0xff]  }
0x1a58   :  { %v3191_v40 = vadd.f32 %v3714_v31, %v3190_v39  ;;  %3196 = vadd.xlane.f32.xlu0 %v3194_v24  ;;  %v4380_v31 = vld [vmem:[#allocation11 + $0xc8] sm:$0xff]  }
0x1a59   :  { %v4175_v41 = vpop.f32.mrf.mxu0  ;;  %3894 = vmatprep.subr.bf16.mxu0 %v4380_v31 }
0x1a5a   :  { %v3195_v47 = vadd.f32 %v3191_v40, %v5015_v15  ;;  %3895 = vmatpush3.bf16.msra.mxu0 %v4381_v35 }
0x1a5b   :  { %3896 = vmatprep.subr.bf16.mxu0 %v4382_v32 }
0x1a5c   :  { %3198 = vadd.xlane.f32.xlu1 %v3195_v47 }
0x1a5e   :  { %3897 = vmatpush3.bf16.msra.mxu0 %v4383_v36 }
0x1ae1   :  { %v3197_v23 = vpop.xlane.xlu0 %3196 }
0x1ae2   :  { %v3200_v28 = vmul.f32 0.0078125, %v3197_v23 }
0x1ae4   :  { %v5218_v45 = vsub.f32 %v3194_v24, %v3200_v28  ;;  %v3667_v24 = vld [vmem:[%s5261_s7 + $0x2] sm:$0x3] }
0x1ae5   :  { %v3199_v54 = vpop.xlane.xlu1 %3198  ;;  %v3243_v40 = vrot.slane %v3667_v24, %v4763_v34  ;;  %v3239_v41 = vrot.slane %v3667_v24, %v4770_v38  ;;  %v3741_v34 = vld [vmem:[%s5265_s11 + $0x1] ss:$0 sm:$0xff] }
0x1ae6   :  { %v3201_v55 = vmul.f32 0.0078125, %v3199_v54  ;;  %v3204_v14 = vmul.f32 %v5218_v45, %v5218_v45 }
0x1ae8   :  { %v5222_v57 = vsub.f32 %v3195_v47, %v3201_v55  ;;  %3206 = vadd.xlane.f32.xlu0 %v3204_v14 }
0x1aea   :  { %v3205_v15 = vmul.f32 %v5222_v57, %v5222_v57 }
0x1aec   :  { %3208 = vadd.xlane.f32.xlu0 %v3205_v15 }
0x1b71   :  { %v3207_v50 = vpop.xlane.xlu0 %3206 }
0x1b72   :  { %v3210_v10 = vmul.f32 0.0078125, %v3207_v50 }
0x1b74   :  { %v3212_v43 = vadd.f32 1e-05, %v3210_v10 }
0x1b75   :  { %v3209_v26 = vpop.xlane.xlu0 %3208 }
0x1b76   :  { %4456 = vrsqrt.f32 %v3212_v43  ;;  %v3211_v48 = vmul.f32 0.0078125, %v3209_v26  ;;  %v3758_v43 = vld [vmem:[%s5266_s12 + $0x1] ss:$0 sm:$0xff] }
0x1b78   :  { %v3213_v27 = vadd.f32 1e-05, %v3211_v48  ;;  %v3759_v48 = vld [vmem:[%s5267_s13 + $0x1] ss:$0 sm:$0xff] }
0x1b7a   :  { %4458 = vrsqrt.f32 %v3213_v27 }
0x1b83   :  { %v4457_v52 = vpop.eup %4456 }
0x1b84   :  { %v3216_v12 = vmul.f32 %v4457_v52, %v5218_v45 }
0x1b86   :  { %v3224_v17 = vmul.f32 %v3723_v13, %v3216_v12 }
0x1b87   :  { %v4459_v1 = vpop.eup %4458 }
0x1b88   :  { %v3217_v16 = vmul.f32 %v4459_v1, %v5222_v57  ;;  %v3232_v20 = vadd.f32 %v3724_v18, %v3224_v17 }
0x1b8a   :  { %v3225_v19 = vmul.f32 %v3723_v13, %v3217_v16 }
0x1b8c   :  { %v3233_v49 = vadd.f32 %v3724_v18, %v3225_v19 }
0x1b8e   :  { %v3234_v21 = vpack.c.bf16 %v3233_v49, %v3232_v20 }
0x1b90   :  { %3359 = vmatmul.mubr.bf16.vlgmr.msra.gmra.mxu1 %v3234_v21 }
0x1c50   :  { %v3360_v39 = vpop.f32.mrf.mxu1 }
0x1c51   :  { %v3361_v28 = vadd.f32 %v3360_v39, %v3239_v41 }
0x1c52   :  { %v3362_v47 = vpop.f32.mrf.mxu1 }
0x1c53   :  { %v3363_v58 = vadd.f32 %v3362_v47, %v3243_v40  ;;  %v3369_v15 = vmax.f32 %v3361_v28, 0.0 }
0x1c54   :  { %v3364_v44 = vpop.f32.mrf.mxu1 }
0x1c55   :  { %v3365_v23 = vadd.f32 %v3364_v44, %v3239_v41  ;;  %v3370_v14 = vmax.f32 %v3363_v58, 0.0 }
0x1c56   :  { %v3366_v45 = vpop.f32.mrf.mxu1 }
0x1c57   :  { %v3367_v54 = vadd.f32 %v3366_v45, %v3243_v40  ;;  %v3371_v55 = vmax.f32 %v3365_v23, 0.0 }
0x1c59   :  { %v3372_v57 = vmax.f32 %v3367_v54, 0.0  ;;  %v3373_v30 = vpack.c.bf16 %v3371_v55, %v3369_v15 }
0x1c5b   :  { %v3374_v59 = vpack.c.bf16 %v3372_v57, %v3370_v14 }
0x1c5d   :  { %3509 = vmatprep.mubr.bf16.mxu0 %v3374_v59 }
0x1c5e   :  { %3510 = vmatmul.mubr.bf16.vlgmr.msra.gmra.mxu0 %v3373_v30 }
0x1d1e   :  { %v3898_v60 = vpop.f32.mrf.mxu0 }
0x1d20   :  { %v3899_v38 = vpop.f32.mrf.mxu0 }
0x1d21   :  { %v3900_v61 = vadd.f32 %v3899_v38, %v3898_v60 }
0x1d22   :  { %v3901_v33 = vpop.f32.mrf.mxu0 }
0x1d23   :  { %v3512_v62 = vadd.f32 %v3900_v61, %v3741_v34 }
0x1d24   :  { %v3902_v63 = vpop.f32.mrf.mxu0 }
0x1d25   :  { %v3903_v53 = vadd.f32 %v3902_v63, %v3901_v33  ;;  %v3518_v2 = vadd.f32 %v3512_v62, %v3232_v20 }
0x1d27   :  { %v3515_v56 = vadd.f32 %v3903_v53, %v3741_v34  ;;  %3520 = vadd.xlane.f32.xlu0 %v3518_v2 }
0x1d29   :  { %v3519_v11 = vadd.f32 %v3515_v56, %v3233_v49 }
0x1d2b   :  { %3522 = vadd.xlane.f32.xlu1 %v3519_v11 }
0x1db0   :  { %v3521_v3 = vpop.xlane.xlu0 %3520 }
0x1db1   :  { %v3524_v4 = vmul.f32 0.0078125, %v3521_v3 }
0x1db3   :  { %v3526_v42 = vsub.f32 %v3518_v2, %v3524_v4 }
0x1db4   :  { %v3523_v5 = vpop.xlane.xlu1 %3522 }
0x1db5   :  { %v3525_v6 = vmul.f32 0.0078125, %v3523_v5  ;;  %v3528_v0 = vmul.f32 %v3526_v42, %v3526_v42 }
0x1db7   :  { %v3527_v7 = vsub.f32 %v3519_v11, %v3525_v6  ;;  %3530 = vadd.xlane.f32.xlu0 %v3528_v0 }
0x1db9   :  { %v3529_v51 = vmul.f32 %v3527_v7, %v3527_v7 }
0x1dbb   :  { %3532 = vadd.xlane.f32.xlu1 %v3529_v51 }
0x1e40   :  { %v3531_v8 = vpop.xlane.xlu0 %3530 }
0x1e41   :  { %v3534_v25 = vmul.f32 0.0078125, %v3531_v8 }
0x1e43   :  { %v3536_v9 = vadd.f32 1e-05, %v3534_v25 }
0x1e44   :  { %v3533_v37 = vpop.xlane.xlu1 %3532 }
0x1e45   :  { %4460 = vrsqrt.f32 %v3536_v9  ;;  %v3535_v46 = vmul.f32 0.0078125, %v3533_v37 }
0x1e47   :  { %v3537_v50 = vadd.f32 1e-05, %v3535_v46 }
0x1e49   :  { %4462 = vrsqrt.f32 %v3537_v50 }
0x1e52   :  { %v4461_v10 = vpop.eup %4460 }
0x1e53   :  { %v3540_v26 = vmul.f32 %v4461_v10, %v3526_v42 }
0x1e55   :  { %v3548_v27 = vmul.f32 %v3758_v43, %v3540_v26 }
0x1e56   :  { %v4463_v52 = vpop.eup %4462 }
0x1e57   :  { %v3541_v12 = vmul.f32 %v4463_v52, %v3527_v7  ;;  %v3556_v13 = vadd.f32 %v3759_v48, %v3548_v27 }
0x1e59   :  { %v3549_v1 = vmul.f32 %v3758_v43, %v3541_v12  ;;  %3558 = vst [vmem:[#allocation13] sm:$0xff] %v3556_v13 }
0x1e5b   :  { %v3557_v16 = vadd.f32 %v3759_v48, %v3549_v1 }
0x1e5d   :  { %3559 = vst [vmem:[#allocation13 + $0x8] sm:$0xff] %v3557_v16 }
0x1e5e   :  { %4595 = shalt.err (!%p4592_p6)
}
0x1e5f   :  { %3571 = dma.vmem_to_hbm [thread:$0]  %s3566_s23, 256, %s5268_s14, [#allocation4], %s4619_s27, %s4619_s27, %s4620_s28  }
0x1e60   :  { %4612 = dma.done.wait [#allocation4], 256  }
0x1e61   :  { %4613 = vsyncadd [#allocation4], 4294967040 }
0x1e62   :  { %3575 = vsyncpa [#allocation3], 1 }
0x1e63   :  { %3576 = vsyncpa [#allocation6], 1 }
0x1e64   :  { %3577 = vsyncpa [#allocation9], 1 }
0x1e65   :  { %3578 = vsyncpa [#allocation12], 1 }
0x1e66   :  { %3579 = vsyncpa [#allocation4], 1 }

// kernel: tpu_custom_call.1
= control target key start
LH: loop header
LB: loop body
LE: loop exit
PB: predicated region body
PF: predicated region fallthrough
CT: control target
= control target key end

     0   :  { %19 = vsyncpa [#allocation3], 0  ;;  %s5254_s0 = inlined_call_operand.hbm [shape: f32[2,8,128], index: 0, kind: input, shape index: {}]   ;;  %s5255_s1 = inlined_call_operand.hbm [shape: f32[8,128], index: 1, kind: input, shape index: {}]   ;;  %s5256_s2 = inlined_call_operand.hbm [shape: bf16[2,128,384], index: 2, kind: input, shape index: {}]   ;;  %s5257_s3 = inlined_call_operand.hbm [shape: bf16[2,128,128], index: 3, kind: input, shape index: {}]   ;;  %s5258_s4 = inlined_call_operand.hbm [shape: bf16[2,128,256], index: 4, kind: input, shape index: {}]   ;;  %s5259_s5 = inlined_call_operand.hbm [shape: bf16[2,256,128], index: 5, kind: input, shape index: {}]   ;;  %s5260_s6 = inlined_call_operand.vmem [shape: f32[2,1,384], index: 6, kind: input, shape index: {}]   ;;  %s5261_s7 = inlined_call_operand.vmem [shape: f32[2,1,256], index: 7, kind: input, shape index: {}]   ;;  %s5262_s8 = inlined_call_operand.vmem [shape: f32[2,1,128], index: 8, kind: input, shape index: {}]   ;;  %s5263_s9 = inlined_call_operand.vmem [shape: f32[2,1,128], index: 9, kind: input, shape index: {}]   ;;  %s5264_s10 = inlined_call_operand.vmem [shape: f32[2,1,128], index: 10, kind: input, shape index: {}]   ;;  %s5265_s11 = inlined_call_operand.vmem [shape: f32[2,1,128], index: 11, kind: input, shape index: {}]   ;;  %s5266_s12 = inlined_call_operand.vmem [shape: f32[2,1,128], index: 12, kind: input, shape index: {}]   ;;  %s5267_s13 = inlined_call_operand.vmem [shape: f32[2,1,128], index: 13, kind: input, shape index: {}]   ;;  %s5268_s14 = inlined_call_operand.hbm [shape: f32[2,8,128], index: 14, kind: output, shape index: {}]  }
   0x1   :  { %20 = vsyncpa [#allocation6], 0 }
   0x2   :  { %21 = vsyncpa [#allocation9], 0 }
   0x3   :  { %22 = vsyncpa [#allocation12], 0 }
   0x4   :  { %23 = vsyncpa [#allocation4], 0  ;;  %s4614_s29 = smov [#allocation5]   ;;  %s4615_s15 = smov [#allocation8]  }
   0x5   :  { %s42_s30 = sshll.u32 %s4614_s29, 4  ;;  %s63_s16 = sshll.u32 %s4615_s15, 4  ;;  %s43_s30 = int_to_ptr.vmem [resolvable:$true] %s42_s30  ;;  %s64_s16 = int_to_ptr.vmem [resolvable:$true] %s63_s16 }
   0x6   :  { %s4472_s17 = scalar_lea.vmem %s43_s30, 128  ;;  %p4477_p1 = scmp.lt.s32.totalorder %s43_s30, %s43_s30 }
   0x7   :  { %p4473_p0 = scmp.ne.s32.totalorder %s43_s30, %s4472_s17  ;;  %p4478_p2 = scmp.lt.s32.totalorder %s4472_s17, %s4472_s17 }
   0x9   :  { %p4479_p3 = por %p4478_p2, %p4477_p1 }
   0xb   :  { %p4480_p4 = pnand %p4479_p3, %p4473_p0 }
   0xd   :  { %4483 = shalt.err (!%p4480_p4)
}
   0xe   :  { %45 = dma.hbm_to_vmem [thread:$0]  %s5255_s1, 128, %s43_s30, [#allocation6]  }
   0xf   :  { %s4492_s20 = scalar_lea.vmem %s64_s16, 2048  ;;  %p4497_p6 = scmp.lt.s32.totalorder %s64_s16, %s64_s16 }
  0x10   :  { %p4493_p5 = scmp.ne.s32.totalorder %s64_s16, %s4492_s20  ;;  %p4498_p7 = scmp.lt.s32.totalorder %s4492_s20, %s4492_s20 }
  0x12   :  { %p4499_p8 = por %p4498_p7, %p4497_p6 }
  0x14   :  { %p4500_p9 = pnand %p4499_p8, %p4493_p5 }
  0x16   :  { %4503 = shalt.err (!%p4500_p9)
}
  0x17   :  { %s4616_s21 = smov 64   ;;  %s4617_s22 = smov 4  }
  0x18   :  { %69 = dma.hbm_to_vmem [thread:$0]  %s5257_s3, 2048, %s64_s16, [#allocation9], %s4616_s21, %s4616_s21, %s4617_s22  }
  0x19   :  { %s4618_s25 = smov [#allocation2]  }
  0x1a   :  { %s29_s26 = sshll.u32 %s4618_s25, 4  ;;  %s30_s26 = int_to_ptr.vmem [resolvable:$true] %s29_s26 }
  0x1b   :  { %s4512_s1 = scalar_lea.vmem %s30_s26, 256  ;;  %p4517_p11 = scmp.lt.s32.totalorder %s30_s26, %s30_s26 }
  0x1c   :  { %p4513_p10 = scmp.ne.s32.totalorder %s30_s26, %s4512_s1  ;;  %p4518_p12 = scmp.lt.s32.totalorder %s4512_s1, %s4512_s1 }
  0x1e   :  { %p4519_p13 = por %p4518_p12, %p4517_p11 }
  0x20   :  { %p4520_p0 = pnand %p4519_p13, %p4513_p10 }
  0x22   :  { %4523 = shalt.err (!%p4520_p0)
}
  0x23   :  { %s4619_s27 = smov 128   ;;  %s4620_s28 = smov 8  }
  0x24   :  { %35 = dma.hbm_to_vmem [thread:$0]  %s5254_s0, 256, %s30_s26, [#allocation3], %s4619_s27, %s4619_s27, %s4620_s28  }
  0x25   :  { %s4621_s3 = smov [#allocation7]  }
  0x26   :  { %s51_s15 = sshll.u32 %s4621_s3, 4  ;;  %s52_s15 = int_to_ptr.vmem [resolvable:$true] %s51_s15 }
  0x27   :  { %s4532_s16 = scalar_lea.vmem %s52_s15, 6144  ;;  %p4537_p2 = scmp.lt.s32.totalorder %s52_s15, %s52_s15 }
  0x28   :  { %p4533_p1 = scmp.ne.s32.totalorder %s52_s15, %s4532_s16  ;;  %p4538_p3 = scmp.lt.s32.totalorder %s4532_s16, %s4532_s16 }
  0x2a   :  { %p4539_p4 = por %p4538_p3, %p4537_p2 }
  0x2c   :  { %p4540_p5 = pnand %p4539_p4, %p4533_p1 }
  0x2e   :  { %4543 = shalt.err (!%p4540_p5)
}
  0x2f   :  { %s4622_s17 = smov 192   ;;  %s4623_s18 = smov 12  }
  0x30   :  { %57 = dma.hbm_to_vmem [thread:$0]  %s5256_s2, 6144, %s52_s15, [#allocation6], %s4622_s17, %s4622_s17, %s4623_s18  }
  0x31   :  { %s4624_s23 = smov [#allocation10]   ;;  %s4625_s25 = smov [#allocation11]  }
  0x32   :  { %s75_s24 = sshll.u32 %s4624_s23, 4  ;;  %s87_s0 = sshll.u32 %s4625_s25, 4  ;;  %s76_s24 = int_to_ptr.vmem [resolvable:$true] %s75_s24  ;;  %s88_s0 = int_to_ptr.vmem [resolvable:$true] %s87_s0 }
  0x33   :  { %s4552_s26 = scalar_lea.vmem %s76_s24, 4096  ;;  %p4557_p7 = scmp.lt.s32.totalorder %s76_s24, %s76_s24 }
  0x34   :  { %p4553_p6 = scmp.ne.s32.totalorder %s76_s24, %s4552_s26  ;;  %p4558_p8 = scmp.lt.s32.totalorder %s4552_s26, %s4552_s26 }
  0x36   :  { %p4559_p9 = por %p4558_p8, %p4557_p7 }
  0x38   :  { %p4560_p10 = pnand %p4559_p9, %p4553_p6 }
  0x3a   :  { %4563 = shalt.err (!%p4560_p10)
}
  0x3b   :  { %81 = dma.hbm_to_vmem [thread:$0]  %s5258_s4, 4096, %s76_s24, [#allocation9], %s4619_s27, %s4619_s27, %s4620_s28  }
  0x3c   :  { %s4572_s2 = scalar_lea.vmem %s88_s0, 4096  ;;  %p4577_p12 = scmp.lt.s32.totalorder %s88_s0, %s88_s0 }
  0x3d   :  { %p4573_p11 = scmp.ne.s32.totalorder %s88_s0, %s4572_s2  ;;  %p4578_p13 = scmp.lt.s32.totalorder %s4572_s2, %s4572_s2 }
  0x3f   :  { %p4579_p0 = por %p4578_p13, %p4577_p12 }
  0x41   :  { %p4580_p1 = pnand %p4579_p0, %p4573_p11 }
  0x43   :  { %4583 = shalt.err (!%p4580_p1)
}
  0x44   :  { %93 = dma.hbm_to_vmem [thread:$0]  %s5259_s5, 4096, %s88_s0, [#allocation12], %s4616_s21, %s4616_s21, %s4617_s22  }
  0x45   :  { %4604 = dma.done.wait [#allocation3], 256  }
  0x46   :  { %4605 = vsyncadd [#allocation3], 4294967040 }
  0x47   :  { %4606 = dma.done.wait [#allocation6], 6272  }
  0x48   :  { %4607 = vsyncadd [#allocation6], 4294961024 }
  0x49   :  { %4608 = dma.done.wait [#allocation9], 6144  }
  0x4a   :  { %4609 = vsyncadd [#allocation9], 4294961152 }
  0x4b   :  { %4610 = dma.done.wait [#allocation12], 4096  }
  0x4c   :  { %4611 = vsyncadd [#allocation12], 4294963200  ;;  %v4626_v0 = vmov 0   ;;  %v4627_v1 = vmov 0.0   ;;  %v4224_v2 = vld [vmem:[#allocation7 + $0xac] ss:$12 sps:$4 sm:$0xff]   ;;  %v240_v32 = vlaneseq }
  0x4d   :  { %415 = vmatprep.mubr.bf16.mxu0 %v4626_v0  ;;  %3904 = vmatprep.subr.bf16.mxu1 %v4627_v1  ;;  %v4226_v3 = vld [vmem:[#allocation7 + $0xa8] ss:$12 sps:$4 sm:$0xff]   ;;  %v4229_v5 = vld [vmem:[#allocation7 + $0x90] ss:$12 sps:$4 sm:$0xff]   ;;  %v4232_v7 = vld [vmem:[#allocation7 + $0x78] ss:$12 sps:$4 sm:$0xff]  }
  0x4e   :  { %383 = vmatprep.subr.bf16.mxu0 %v4224_v2  ;;  %v4227_v4 = vld [vmem:[#allocation7 + $0x94] ss:$12 sps:$4 sm:$0xff]   ;;  %v4230_v6 = vld [vmem:[#allocation7 + $0x7c] ss:$12 sps:$4 sm:$0xff]   ;;  %v4233_v8 = vld [vmem:[#allocation7 + $0x64] ss:$12 sps:$4 sm:$0xff]  }
  0x4f   :  { %384 = vmatpush1.bf16.msra.mxu0 %v4226_v3  ;;  %v4235_v9 = vld [vmem:[#allocation7 + $0x60] ss:$12 sps:$4 sm:$0xff]   ;;  %v4248_v11 = vld [vmem:[#allocation7 + $0xb0] ss:$12 sps:$4 sm:$0xff]   ;;  %v4249_v12 = vld [vmem:[#allocation7 + $0x98] ss:$12 sps:$4 sm:$0xff]  }
  0x50   :  { %385 = vmatprep.subr.bf16.mxu0 %v4227_v4  ;;  %v4236_v10 = vld [vmem:[#allocation7 + $0x4c] ss:$12 sps:$4 sm:$0xff]   ;;  %3905 = vmatpush3.bf16.msra.mxu1 %v4248_v11  ;;  %v4238_v13 = vld [vmem:[#allocation7 + $0x48] ss:$12 sps:$4 sm:$0xff]   ;;  %v4241_v16 = vld [vmem:[#allocation7 + $0x30] ss:$12 sps:$4 sm:$0xff]  }
  0x51   :  { %3906 = vmatprep.subr.bf16.mxu1 %v4627_v1  ;;  %v4239_v14 = vld [vmem:[#allocation7 + $0x34] ss:$12 sps:$4 sm:$0xff]   ;;  %v4242_v17 = vld [vmem:[#allocation7 + $0x1c] ss:$12 sps:$4 sm:$0xff]   ;;  %v4244_v19 = vld [vmem:[#allocation7 + $0x18] ss:$12 sps:$4 sm:$0xff]  }
  0x52   :  { %v4250_v15 = vld [vmem:[#allocation7 + $0x80] ss:$12 sps:$4 sm:$0xff]   ;;  %v4251_v18 = vld [vmem:[#allocation7 + $0x68] ss:$12 sps:$4 sm:$0xff]   ;;  %v131_v22 = vld [vmem:[#allocation5] sm:$0xff]  ;;  %vm4628_vm0 = vmmov 0  }
  0x53   :  { %386 = vmatpush1.bf16.msra.mxu0 %v4229_v5  ;;  %v129_v20 = vld [vmem:[#allocation2] sm:$0xff]  ;;  %v130_v21 = vld [vmem:[#allocation2 + $0x8] sm:$0xff]  ;;  %v4253_v28 = vld [vmem:[#allocation7 + $0x38] ss:$12 sps:$4 sm:$0xff]   ;;  %3920 = vmatprep.mubr.msk.bf16.mxu1 %vm4628_vm0, %v4627_v1  ;;  %v4760_v33 = vshrl.u32 %v240_v32, 7  ;;  %vm473_vm1 = vcmask 261120  }
  0x54   :  { %387 = vmatprep.subr.bf16.mxu0 %v4230_v6  ;;  %3907 = vmatpush3.bf16.msra.mxu1 %v4249_v12  ;;  %v4245_v23 = vld [vmem:[#allocation7 + $0x4] ss:$12 sps:$4 sm:$0xff]   ;;  %v4247_v25 = vld [vmem:[#allocation7] ss:$12 sps:$4 sm:$0xff]   ;;  %v4742_v26 = vadd.f32 %v131_v22, %v129_v20  ;;  %v4744_v27 = vadd.f32 %v131_v22, %v130_v21  ;;  %v4255_v31 = vld [vmem:[#allocation7 + $0x8] ss:$12 sps:$4 sm:$0xff]  }
  0x55   :  { %3908 = vmatprep.subr.bf16.mxu1 %v4627_v1  ;;  %v4252_v24 = vld [vmem:[#allocation7 + $0x50] ss:$12 sps:$4 sm:$0xff]   ;;  %v4254_v30 = vld [vmem:[#allocation7 + $0x20] ss:$12 sps:$4 sm:$0xff]   ;;  %v4763_v34 = vsub.s32 1, %v4760_v33  ;;  %v4770_v38 = vsub.s32 0, %v4760_v33 }
  0x56   :  { %v238_v29 = vpack.c.bf16 %v4744_v27, %v4742_v26  ;;  %v230_v35 = vld [vmem:[%s5260_s6] sm:$0x7]  ;;  %v250_v53 = vsub.s32 2, %v4760_v33  ;;  %vm594_vm2 = vcmask 1043456   ;;  %vm566_vm3 = vcmask 64512   ;;  %s4629_s22 = smov 96  }
  0x57   :  { %388 = vmatpush1.bf16.msra.mxu0 %v4232_v7  ;;  %v247_v36 = vrot.slane %v230_v35, %v4763_v34  ;;  %v243_v42 = vrot.slane %v230_v35, %v4770_v38  ;;  %s4630_s15 = smov 32   ;;  %vm1376_vm4 = vcmask 523264   ;;  %vm1379_vm5 = vcmask 785408   ;;  %s4631_s20 = smov [#allocation13]  }
  0x58   :  { %389 = vmatprep.subr.bf16.mxu0 %v4233_v8  ;;  %3909 = vmatpush3.bf16.msra.mxu1 %v4250_v15  ;;  %v251_v54 = vrot.slane %v230_v35, %v250_v53  ;;  %s3565_s23 = sshll.u32 %s4631_s20, 4  ;;  %s3566_s23 = int_to_ptr.vmem [resolvable:$true] %s3565_s23 }
  0x59   :  { %3910 = vmatprep.subr.bf16.mxu1 %v4627_v1  ;;  %s4584_s24 = scalar_lea.vmem %s3566_s23, 256  ;;  %p4589_p3 = scmp.lt.s32.totalorder %s3566_s23, %s3566_s23 }
  0x5a   :  { %p4585_p2 = scmp.ne.s32.totalorder %s3566_s23, %s4584_s24  ;;  %p4590_p4 = scmp.lt.s32.totalorder %s4584_s24, %s4584_s24 }
  0x5b   :  { %390 = vmatpush1.bf16.msra.mxu0 %v4235_v9 }
  0x5c   :  { %391 = vmatprep.subr.bf16.mxu0 %v4236_v10  ;;  %3911 = vmatpush3.bf16.msra.mxu1 %v4251_v18  ;;  %p4591_p5 = por %p4590_p4, %p4589_p3 }
  0x5d   :  { %3912 = vmatprep.subr.bf16.mxu1 %v4627_v1 }
  0x5e   :  { %p4592_p6 = pnand %p4591_p5, %p4585_p2 }
  0x5f   :  { %392 = vmatpush1.bf16.msra.mxu0 %v4238_v13 }
  0x60   :  { %393 = vmatprep.subr.bf16.mxu0 %v4239_v14  ;;  %3913 = vmatpush3.bf16.msra.mxu1 %v4252_v24 }
  0x61   :  { %3914 = vmatprep.subr.bf16.mxu1 %v4627_v1 }
  0x63   :  { %394 = vmatpush1.bf16.msra.mxu0 %v4241_v16 }
  0x64   :  { %395 = vmatprep.subr.bf16.mxu0 %v4242_v17  ;;  %3915 = vmatpush3.bf16.msra.mxu1 %v4253_v28 }
  0x65   :  { %3916 = vmatprep.subr.bf16.mxu1 %v4627_v1 }
  0x67   :  { %396 = vmatpush1.bf16.msra.mxu0 %v4244_v19 }
  0x68   :  { %397 = vmatprep.subr.bf16.mxu0 %v4245_v23  ;;  %3917 = vmatpush3.bf16.msra.mxu1 %v4254_v30 }
  0x69   :  { %3918 = vmatprep.subr.bf16.mxu1 %v4627_v1 }
  0x6b   :  { %398 = vmatpush1.bf16.msra.mxu0 %v4247_v25 }
  0x6c   :  { %3948 = vmatprep.subr.bf16.mxu0 %v4627_v1  ;;  %3919 = vmatpush3.bf16.msra.mxu1 %v4255_v31 }
  0x6d   :  { %3924 = vmatprep.subr.bf16.mxu1 %v4627_v1 }
  0x6e   :  { %416 = vmatmul.mubr.bf16.vlgmr.msra.gmra.mxu0 %v238_v29 }
  0x6f   :  { %3950 = vmatprep.mubr.msk.bf16.mxu0 %vm4628_vm0, %v4627_v1  ;;  %3921 = vmatmul.mubr.bf16.vlgmr.msra.gmra.mxu1 %v238_v29 }
  0x70   :  { %3926 = vmatprep.mubr.msk.bf16.mxu1 %vm4628_vm0, %v4627_v1 }
 0x12e   :  { %v417_v37 = vpop.f32.mrf.mxu0 }
 0x12f   :  { %v418_v47 = vadd.f32 %v417_v37, %v243_v42  ;;  %v460_v55 = vpop.f32.mrf.mxu1 }
 0x130   :  { %v419_v39 = vpop.f32.mrf.mxu0  ;;  %v461_v56 = vadd.f32 %v460_v55, %v251_v54 }
 0x131   :  { %v420_v40 = vadd.f32 %v419_v39, %v247_v36  ;;  %v4780_v49 = vpack.c.bf16 %v418_v47, %v418_v47  ;;  %v3922_v57 = vpop.f32.mrf.mxu1 }
 0x132   :  { %v421_v41 = vpop.f32.mrf.mxu0  ;;  %v4798_v58 = vpack.c.bf16 %v461_v56, %v461_v56 }
 0x133   :  { %v4773_v43 = vpack.c.bf16 %v420_v40, %v420_v40  ;;  %v422_v51 = vadd.f32 %v421_v41, %v243_v42  ;;  %v463_v59 = vpop.f32.mrf.mxu1 }
 0x134   :  { %v423_v44 = vpop.f32.mrf.mxu0  ;;  %v464_v60 = vadd.f32 %v463_v59, %v251_v54  ;;  %v596_v61 = vsel %vm594_vm2, %v4798_v58, 0 }
 0x135   :  { %v424_v45 = vadd.f32 %v423_v44, %v247_v36  ;;  %v478_v46 = vsel %vm473_vm1, %v4773_v43, 0  ;;  %v4789_v52 = vpack.c.bf16 %v422_v51, %v422_v51  ;;  %v3923_v62 = vpop.f32.mrf.mxu1 }
 0x136   :  { %3925 = vmatpush3.bf16.xpose.msra.mxu1 %v478_v46  ;;  %v4817_v25 = vpack.c.bf16 %v464_v60, %v464_v60 }
 0x137   :  { %3930 = vmatprep.subr.bf16.mxu1 %v4627_v1  ;;  %v4778_v48 = vpack.c.bf16 %v424_v45, %v424_v45 }
 0x138   :  { %v642_v30 = vsel %vm594_vm2, %v4817_v25, 0 }
 0x139   :  { %v524_v50 = vsel %vm473_vm1, %v4778_v48, 0 }
 0x13d   :  { %3927 = vmatmul.mubr.msk.bf16.vlgmr.msra.gmra.mxu1 %vm473_vm1, %v4780_v49 }
 0x13e   :  { %3931 = vmatpush3.bf16.xpose.msra.mxu1 %v524_v50  ;;  %3932 = vmatprep.mubr.msk.bf16.mxu1 %vm4628_vm0, %v4627_v1 }
 0x13f   :  { %3936 = vmatprep.subr.bf16.mxu1 %v4627_v1 }
 0x145   :  { %3933 = vmatmul.mubr.msk.bf16.vlgmr.msra.gmra.mxu1 %vm473_vm1, %v4789_v52 }
 0x146   :  { %3938 = vmatprep.mubr.msk.bf16.mxu1 %vm4628_vm0, %v4627_v1  ;;  %3937 = vmatpush3.bf16.msra.mxu1 %v596_v61 }
 0x147   :  { %3942 = vmatprep.subr.bf16.mxu1 %v4627_v1 }
 0x1fd   :  { %v514_v63 = vpop.f32.mrf.mxu1 }
 0x1fe   :  { %v567_v2 = vsel %vm566_vm3, %v514_v63, -inf }
 0x1ff   :  { %568 = vmax.xlane.f32.xlu0 %v567_v2  ;;  %v3928_v3 = vpop.f32.mrf.mxu1 }
 0x201   :  { %v517_v4 = vpop.f32.mrf.mxu1 }
 0x203   :  { %v3929_v5 = vpop.f32.mrf.mxu1 }
 0x205   :  { %v560_v6 = vpop.f32.mrf.mxu1 }
 0x206   :  { %v570_v7 = vsel %vm566_vm3, %v560_v6, -inf }
 0x207   :  { %571 = vmax.xlane.f32.xlu0 %v570_v7  ;;  %v3934_v8 = vpop.f32.mrf.mxu1 }
 0x209   :  { %v563_v9 = vpop.f32.mrf.mxu1 }
 0x20b   :  { %v3935_v10 = vpop.f32.mrf.mxu1 }
 0x21d   :  { %688 = vrot.lane.b32.xlu0 %v4773_v43, %s4629_s22 }
 0x288   :  { %v569_v11 = vpop.xlane.xlu0 %568 }
 0x289   :  { %v573_v12 = vsub.f32 %v514_v63, %v569_v11 }
 0x28b   :  { %v575_v13 = vmul.f32 1.442695, %v573_v12 }
 0x28d   :  { %4384 = vpow2.f32 %v575_v13 }
 0x290   :  { %v572_v14 = vpop.xlane.xlu0 %571 }
 0x291   :  { %v574_v19 = vsub.f32 %v560_v6, %v572_v14 }
 0x293   :  { %v577_v20 = vmul.f32 1.442695, %v574_v19 }
 0x294   :  { %v689_v15 = vpop.permute.xlu0 %688 }
 0x295   :  { %v694_v16 = vsel %vm473_vm1, %v689_v15, 0  ;;  %4386 = vpow2.f32 %v577_v20 }
 0x296   :  { %3949 = vmatpush3.bf16.xpose.msra.mxu0 %v694_v16 }
 0x297   :  { %3960 = vmatprep.subr.bf16.mxu0 %v4627_v1 }
 0x29a   :  { %v4385_v17 = vpop.eup %4384 }
 0x29b   :  { %v579_v18 = vsel %vm566_vm3, %v4385_v17, 0.0 }
 0x29c   :  { %580 = vadd.xlane.f32.xlu1 %v579_v18 }
 0x2a2   :  { %v4387_v21 = vpop.eup %4386 }
 0x2a3   :  { %v582_v22 = vsel %vm566_vm3, %v4387_v21, 0.0 }
 0x2ad   :  { %740 = vrot.lane.b32.xlu1 %v4778_v48, %s4629_s22 }
 0x2d1   :  { %583 = vadd.xlane.f32.xlu1 %v582_v22 }
 0x2e2   :  { %685 = vrot.lane.b32.xlu1 %v4780_v49, %s4629_s22 }
 0x2e6   :  { %737 = vrot.lane.b32.xlu1 %v4789_v52, %s4629_s22 }
 0x325   :  { %v581_v23 = vpop.xlane.xlu1 %580 }
 0x326   :  { %4388 = vrcp.f32 %v581_v23 }
 0x329   :  { %v741_v31 = vpop.permute.xlu1 %740 }
 0x32a   :  { %v746_v40 = vsel %vm473_vm1, %v741_v31, 0 }
 0x333   :  { %v4389_v24 = vpop.eup %4388 }
 0x334   :  { %v587_v28 = vmul.f32 %v4389_v24, %v4385_v17 }
 0x336   :  { %v589_v29 = vpack.c.bf16 %v587_v28, %v587_v28 }
 0x338   :  { %3939 = vmatmul.mubr.msk.bf16.vlgmr.msra.gmra.mxu1 %vm566_vm3, %v589_v29 }
 0x339   :  { %3943 = vmatpush3.bf16.msra.mxu1 %v642_v30  ;;  %3944 = vmatprep.mubr.msk.bf16.mxu1 %vm4628_vm0, %v4627_v1 }
 0x33a   :  { %3954 = vmatprep.subr.bf16.mxu1 %v4627_v1 }
 0x35a   :  { %v584_v32 = vpop.xlane.xlu1 %583 }
 0x35b   :  { %4390 = vrcp.f32 %v584_v32 }
 0x35e   :  { %v686_v35 = vpop.permute.xlu1 %685 }
 0x35f   :  { %3951 = vmatmul.mubr.msk.bf16.vlgmr.msra.gmra.mxu0 %vm473_vm1, %v686_v35 }
 0x360   :  { %3962 = vmatprep.mubr.msk.bf16.mxu0 %vm4628_vm0, %v4627_v1 }
 0x362   :  { %v738_v41 = vpop.permute.xlu1 %737 }
 0x368   :  { %v4391_v36 = vpop.eup %4390 }
 0x369   :  { %v588_v37 = vmul.f32 %v4391_v36, %v4387_v21 }
 0x36b   :  { %v590_v39 = vpack.c.bf16 %v588_v37, %v588_v37 }
 0x36d   :  { %3945 = vmatmul.mubr.msk.bf16.vlgmr.msra.gmra.mxu1 %vm566_vm3, %v590_v39 }
 0x36e   :  { %3955 = vmatpush3.bf16.xpose.msra.mxu1 %v746_v40  ;;  %3956 = vmatprep.mubr.msk.bf16.mxu1 %vm4628_vm0, %v4627_v1 }
 0x36f   :  { %3966 = vmatprep.subr.bf16.mxu1 %v4627_v1 }
 0x375   :  { %3957 = vmatmul.mubr.msk.bf16.vlgmr.msra.gmra.mxu1 %vm473_vm1, %v738_v41 }
 0x376   :  { %3968 = vmatprep.mubr.msk.bf16.mxu1 %vm4628_vm0, %v4627_v1 }
 0x3f8   :  { %v4836_v42 = vpop.f32.mrf.mxu1 }
 0x3fa   :  { %v3940_v44 = vpop.f32.mrf.mxu1 }
 0x3fc   :  { %v635_v45 = vpop.f32.mrf.mxu1 }
 0x3fe   :  { %v3941_v46 = vpop.f32.mrf.mxu1 }
 0x41f   :  { %v730_v47 = vpop.f32.mrf.mxu0 }
 0x420   :  { %v788_v50 = vsel %vm566_vm3, %v730_v47, -inf }
 0x421   :  { %789 = vmax.xlane.f32.xlu0 %v788_v50  ;;  %v3952_v51 = vpop.f32.mrf.mxu0 }
 0x423   :  { %v733_v54 = vpop.f32.mrf.mxu0 }
 0x425   :  { %v3953_v55 = vpop.f32.mrf.mxu0 }
 0x42d   :  { %v4839_v56 = vpop.f32.mrf.mxu1 }
 0x42f   :  { %v3946_v57 = vpop.f32.mrf.mxu1 }
 0x431   :  { %v681_v59 = vpop.f32.mrf.mxu1 }
 0x433   :  { %v3947_v60 = vpop.f32.mrf.mxu1 }
 0x435   :  { %v782_v61 = vpop.f32.mrf.mxu1 }
 0x436   :  { %v791_v62 = vsel %vm566_vm3, %v782_v61, -inf }
 0x437   :  { %792 = vmax.xlane.f32.xlu1 %v791_v62  ;;  %v3958_v63 = vpop.f32.mrf.mxu1 }
 0x439   :  { %v785_v2 = vpop.f32.mrf.mxu1 }
 0x43b   :  { %v3959_v3 = vpop.f32.mrf.mxu1 }
 0x448   :  { %862 = vrot.lane.b32.xlu1 %v4817_v25, %s4629_s22 }
 0x44c   :  { %912 = vrot.lane.b32.xlu1 %v4773_v43, %s4616_s21 }
 0x450   :  { %962 = vrot.lane.b32.xlu1 %v4778_v48, %s4616_s21 }
 0x454   :  { %960 = vrot.lane.b32.xlu1 %v4789_v52, %s4616_s21 }
 0x4aa   :  { %v790_v4 = vpop.xlane.xlu0 %789 }
 0x4ab   :  { %v794_v5 = vsub.f32 %v730_v47, %v790_v4 }
 0x4ad   :  { %v796_v6 = vmul.f32 1.442695, %v794_v5 }
 0x4af   :  { %4392 = vpow2.f32 %v796_v6 }
 0x4bc   :  { %v4393_v7 = vpop.eup %4392 }
 0x4bd   :  { %v800_v8 = vsel %vm566_vm3, %v4393_v7, 0.0 }
 0x4be   :  { %801 = vadd.xlane.f32.xlu0 %v800_v8 }
 0x4c0   :  { %v793_v9 = vpop.xlane.xlu1 %792 }
 0x4c1   :  { %v795_v10 = vsub.f32 %v782_v61, %v793_v9 }
 0x4c3   :  { %v798_v11 = vmul.f32 1.442695, %v795_v10 }
 0x4c4   :  { %v863_v12 = vpop.permute.xlu1 %862 }
 0x4c5   :  { %4394 = vpow2.f32 %v798_v11  ;;  %v868_v13 = vsel %vm594_vm2, %v863_v12, 0 }
 0x4c6   :  { %3967 = vmatpush3.bf16.msra.mxu1 %v868_v13 }
 0x4c7   :  { %3978 = vmatprep.subr.bf16.mxu1 %v4627_v1 }
 0x4c8   :  { %v913_v22 = vpop.permute.xlu1 %912 }
 0x4c9   :  { %v918_v24 = vsel %vm473_vm1, %v913_v22, 0 }
 0x4cc   :  { %v963_v30 = vpop.permute.xlu1 %962 }
 0x4cd   :  { %v968_v35 = vsel %vm473_vm1, %v963_v30, 0 }
 0x4d0   :  { %v961_v36 = vpop.permute.xlu1 %960 }
 0x4d2   :  { %v4395_v14 = vpop.eup %4394 }
 0x4d3   :  { %v803_v15 = vsel %vm566_vm3, %v4395_v14, 0.0 }
 0x4d4   :  { %804 = vadd.xlane.f32.xlu0 %v803_v15 }
 0x4ea   :  { %813 = vrot.lane.b32.xlu0 %v4798_v58, %s4629_s22 }
 0x4ee   :  { %910 = vrot.lane.b32.xlu0 %v4780_v49, %s4616_s21 }
 0x547   :  { %v802_v16 = vpop.xlane.xlu0 %801 }
 0x548   :  { %4396 = vrcp.f32 %v802_v16 }
 0x555   :  { %v4397_v17 = vpop.eup %4396 }
 0x556   :  { %v808_v19 = vmul.f32 %v4397_v17, %v4393_v7 }
 0x558   :  { %v810_v23 = vpack.c.bf16 %v808_v19, %v808_v19 }
 0x55d   :  { %v805_v18 = vpop.xlane.xlu0 %804 }
 0x55e   :  { %4398 = vrcp.f32 %v805_v18 }
 0x561   :  { %v814_v20 = vpop.permute.xlu0 %813 }
 0x562   :  { %v819_v21 = vsel %vm594_vm2, %v814_v20, 0 }
 0x563   :  { %3961 = vmatpush3.bf16.msra.mxu0 %v819_v21 }
 0x564   :  { %3972 = vmatprep.subr.bf16.mxu0 %v4627_v1 }
 0x565   :  { %v911_v31 = vpop.permute.xlu0 %910 }
 0x566   :  { %3963 = vmatmul.mubr.msk.bf16.vlgmr.msra.gmra.mxu0 %vm566_vm3, %v810_v23 }
 0x567   :  { %3973 = vmatpush3.bf16.xpose.msra.mxu0 %v918_v24  ;;  %3974 = vmatprep.mubr.msk.bf16.mxu0 %vm4628_vm0, %v4627_v1 }
 0x568   :  { %3984 = vmatprep.subr.bf16.mxu0 %v4627_v1 }
 0x56b   :  { %v4399_v28 = vpop.eup %4398 }
 0x56c   :  { %v809_v29 = vmul.f32 %v4399_v28, %v4395_v14 }
 0x56e   :  { %3975 = vmatmul.mubr.msk.bf16.vlgmr.msra.gmra.mxu0 %vm473_vm1, %v911_v31  ;;  %v811_v32 = vpack.c.bf16 %v809_v29, %v809_v29 }
 0x56f   :  { %3986 = vmatprep.mubr.msk.bf16.mxu0 %vm4628_vm0, %v4627_v1 }
 0x570   :  { %3969 = vmatmul.mubr.msk.bf16.vlgmr.msra.gmra.mxu1 %vm566_vm3, %v811_v32 }
 0x571   :  { %3979 = vmatpush3.bf16.xpose.msra.mxu1 %v968_v35  ;;  %3980 = vmatprep.mubr.msk.bf16.mxu1 %vm4628_vm0, %v4627_v1 }
 0x572   :  { %3990 = vmatprep.subr.bf16.mxu1 %v4627_v1 }
 0x578   :  { %3981 = vmatmul.mubr.msk.bf16.vlgmr.msra.gmra.mxu1 %vm473_vm1, %v961_v36 }
 0x579   :  { %3992 = vmatprep.mubr.msk.bf16.mxu1 %vm4628_vm0, %v4627_v1 }
 0x626   :  { %v4876_v37 = vpop.f32.mrf.mxu0 }
 0x628   :  { %v3964_v39 = vpop.f32.mrf.mxu0 }
 0x62a   :  { %v858_v40 = vpop.f32.mrf.mxu0 }
 0x62c   :  { %v3965_v41 = vpop.f32.mrf.mxu0 }
 0x62e   :  { %v954_v44 = vpop.f32.mrf.mxu0 }
 0x62f   :  { %v1010_v45 = vsel %vm566_vm3, %v954_v44, -inf }
 0x630   :  { %1011 = vmax.xlane.f32.xlu0 %v1010_v45  ;;  %v4879_v46 = vpop.f32.mrf.mxu1  ;;  %v3976_v47 = vpop.f32.mrf.mxu0 }
 0x631   :  { %v4194_v50 = vpack.i.bf16 %v4879_v46, %v4876_v37 }
 0x632   :  { %v3970_v51 = vpop.f32.mrf.mxu1  ;;  %v957_v54 = vpop.f32.mrf.mxu0 }
 0x634   :  { %v907_v55 = vpop.f32.mrf.mxu1  ;;  %v3977_v57 = vpop.f32.mrf.mxu0 }
 0x636   :  { %v3971_v59 = vpop.f32.mrf.mxu1 }
 0x638   :  { %v1004_v60 = vpop.f32.mrf.mxu1 }
 0x639   :  { %v1013_v61 = vsel %vm566_vm3, %v1004_v60, -inf }
 0x63a   :  { %1014 = vmax.xlane.f32.xlu1 %v1013_v61  ;;  %v3982_v62 = vpop.f32.mrf.mxu1 }
 0x63c   :  { %v1007_v63 = vpop.f32.mrf.mxu1 }
 0x63e   :  { %v3983_v2 = vpop.f32.mrf.mxu1 }
 0x64b   :  { %1082 = vrot.lane.b32.xlu1 %v4817_v25, %s4616_s21 }
 0x64f   :  { %1132 = vrot.lane.b32.xlu1 %v4773_v43, %s4630_s15 }
 0x653   :  { %1182 = vrot.lane.b32.xlu1 %v4778_v48, %s4630_s15 }
 0x657   :  { %1180 = vrot.lane.b32.xlu1 %v4789_v52, %s4630_s15 }
 0x6b9   :  { %v1012_v3 = vpop.xlane.xlu0 %1011 }
 0x6ba   :  { %v1016_v4 = vsub.f32 %v954_v44, %v1012_v3 }
 0x6bc   :  { %v1018_v5 = vmul.f32 1.442695, %v1016_v4 }
 0x6be   :  { %4400 = vpow2.f32 %v1018_v5 }
 0x6c3   :  { %v1015_v6 = vpop.xlane.xlu1 %1014 }
 0x6c4   :  { %v1017_v7 = vsub.f32 %v1004_v60, %v1015_v6 }
 0x6c6   :  { %v1020_v8 = vmul.f32 1.442695, %v1017_v7 }
 0x6c7   :  { %v1083_v9 = vpop.permute.xlu1 %1082 }
 0x6c8   :  { %4402 = vpow2.f32 %v1020_v8  ;;  %v1088_v10 = vsel %vm594_vm2, %v1083_v9, 0 }
 0x6c9   :  { %3991 = vmatpush3.bf16.msra.mxu1 %v1088_v10 }
 0x6ca   :  { %4002 = vmatprep.subr.bf16.mxu1 %v4627_v1 }
 0x6cb   :  { %v4401_v43 = vpop.eup %4400  ;;  %v1133_v18 = vpop.permute.xlu1 %1132 }
 0x6cc   :  { %v1022_v48 = vsel %vm566_vm3, %v4401_v43, 0.0  ;;  %v1138_v20 = vsel %vm473_vm1, %v1133_v18, 0  ;;  %v4259_v18 = vld [vmem:[#allocation8 + $0x20] sm:$0xff]  }
 0x6cd   :  { %1023 = vadd.xlane.f32.xlu0 %v1022_v48 }
 0x6cf   :  { %v1183_v22 = vpop.permute.xlu1 %1182 }
 0x6d0   :  { %v1188_v28 = vsel %vm473_vm1, %v1183_v22, 0  ;;  %v4263_v22 = vld [vmem:[#allocation8] sm:$0xff]  }
 0x6d3   :  { %v1181_v29 = vpop.permute.xlu1 %1180 }
 0x6d5   :  { %v4403_v11 = vpop.eup %4402 }
 0x6d6   :  { %v1025_v52 = vsel %vm566_vm3, %v4403_v11, 0.0 }
 0x6d7   :  { %1026 = vadd.xlane.f32.xlu0 %v1025_v52 }
 0x6ed   :  { %1034 = vrot.lane.b32.xlu0 %v4798_v58, %s4616_s21 }
 0x6f1   :  { %1130 = vrot.lane.b32.xlu0 %v4780_v49, %s4630_s15 }
 0x756   :  { %v1024_v12 = vpop.xlane.xlu0 %1023 }
 0x757   :  { %4404 = vrcp.f32 %v1024_v12 }
 0x760   :  { %v1027_v13 = vpop.xlane.xlu0 %1026 }
 0x761   :  { %4406 = vrcp.f32 %v1027_v13 }
 0x764   :  { %v4405_v14 = vpop.eup %4404  ;;  %v1035_v15 = vpop.permute.xlu0 %1034 }
 0x765   :  { %v1040_v16 = vsel %vm594_vm2, %v1035_v15, 0  ;;  %v1030_v17 = vmul.f32 %v4405_v14, %v4401_v43  ;;  %v4256_v15 = vld [vmem:[#allocation8 + $0x38] sm:$0xff]  }
 0x766   :  { %3985 = vmatpush3.bf16.msra.mxu0 %v1040_v16  ;;  %v4257_v16 = vld [vmem:[#allocation8 + $0x30] sm:$0xff]  }
 0x767   :  { %v1032_v19 = vpack.c.bf16 %v1030_v17, %v1030_v17  ;;  %3996 = vmatprep.subr.bf16.mxu0 %v4627_v1  ;;  %v4258_v17 = vld [vmem:[#allocation8 + $0x28] sm:$0xff]  }
 0x768   :  { %v1131_v23 = vpop.permute.xlu0 %1130 }
 0x769   :  { %3987 = vmatmul.mubr.msk.bf16.vlgmr.msra.gmra.mxu0 %vm566_vm3, %v1032_v19  ;;  %v4260_v19 = vld [vmem:[#allocation8 + $0x18] sm:$0xff]  }
 0x76a   :  { %3997 = vmatpush3.bf16.xpose.msra.mxu0 %v1138_v20  ;;  %3998 = vmatprep.mubr.msk.bf16.mxu0 %vm4628_vm0, %v4627_v1  ;;  %v4261_v20 = vld [vmem:[#allocation8 + $0x10] sm:$0xff]  }
 0x76b   :  { %4008 = vmatprep.subr.bf16.mxu0 %v4627_v1 }
 0x76e   :  { %v4407_v49 = vpop.eup %4406 }
 0x76f   :  { %v1031_v21 = vmul.f32 %v4407_v49, %v4403_v11  ;;  %v4262_v49 = vld [vmem:[#allocation8 + $0x8] sm:$0xff]  }
 0x771   :  { %3999 = vmatmul.mubr.msk.bf16.vlgmr.msra.gmra.mxu0 %vm473_vm1, %v1131_v23  ;;  %v1033_v24 = vpack.c.bf16 %v1031_v21, %v1031_v21 }
 0x772   :  { %4010 = vmatprep.mubr.msk.bf16.mxu0 %vm4628_vm0, %v4627_v1 }
 0x773   :  { %3993 = vmatmul.mubr.msk.bf16.vlgmr.msra.gmra.mxu1 %vm566_vm3, %v1033_v24 }
 0x774   :  { %4003 = vmatpush3.bf16.xpose.msra.mxu1 %v1188_v28  ;;  %4004 = vmatprep.mubr.msk.bf16.mxu1 %vm4628_vm0, %v4627_v1 }
 0x775   :  { %4014 = vmatprep.subr.bf16.mxu1 %v4627_v1 }
 0x77b   :  { %4005 = vmatmul.mubr.msk.bf16.vlgmr.msra.gmra.mxu1 %vm473_vm1, %v1181_v29 }
 0x77c   :  { %4016 = vmatprep.mubr.msk.bf16.mxu1 %vm4628_vm0, %v4627_v1 }
 0x829   :  { %v1076_v30 = vpop.f32.mrf.mxu0 }
 0x82b   :  { %v3988_v31 = vpop.f32.mrf.mxu0 }
 0x82d   :  { %v1079_v32 = vpop.f32.mrf.mxu0 }
 0x82f   :  { %v3989_v35 = vpop.f32.mrf.mxu0 }
 0x831   :  { %v1174_v36 = vpop.f32.mrf.mxu0 }
 0x832   :  { %v1230_v39 = vsel %vm566_vm3, %v1174_v36, -inf }
 0x833   :  { %1231 = vmax.xlane.f32.xlu0 %v1230_v39  ;;  %v1124_v40 = vpop.f32.mrf.mxu1  ;;  %v4000_v41 = vpop.f32.mrf.mxu0 }
 0x834   :  { %v4199_v62 = vpack.i.bf16 %v1124_v40, %v1076_v30 }
 0x835   :  { %v3994_v44 = vpop.f32.mrf.mxu1  ;;  %v1177_v45 = vpop.f32.mrf.mxu0 }
 0x837   :  { %v1127_v47 = vpop.f32.mrf.mxu1  ;;  %v4001_v51 = vpop.f32.mrf.mxu0 }
 0x839   :  { %v3995_v54 = vpop.f32.mrf.mxu1 }
 0x83b   :  { %v1224_v55 = vpop.f32.mrf.mxu1 }
 0x83c   :  { %v1233_v57 = vsel %vm566_vm3, %v1224_v55, -inf }
 0x83d   :  { %1234 = vmax.xlane.f32.xlu1 %v1233_v57  ;;  %v4006_v59 = vpop.f32.mrf.mxu1 }
 0x83f   :  { %v1227_v60 = vpop.f32.mrf.mxu1 }
 0x841   :  { %v4007_v61 = vpop.f32.mrf.mxu1 }
 0x84e   :  { %1302 = vrot.lane.b32.xlu1 %v4817_v25, %s4630_s15 }
 0x852   :  { %4195 = vrot.lane.b32.xlu1 %v4194_v50, %s4630_s15 }
 0x856   :  { %4200 = vrot.lane.b32.xlu1 %v4199_v62, %s4616_s21 }
 0x8bc   :  { %v1232_v63 = vpop.xlane.xlu0 %1231 }
 0x8bd   :  { %v1236_v2 = vsub.f32 %v1174_v36, %v1232_v63 }
 0x8bf   :  { %v1238_v3 = vmul.f32 1.442695, %v1236_v2  ;;  %v3620_v2 = vld [vmem:[%s5262_s8] ss:$0 sm:$0xff] }
 0x8c1   :  { %4408 = vpow2.f32 %v1238_v3 }
 0x8c6   :  { %v1235_v4 = vpop.xlane.xlu1 %1234 }
 0x8c7   :  { %v1237_v5 = vsub.f32 %v1224_v55, %v1235_v4 }
 0x8c9   :  { %v1240_v6 = vmul.f32 1.442695, %v1237_v5 }
 0x8ca   :  { %v1303_v7 = vpop.permute.xlu1 %1302 }
 0x8cb   :  { %4410 = vpow2.f32 %v1240_v6  ;;  %v1308_v8 = vsel %vm594_vm2, %v1303_v7, 0 }
 0x8cc   :  { %4015 = vmatpush3.bf16.msra.mxu1 %v1308_v8 }
 0x8ce   :  { %v4409_v25 = vpop.eup %4408  ;;  %v4196_v36 = vpop.permute.xlu1 %4195 }
 0x8cf   :  { %v1242_v9 = vsel %vm566_vm3, %v4409_v25, 0.0  ;;  %v4198_v40 = vunpack.i.h.bf16 %v4196_v36  ;;  %v4197_v41 = vunpack.i.l.bf16 %v4196_v36  ;;  %v4297_v36 = vld [vmem:[#allocation11 + $0x18] sm:$0xff]  }
 0x8d0   :  { %1243 = vadd.xlane.f32.xlu0 %v1242_v9  ;;  %v4266_v9 = vld [vmem:[#allocation10 + $0x74] ss:$8 sps:$4 sm:$0xff]  }
 0x8d1   :  { %v1375_v51 = vsel %vm473_vm1, %v4839_v56, %v4198_v40  ;;  %v1374_v54 = vsel %vm473_vm1, %v4836_v42, %v4197_v41  ;;  %1611 = vmatprep.subr.bf16.mxu1 %v4266_v9 }
 0x8d2   :  { %v4201_v39 = vpop.permute.xlu1 %4200 }
 0x8d3   :  { %v4203_v44 = vunpack.i.h.bf16 %v4201_v39  ;;  %v4202_v45 = vunpack.i.l.bf16 %v4201_v39 }
 0x8d5   :  { %v1377_v59 = vsel %vm1376_vm4, %v1374_v54, %v4202_v45  ;;  %v1378_v60 = vsel %vm1376_vm4, %v1375_v51, %v4203_v44 }
 0x8d8   :  { %v4411_v37 = vpop.eup %4410 }
 0x8d9   :  { %v1245_v46 = vsel %vm566_vm3, %v4411_v37, 0.0 }
 0x8da   :  { %1246 = vadd.xlane.f32.xlu0 %v1245_v46 }
 0x8f0   :  { %1254 = vrot.lane.b32.xlu0 %v4798_v58, %s4630_s15 }
 0x959   :  { %v1244_v50 = vpop.xlane.xlu0 %1243 }
 0x95a   :  { %4412 = vrcp.f32 %v1244_v50 }
 0x963   :  { %v1247_v10 = vpop.xlane.xlu0 %1246 }
 0x964   :  { %4414 = vrcp.f32 %v1247_v10 }
 0x967   :  { %v4413_v43 = vpop.eup %4412  ;;  %v1255_v48 = vpop.permute.xlu0 %1254 }
 0x968   :  { %v1260_v11 = vsel %vm594_vm2, %v1255_v48, 0  ;;  %v1250_v52 = vmul.f32 %v4413_v43, %v4409_v25  ;;  %v4264_v25 = vld [vmem:[#allocation10 + $0x70] ss:$8 sps:$4 sm:$0xff]  }
 0x969   :  { %4009 = vmatpush3.bf16.msra.mxu0 %v1260_v11  ;;  %v4269_v11 = vld [vmem:[#allocation10 + $0x64] ss:$8 sps:$4 sm:$0xff]  }
 0x96a   :  { %v1252_v12 = vpack.c.bf16 %v1250_v52, %v1250_v52  ;;  %4020 = vmatprep.subr.bf16.mxu0 %v4627_v1  ;;  %v4267_v52 = vld [vmem:[#allocation10 + $0x60] ss:$8 sps:$4 sm:$0xff]  }
 0x96c   :  { %4011 = vmatmul.mubr.msk.bf16.vlgmr.msra.gmra.mxu0 %vm566_vm3, %v1252_v12  ;;  %v4272_v12 = vld [vmem:[#allocation10 + $0x54] ss:$8 sps:$4 sm:$0xff]  }
 0x96d   :  { %4036 = vmatprep.mubr.msk.bf16.mxu0 %vm4628_vm0, %v4627_v1  ;;  %4021 = vmatpush3.bf16.msra.mxu0 %v4256_v15  ;;  %v4278_v15 = vld [vmem:[#allocation10 + $0x34] ss:$8 sps:$4 sm:$0xff]  }
 0x96e   :  { %4022 = vmatprep.subr.bf16.mxu0 %v4627_v1 }
 0x971   :  { %v4415_v13 = vpop.eup %4414  ;;  %4023 = vmatpush3.bf16.msra.mxu0 %v4257_v16  ;;  %v4276_v16 = vld [vmem:[#allocation10 + $0x30] ss:$8 sps:$4 sm:$0xff]  }
 0x972   :  { %v1251_v58 = vmul.f32 %v4415_v13, %v4411_v37  ;;  %4024 = vmatprep.subr.bf16.mxu0 %v4627_v1  ;;  %v4270_v13 = vld [vmem:[#allocation10 + $0x50] ss:$8 sps:$4 sm:$0xff]  }
 0x974   :  { %v1253_v14 = vpack.c.bf16 %v1251_v58, %v1251_v58  ;;  %v4273_v58 = vld [vmem:[#allocation10 + $0x40] ss:$8 sps:$4 sm:$0xff]  }
 0x975   :  { %4025 = vmatpush3.bf16.msra.mxu0 %v4258_v17  ;;  %v4281_v17 = vld [vmem:[#allocation10 + $0x24] ss:$8 sps:$4 sm:$0xff]  }
 0x976   :  { %4017 = vmatmul.mubr.msk.bf16.vlgmr.msra.gmra.mxu1 %vm566_vm3, %v1253_v14  ;;  %4026 = vmatprep.subr.bf16.mxu0 %v4627_v1  ;;  %v4275_v14 = vld [vmem:[#allocation10 + $0x44] ss:$8 sps:$4 sm:$0xff]  }
 0x977   :  { %1643 = vmatprep.mubr.bf16.mxu1 %v4626_v0  ;;  %1612 = vmatpush1.bf16.msra.mxu1 %v4264_v25 }
 0x978   :  { %1613 = vmatprep.subr.bf16.mxu1 %v4269_v11 }
 0x979   :  { %4027 = vmatpush3.bf16.msra.mxu0 %v4259_v18  ;;  %v4279_v18 = vld [vmem:[#allocation10 + $0x20] ss:$8 sps:$4 sm:$0xff]  }
 0x97a   :  { %4028 = vmatprep.subr.bf16.mxu0 %v4627_v1 }
 0x97b   :  { %1614 = vmatpush1.bf16.msra.mxu1 %v4267_v52 }
 0x97c   :  { %1615 = vmatprep.subr.bf16.mxu1 %v4272_v12 }
 0x97d   :  { %4029 = vmatpush3.bf16.msra.mxu0 %v4260_v19  ;;  %v4284_v19 = vld [vmem:[#allocation10 + $0x14] ss:$8 sps:$4 sm:$0xff]  }
 0x97e   :  { %4030 = vmatprep.subr.bf16.mxu0 %v4627_v1 }
 0x97f   :  { %1616 = vmatpush1.bf16.msra.mxu1 %v4270_v13 }
 0x980   :  { %1617 = vmatprep.subr.bf16.mxu1 %v4275_v14 }
 0x981   :  { %4031 = vmatpush3.bf16.msra.mxu0 %v4261_v20  ;;  %v4282_v20 = vld [vmem:[#allocation10 + $0x10] ss:$8 sps:$4 sm:$0xff]  }
 0x982   :  { %4032 = vmatprep.subr.bf16.mxu0 %v4627_v1 }
 0x983   :  { %1618 = vmatpush1.bf16.msra.mxu1 %v4273_v58 }
 0x984   :  { %1619 = vmatprep.subr.bf16.mxu1 %v4278_v15 }
 0x985   :  { %4033 = vmatpush3.bf16.msra.mxu0 %v4262_v49  ;;  %v4287_v49 = vld [vmem:[#allocation10 + $0x4] ss:$8 sps:$4 sm:$0xff]  }
 0x986   :  { %4034 = vmatprep.subr.bf16.mxu0 %v4627_v1 }
 0x987   :  { %1620 = vmatpush1.bf16.msra.mxu1 %v4276_v16  ;;  %v3647_v16 = vld [vmem:[%s5265_s11] ss:$0 sm:$0xff] }
 0x988   :  { %1621 = vmatprep.subr.bf16.mxu1 %v4281_v17 }
 0x989   :  { %4035 = vmatpush3.bf16.msra.mxu0 %v4263_v22  ;;  %v4288_v22 = vld [vmem:[#allocation11 + $0x78] sm:$0xff]  }
 0x98a   :  { %3810 = vmatprep.subr.bf16.mxu0 %v4288_v22 }
 0x98b   :  { %1622 = vmatpush1.bf16.msra.mxu1 %v4279_v18 }
 0x98c   :  { %1623 = vmatprep.subr.bf16.mxu1 %v4284_v19 }
 0x98f   :  { %1624 = vmatpush1.bf16.msra.mxu1 %v4282_v20 }
 0x990   :  { %1625 = vmatprep.subr.bf16.mxu1 %v4287_v49 }
 0xa2c   :  { %v1296_v21 = vpop.f32.mrf.mxu0 }
 0xa2e   :  { %v4012_v23 = vpop.f32.mrf.mxu0 }
 0xa2f   :  { %v4289_v23 = vld [vmem:[#allocation11 + $0x38] sm:$0xff]  }
 0xa30   :  { %v1299_v24 = vpop.f32.mrf.mxu0 }
 0xa31   :  { %v4290_v24 = vld [vmem:[#allocation11 + $0x70] sm:$0xff]  }
 0xa32   :  { %v4013_v28 = vpop.f32.mrf.mxu0 }
 0xa33   :  { %v4291_v28 = vld [vmem:[#allocation11 + $0x30] sm:$0xff]  }
 0xa36   :  { %v1344_v29 = vpop.f32.mrf.mxu1 }
 0xa37   :  { %v4204_v30 = vpack.i.bf16 %v1344_v29, %v1296_v21  ;;  %v4285_v21 = vld [vmem:[#allocation10] ss:$8 sps:$4 sm:$0xff]  }
 0xa38   :  { %v4018_v31 = vpop.f32.mrf.mxu1  ;;  %1626 = vmatpush1.bf16.msra.mxu1 %v4285_v21  ;;  %v4292_v29 = vld [vmem:[#allocation11 + $0x68] sm:$0xff]  }
 0xa39   :  { %4205 = vrot.lane.b32.xlu0 %v4204_v30, %s4629_s22  ;;  %v4293_v30 = vld [vmem:[#allocation11 + $0x28] sm:$0xff]   ;;  %v4294_v31 = vld [vmem:[#allocation11 + $0x60] sm:$0xff]  }
 0xa3a   :  { %v1347_v32 = vpop.f32.mrf.mxu1 }
 0xa3b   :  { %v4295_v32 = vld [vmem:[#allocation11 + $0x20] sm:$0xff]  }
 0xa3c   :  { %v4019_v35 = vpop.f32.mrf.mxu1 }
 0xa3d   :  { %v4296_v35 = vld [vmem:[#allocation11 + $0x58] sm:$0xff]  }
 0xaab   :  { %v4206_v47 = vpop.permute.xlu0 %4205 }
 0xaac   :  { %v4208_v55 = vunpack.i.h.bf16 %v4206_v47  ;;  %v4207_v57 = vunpack.i.l.bf16 %v4206_v47 }
 0xaae   :  { %v1381_v61 = vsel %vm1379_vm5, %v1378_v60, %v4208_v55  ;;  %v1380_v62 = vsel %vm1379_vm5, %v1377_v59, %v4207_v57  ;;  %v3629_v55 = vld [vmem:[%s5263_s9] ss:$0 sm:$0xff] }
 0xaaf   :  { %v1382_v63 = vpack.c.bf16 %v1381_v61, %v1380_v62  ;;  %v3630_v61 = vld [vmem:[%s5264_s10] ss:$0 sm:$0xff] }
 0xab1   :  { %4037 = vmatmul.mubr.bf16.vlgmr.msra.gmra.mxu0 %v1382_v63 }
 0xab2   :  { %3811 = vmatpush3.bf16.msra.mxu0 %v4289_v23 }
 0xab3   :  { %3812 = vmatprep.subr.bf16.mxu0 %v4290_v24 }
 0xab6   :  { %3813 = vmatpush3.bf16.msra.mxu0 %v4291_v28  ;;  %v4304_v28 = vld [vmem:[#allocation7 + $0x168] ss:$12 sps:$4 sm:$0xff]  }
 0xab7   :  { %3814 = vmatprep.subr.bf16.mxu0 %v4292_v29  ;;  %v4306_v29 = vld [vmem:[#allocation7 + $0x16c] ss:$12 sps:$4 sm:$0xff]  }
 0xab8   :  { %2104 = vmatprep.subr.bf16.mxu1 %v4306_v29 }
 0xaba   :  { %3815 = vmatpush3.bf16.msra.mxu0 %v4293_v30  ;;  %v4307_v30 = vld [vmem:[#allocation7 + $0x170] ss:$12 sps:$4 sm:$0xff]  }
 0xabb   :  { %3816 = vmatprep.subr.bf16.mxu0 %v4294_v31 }
 0xabe   :  { %3817 = vmatpush3.bf16.msra.mxu0 %v4295_v32 }
 0xabf   :  { %3818 = vmatprep.subr.bf16.mxu0 %v4296_v35 }
 0xac2   :  { %3819 = vmatpush3.bf16.msra.mxu0 %v4297_v36 }
 0xb71   :  { %v1471_v56 = vpop.f32.mrf.mxu0 }
 0xb72   :  { %v1472_v3 = vadd.f32 %v3620_v2, %v1471_v56 }
 0xb73   :  { %v4038_v4 = vpop.f32.mrf.mxu0 }
 0xb74   :  { %v1478_v42 = vadd.f32 %v1472_v3, %v4742_v26  ;;  %v4298_v3 = vld [vmem:[#allocation11 + $0x50] sm:$0xff]  }
 0xb75   :  { %v1474_v5 = vpop.f32.mrf.mxu0  ;;  %v4299_v4 = vld [vmem:[#allocation11 + $0x10] sm:$0xff]   ;;  %3820 = vmatprep.subr.bf16.mxu0 %v4298_v3 }
 0xb76   :  { %v1475_v6 = vadd.f32 %v3620_v2, %v1474_v5  ;;  %1480 = vadd.xlane.f32.xlu1 %v1478_v42  ;;  %3821 = vmatpush3.bf16.msra.mxu0 %v4299_v4  ;;  %v4301_v5 = vld [vmem:[#allocation11 + $0x8] sm:$0xff]   ;;  %v4324_v3 = vld [vmem:[#allocation7 + $0xf0] ss:$12 sps:$4 sm:$0xff]   ;;  %v4327_v4 = vld [vmem:[#allocation7 + $0xf8] ss:$12 sps:$4 sm:$0xff]  }
 0xb77   :  { %v4039_v7 = vpop.f32.mrf.mxu0 }
 0xb78   :  { %v1479_v8 = vadd.f32 %v1475_v6, %v4744_v27  ;;  %v4302_v6 = vld [vmem:[#allocation11 + $0x40] sm:$0xff]  }
 0xb79   :  { %v4303_v7 = vld [vmem:[#allocation11] sm:$0xff]  }
 0xb7a   :  { %1482 = vadd.xlane.f32.xlu0 %v1479_v8 }
 0xbff   :  { %v1481_v37 = vpop.xlane.xlu1 %1480 }
 0xc00   :  { %v1485_v46 = vmul.f32 0.0078125, %v1481_v37 }
 0xc02   :  { %v4960_v50 = vsub.f32 %v1478_v42, %v1485_v46  ;;  %v4300_v42 = vld [vmem:[#allocation11 + $0x48] sm:$0xff]  }
 0xc03   :  { %v1483_v10 = vpop.xlane.xlu0 %1482  ;;  %3822 = vmatprep.subr.bf16.mxu0 %v4300_v42  ;;  %v4330_v42 = vld [vmem:[#allocation7 + $0xdc] ss:$12 sps:$4 sm:$0xff]  }
 0xc04   :  { %v1486_v43 = vmul.f32 0.0078125, %v1483_v10  ;;  %v1489_v26 = vmul.f32 %v4960_v50, %v4960_v50  ;;  %3823 = vmatpush3.bf16.msra.mxu0 %v4301_v5  ;;  %v4328_v5 = vld [vmem:[#allocation7 + $0xd8] ss:$12 sps:$4 sm:$0xff]  }
 0xc05   :  { %3824 = vmatprep.subr.bf16.mxu0 %v4302_v6  ;;  %v4331_v6 = vld [vmem:[#allocation7 + $0xe0] ss:$12 sps:$4 sm:$0xff]  }
 0xc06   :  { %v4964_v48 = vsub.f32 %v1479_v8, %v1486_v43  ;;  %1491 = vadd.xlane.f32.xlu0 %v1489_v26  ;;  %v231_v8 = vld [vmem:[%s5261_s7] sm:$0x3] }
 0xc07   :  { %v1528_v9 = vrot.slane %v231_v8, %v4763_v34  ;;  %v1524_v37 = vrot.slane %v231_v8, %v4770_v38  ;;  %v4332_v8 = vld [vmem:[#allocation7 + $0xc0] ss:$12 sps:$4 sm:$0xff]  }
 0xc08   :  { %v1490_v27 = vmul.f32 %v4964_v48, %v4964_v48  ;;  %3825 = vmatpush3.bf16.msra.mxu0 %v4303_v7  ;;  %v4334_v7 = vld [vmem:[#allocation7 + $0xc4] ss:$12 sps:$4 sm:$0xff]  }
 0xc09   :  { %4040 = vmatprep.subr.bf16.mxu0 %v4627_v1 }
 0xc0a   :  { %1493 = vadd.xlane.f32.xlu0 %v1490_v27 }
 0xc8f   :  { %v1492_v39 = vpop.xlane.xlu0 %1491 }
 0xc90   :  { %v1495_v40 = vmul.f32 0.0078125, %v1492_v39 }
 0xc92   :  { %v1497_v41 = vadd.f32 1e-05, %v1495_v40 }
 0xc93   :  { %v1494_v44 = vpop.xlane.xlu0 %1493 }
 0xc94   :  { %4416 = vrsqrt.f32 %v1497_v41  ;;  %v1496_v45 = vmul.f32 0.0078125, %v1494_v44 }
 0xc96   :  { %v1498_v47 = vadd.f32 1e-05, %v1496_v45  ;;  %v4310_v45 = vld [vmem:[#allocation7 + $0x154] ss:$12 sps:$4 sm:$0xff]  }
 0xc98   :  { %4418 = vrsqrt.f32 %v1498_v47  ;;  %v4308_v47 = vld [vmem:[#allocation7 + $0x150] ss:$12 sps:$4 sm:$0xff]  }
 0xca1   :  { %v4417_v51 = vpop.eup %4416 }
 0xca2   :  { %v1501_v54 = vmul.f32 %v4417_v51, %v4960_v50  ;;  %v4311_v51 = vld [vmem:[#allocation7 + $0x158] ss:$12 sps:$4 sm:$0xff]  }
 0xca4   :  { %v1509_v60 = vmul.f32 %v3629_v55, %v1501_v54  ;;  %v4314_v54 = vld [vmem:[#allocation7 + $0x13c] ss:$12 sps:$4 sm:$0xff]  }
 0xca5   :  { %v4419_v57 = vpop.eup %4418 }
 0xca6   :  { %v1502_v59 = vmul.f32 %v4419_v57, %v4964_v48  ;;  %v1517_v63 = vadd.f32 %v3630_v61, %v1509_v60  ;;  %v4315_v57 = vld [vmem:[#allocation7 + $0x140] ss:$12 sps:$4 sm:$0xff]   ;;  %v4318_v60 = vld [vmem:[#allocation7 + $0x124] ss:$12 sps:$4 sm:$0xff]  }
 0xca8   :  { %v1510_v62 = vmul.f32 %v3629_v55, %v1502_v59  ;;  %v4312_v55 = vld [vmem:[#allocation7 + $0x138] ss:$12 sps:$4 sm:$0xff]   ;;  %v4316_v59 = vld [vmem:[#allocation7 + $0x120] ss:$12 sps:$4 sm:$0xff]  }
 0xcaa   :  { %v1518_v2 = vadd.f32 %v3630_v61, %v1510_v62  ;;  %v4319_v61 = vld [vmem:[#allocation7 + $0x128] ss:$12 sps:$4 sm:$0xff]   ;;  %v4322_v62 = vld [vmem:[#allocation7 + $0x10c] ss:$12 sps:$4 sm:$0xff]  }
 0xcac   :  { %v1519_v56 = vpack.c.bf16 %v1518_v2, %v1517_v63 }
 0xcae   :  { %1644 = vmatmul.mubr.bf16.vlgmr.msra.gmra.mxu1 %v1519_v56  ;;  %v4326_v56 = vld [vmem:[#allocation7 + $0xf4] ss:$12 sps:$4 sm:$0xff]  }
 0xcaf   :  { %2136 = vmatprep.mubr.bf16.mxu1 %v4626_v0  ;;  %2105 = vmatpush1.bf16.msra.mxu1 %v4304_v28 }
 0xcb0   :  { %2106 = vmatprep.subr.bf16.mxu1 %v4310_v45 }
 0xcb3   :  { %2107 = vmatpush1.bf16.msra.mxu1 %v4308_v47 }
 0xcb4   :  { %2108 = vmatprep.subr.bf16.mxu1 %v4314_v54 }
 0xcb7   :  { %2109 = vmatpush1.bf16.msra.mxu1 %v4312_v55 }
 0xcb8   :  { %2110 = vmatprep.subr.bf16.mxu1 %v4318_v60 }
 0xcbb   :  { %2111 = vmatpush1.bf16.msra.mxu1 %v4316_v59 }
 0xcbc   :  { %2112 = vmatprep.subr.bf16.mxu1 %v4322_v62 }
 0xd6e   :  { %v1645_v25 = vpop.f32.mrf.mxu1 }
 0xd6f   :  { %v1646_v26 = vadd.f32 %v1645_v25, %v1524_v37  ;;  %v4335_v25 = vld [vmem:[#allocation7 + $0xc8] ss:$12 sps:$4 sm:$0xff]  }
 0xd70   :  { %v1647_v46 = vpop.f32.mrf.mxu1 }
 0xd71   :  { %v1648_v10 = vadd.f32 %v1647_v46, %v1528_v9  ;;  %v1654_v13 = vmax.f32 %v1646_v26, 0.0 }
 0xd72   :  { %v1649_v50 = vpop.f32.mrf.mxu1 }
 0xd73   :  { %v1650_v43 = vadd.f32 %v1649_v50, %v1524_v37  ;;  %v1655_v52 = vmax.f32 %v1648_v10, 0.0 }
 0xd74   :  { %v1651_v48 = vpop.f32.mrf.mxu1 }
 0xd75   :  { %v1652_v27 = vadd.f32 %v1651_v48, %v1528_v9  ;;  %v1656_v11 = vmax.f32 %v1650_v43, 0.0 }
 0xd77   :  { %v1657_v12 = vmax.f32 %v1652_v27, 0.0  ;;  %v1658_v14 = vpack.c.bf16 %v1656_v11, %v1654_v13  ;;  %v3664_v27 = vld [vmem:[%s5266_s12] ss:$0 sm:$0xff] }
 0xd78   :  { %v3665_v13 = vld [vmem:[%s5267_s13] ss:$0 sm:$0xff] }
 0xd79   :  { %v1659_v58 = vpack.c.bf16 %v1657_v12, %v1655_v52 }
 0xd7b   :  { %1794 = vmatprep.mubr.bf16.mxu0 %v1659_v58 }
 0xd7c   :  { %1795 = vmatmul.mubr.bf16.vlgmr.msra.gmra.mxu0 %v1658_v14 }
 0xd7d   :  { %4056 = vmatprep.mubr.msk.bf16.mxu0 %vm4628_vm0, %v4627_v1  ;;  %4041 = vmatpush3.bf16.msra.mxu0 %v4307_v30 }
 0xd7e   :  { %4042 = vmatprep.subr.bf16.mxu0 %v4627_v1 }
 0xd81   :  { %4043 = vmatpush3.bf16.msra.mxu0 %v4311_v51 }
 0xd82   :  { %4044 = vmatprep.subr.bf16.mxu0 %v4627_v1 }
 0xd85   :  { %4045 = vmatpush3.bf16.msra.mxu0 %v4315_v57 }
 0xd86   :  { %4046 = vmatprep.subr.bf16.mxu0 %v4627_v1 }
 0xd89   :  { %4047 = vmatpush3.bf16.msra.mxu0 %v4319_v61 }
 0xd8a   :  { %4048 = vmatprep.subr.bf16.mxu0 %v4627_v1 }
 0xe3c   :  { %v3826_v15 = vpop.f32.mrf.mxu0 }
 0xe3e   :  { %v3827_v17 = vpop.f32.mrf.mxu0 }
 0xe3f   :  { %v3828_v18 = vadd.f32 %v3827_v17, %v3826_v15  ;;  %v3666_v17 = vld [vmem:[%s5260_s6 + $0x3] sm:$0x7] }
 0xe40   :  { %v3829_v19 = vpop.f32.mrf.mxu0  ;;  %v1964_v29 = vrot.slane %v3666_v17, %v4770_v38 }
 0xe41   :  { %v1797_v20 = vadd.f32 %v3828_v18, %v3647_v16  ;;  %v1968_v18 = vrot.slane %v3666_v17, %v4763_v34 }
 0xe42   :  { %v3830_v49 = vpop.f32.mrf.mxu0 }
 0xe43   :  { %v3831_v21 = vadd.f32 %v3830_v49, %v3829_v19  ;;  %v1803_v22 = vadd.f32 %v1797_v20, %v1517_v63  ;;  %v4320_v63 = vld [vmem:[#allocation7 + $0x108] ss:$12 sps:$4 sm:$0xff]  }
 0xe44   :  { %2113 = vmatpush1.bf16.msra.mxu1 %v4320_v63 }
 0xe45   :  { %v1800_v23 = vadd.f32 %v3831_v21, %v3647_v16  ;;  %1805 = vadd.xlane.f32.xlu1 %v1803_v22  ;;  %2114 = vmatprep.subr.bf16.mxu1 %v4326_v56 }
 0xe47   :  { %v1804_v24 = vadd.f32 %v1800_v23, %v1518_v2  ;;  %v4323_v2 = vld [vmem:[#allocation7 + $0x110] ss:$12 sps:$4 sm:$0xff]  }
 0xe48   :  { %4049 = vmatpush3.bf16.msra.mxu0 %v4323_v2  ;;  %2115 = vmatpush1.bf16.msra.mxu1 %v4324_v3 }
 0xe49   :  { %1807 = vadd.xlane.f32.xlu0 %v1804_v24  ;;  %4050 = vmatprep.subr.bf16.mxu0 %v4627_v1 }
 0xe4a   :  { %2116 = vmatprep.subr.bf16.mxu1 %v4330_v42 }
 0xe4c   :  { %4051 = vmatpush3.bf16.msra.mxu0 %v4327_v4  ;;  %2117 = vmatpush1.bf16.msra.mxu1 %v4328_v5 }
 0xe4d   :  { %4052 = vmatprep.subr.bf16.mxu0 %v4627_v1  ;;  %2118 = vmatprep.subr.bf16.mxu1 %v4334_v7 }
 0xe50   :  { %4053 = vmatpush3.bf16.msra.mxu0 %v4331_v6  ;;  %2119 = vmatpush1.bf16.msra.mxu1 %v4332_v8 }
 0xe51   :  { %4054 = vmatprep.subr.bf16.mxu0 %v4627_v1  ;;  %4060 = vmatprep.subr.bf16.mxu1 %v4627_v1 }
 0xe54   :  { %4055 = vmatpush3.bf16.msra.mxu0 %v4335_v25 }
 0xe55   :  { %4084 = vmatprep.subr.bf16.mxu0 %v4627_v1 }
 0xece   :  { %v1806_v31 = vpop.xlane.xlu1 %1805 }
 0xecf   :  { %v1809_v32 = vmul.f32 0.0078125, %v1806_v31 }
 0xed1   :  { %v4989_v35 = vsub.f32 %v1803_v22, %v1809_v32  ;;  %v1972_v22 = vrot.slane %v3666_v17, %v250_v53 }
 0xed2   :  { %v1808_v36 = vpop.xlane.xlu0 %1807 }
 0xed3   :  { %v1810_v39 = vmul.f32 0.0078125, %v1808_v36  ;;  %v1813_v40 = vmul.f32 %v4989_v35, %v4989_v35 }
 0xed5   :  { %v4993_v41 = vsub.f32 %v1804_v24, %v1810_v39  ;;  %1815 = vadd.xlane.f32.xlu1 %v1813_v40 }
 0xed7   :  { %v1814_v44 = vmul.f32 %v4993_v41, %v4993_v41 }
 0xed9   :  { %1817 = vadd.xlane.f32.xlu0 %v1814_v44 }
 0xf5e   :  { %v1816_v9 = vpop.xlane.xlu1 %1815 }
 0xf5f   :  { %v1819_v37 = vmul.f32 0.0078125, %v1816_v9 }
 0xf61   :  { %v1821_v46 = vadd.f32 1e-05, %v1819_v37 }
 0xf62   :  { %v1818_v50 = vpop.xlane.xlu0 %1817 }
 0xf63   :  { %4420 = vrsqrt.f32 %v1821_v46  ;;  %v1820_v10 = vmul.f32 0.0078125, %v1818_v50 }
 0xf65   :  { %v1822_v43 = vadd.f32 1e-05, %v1820_v10 }
 0xf67   :  { %4422 = vrsqrt.f32 %v1822_v43 }
 0xf70   :  { %v4421_v26 = vpop.eup %4420 }
 0xf71   :  { %v1825_v48 = vmul.f32 %v4421_v26, %v4989_v35 }
 0xf73   :  { %v1833_v12 = vmul.f32 %v3664_v27, %v1825_v48 }
 0xf74   :  { %v4423_v11 = vpop.eup %4422 }
 0xf75   :  { %v1826_v52 = vmul.f32 %v4423_v11, %v4993_v41  ;;  %v5013_v14 = vadd.f32 %v3665_v13, %v1833_v12 }
 0xf77   :  { %v1834_v58 = vmul.f32 %v3664_v27, %v1826_v52 }
 0xf79   :  { %v5015_v15 = vadd.f32 %v3665_v13, %v1834_v58 }
 0xf7b   :  { %v1959_v16 = vpack.c.bf16 %v5015_v15, %v5013_v14 }
 0xf7d   :  { %2137 = vmatmul.mubr.bf16.vlgmr.msra.gmra.mxu1 %v1959_v16  ;;  %4057 = vmatmul.mubr.bf16.vlgmr.msra.gmra.mxu0 %v1959_v16 }
 0xf7e   :  { %4062 = vmatprep.mubr.msk.bf16.mxu1 %vm4628_vm0, %v4627_v1  ;;  %4086 = vmatprep.mubr.msk.bf16.mxu0 %vm4628_vm0, %v4627_v1 }
0x103d   :  { %v2138_v19 = vpop.f32.mrf.mxu1  ;;  %v2181_v20 = vpop.f32.mrf.mxu0 }
0x103e   :  { %v2139_v40 = vadd.f32 %v2138_v19, %v1964_v29  ;;  %v2182_v41 = vadd.f32 %v2181_v20, %v1972_v22 }
0x103f   :  { %v2140_v49 = vpop.f32.mrf.mxu1  ;;  %v4058_v21 = vpop.f32.mrf.mxu0 }
0x1040   :  { %v2141_v23 = vadd.f32 %v2140_v49, %v1968_v18  ;;  %v5039_v53 = vpack.c.bf16 %v2139_v40, %v2139_v40  ;;  %v5048_v47 = vpack.c.bf16 %v2182_v41, %v2182_v41 }
0x1041   :  { %v2142_v24 = vpop.f32.mrf.mxu1  ;;  %v2184_v28 = vpop.f32.mrf.mxu0 }
0x1042   :  { %v5030_v30 = vpack.c.bf16 %v2141_v23, %v2141_v23  ;;  %v5032_v31 = vadd.f32 %v2184_v28, %v1972_v22  ;;  %v2143_v45 = vadd.f32 %v2142_v24, %v1964_v29  ;;  %v2314_v54 = vsel %vm594_vm2, %v5048_v47, 0 }
0x1043   :  { %v2144_v32 = vpop.f32.mrf.mxu1  ;;  %v4059_v35 = vpop.f32.mrf.mxu0 }
0x1044   :  { %v2145_v36 = vadd.f32 %v2144_v32, %v1968_v18  ;;  %v2198_v39 = vsel %vm473_vm1, %v5030_v30, 0  ;;  %v5050_v51 = vpack.c.bf16 %v2143_v45, %v2143_v45  ;;  %v5078_v11 = vpack.c.bf16 %v5032_v31, %v5032_v31 }
0x1045   :  { %4061 = vmatpush3.bf16.xpose.msra.mxu1 %v2198_v39 }
0x1046   :  { %4066 = vmatprep.subr.bf16.mxu1 %v4627_v1  ;;  %v5037_v33 = vpack.c.bf16 %v2145_v36, %v2145_v36  ;;  %v2360_v13 = vsel %vm594_vm2, %v5078_v11, 0 }
0x1048   :  { %v2244_v44 = vsel %vm473_vm1, %v5037_v33, 0 }
0x104c   :  { %4063 = vmatmul.mubr.msk.bf16.vlgmr.msra.gmra.mxu1 %vm473_vm1, %v5039_v53 }
0x104d   :  { %4067 = vmatpush3.bf16.xpose.msra.mxu1 %v2244_v44  ;;  %4068 = vmatprep.mubr.msk.bf16.mxu1 %vm4628_vm0, %v4627_v1 }
0x104e   :  { %4072 = vmatprep.subr.bf16.mxu1 %v4627_v1 }
0x1054   :  { %4069 = vmatmul.mubr.msk.bf16.vlgmr.msra.gmra.mxu1 %vm473_vm1, %v5050_v51 }
0x1055   :  { %4073 = vmatpush3.bf16.msra.mxu1 %v2314_v54  ;;  %4074 = vmatprep.mubr.msk.bf16.mxu1 %vm4628_vm0, %v4627_v1 }
0x1056   :  { %4078 = vmatprep.subr.bf16.mxu1 %v4627_v1 }
0x110c   :  { %v2234_v55 = vpop.f32.mrf.mxu1 }
0x110d   :  { %v2286_v57 = vsel %vm566_vm3, %v2234_v55, -inf }
0x110e   :  { %2287 = vmax.xlane.f32.xlu1 %v2286_v57  ;;  %v4064_v59 = vpop.f32.mrf.mxu1 }
0x1110   :  { %v2237_v60 = vpop.f32.mrf.mxu1 }
0x1112   :  { %v4065_v61 = vpop.f32.mrf.mxu1 }
0x1114   :  { %v2280_v62 = vpop.f32.mrf.mxu1 }
0x1115   :  { %v2289_v63 = vsel %vm566_vm3, %v2280_v62, -inf }
0x1116   :  { %2290 = vmax.xlane.f32.xlu0 %v2289_v63  ;;  %v4070_v2 = vpop.f32.mrf.mxu1 }
0x1118   :  { %v2283_v56 = vpop.f32.mrf.mxu1 }
0x111a   :  { %v4071_v3 = vpop.f32.mrf.mxu1 }
0x1197   :  { %v2288_v4 = vpop.xlane.xlu1 %2287 }
0x1198   :  { %v2292_v42 = vsub.f32 %v2234_v55, %v2288_v4 }
0x119a   :  { %v2294_v5 = vmul.f32 1.442695, %v2292_v42 }
0x119c   :  { %4424 = vpow2.f32 %v2294_v5 }
0x119f   :  { %v2291_v6 = vpop.xlane.xlu0 %2290 }
0x11a0   :  { %v2293_v7 = vsub.f32 %v2280_v62, %v2291_v6 }
0x11a2   :  { %v2296_v8 = vmul.f32 1.442695, %v2293_v7 }
0x11a4   :  { %4426 = vpow2.f32 %v2296_v8 }
0x11a9   :  { %v4425_v25 = vpop.eup %4424 }
0x11aa   :  { %v2298_v9 = vsel %vm566_vm3, %v4425_v25, 0.0 }
0x11ab   :  { %2299 = vadd.xlane.f32.xlu1 %v2298_v9 }
0x11b1   :  { %v4427_v37 = vpop.eup %4426 }
0x11b2   :  { %v2301_v46 = vsel %vm566_vm3, %v4427_v37, 0.0 }
0x11b3   :  { %2302 = vadd.xlane.f32.xlu0 %v2301_v46 }
0x11bc   :  { %2406 = vrot.lane.b32.xlu1 %v5030_v30, %s4629_s22 }
0x11c0   :  { %2403 = vrot.lane.b32.xlu1 %v5039_v53, %s4629_s22 }
0x11c4   :  { %2455 = vrot.lane.b32.xlu1 %v5050_v51, %s4629_s22 }
0x11c9   :  { %2458 = vrot.lane.b32.xlu0 %v5037_v33, %s4629_s22 }
0x1234   :  { %v2300_v50 = vpop.xlane.xlu1 %2299 }
0x1235   :  { %4428 = vrcp.f32 %v2300_v50 }
0x1238   :  { %v2407_v10 = vpop.permute.xlu1 %2406 }
0x1239   :  { %v2412_v43 = vsel %vm473_vm1, %v2407_v10, 0 }
0x123a   :  { %4085 = vmatpush3.bf16.xpose.msra.mxu0 %v2412_v43 }
0x123b   :  { %4096 = vmatprep.subr.bf16.mxu0 %v4627_v1 }
0x123c   :  { %v2303_v26 = vpop.xlane.xlu0 %2302  ;;  %v2404_v48 = vpop.permute.xlu1 %2403 }
0x123d   :  { %4430 = vrcp.f32 %v2303_v26 }
0x1240   :  { %v2459_v17 = vpop.permute.xlu0 %2458  ;;  %v2456_v20 = vpop.permute.xlu1 %2455 }
0x1241   :  { %4087 = vmatmul.mubr.msk.bf16.vlgmr.msra.gmra.mxu0 %vm473_vm1, %v2404_v48  ;;  %v2464_v19 = vsel %vm473_vm1, %v2459_v17, 0 }
0x1242   :  { %v4429_v27 = vpop.eup %4428  ;;  %4098 = vmatprep.mubr.msk.bf16.mxu0 %vm4628_vm0, %v4627_v1 }
0x1243   :  { %v2306_v52 = vmul.f32 %v4429_v27, %v4425_v25 }
0x1245   :  { %v2308_v12 = vpack.c.bf16 %v2306_v52, %v2306_v52 }
0x1247   :  { %4075 = vmatmul.mubr.msk.bf16.vlgmr.msra.gmra.mxu1 %vm566_vm3, %v2308_v12 }
0x1248   :  { %4079 = vmatpush3.bf16.msra.mxu1 %v2360_v13  ;;  %4080 = vmatprep.mubr.msk.bf16.mxu1 %vm4628_vm0, %v4627_v1 }
0x1249   :  { %4090 = vmatprep.subr.bf16.mxu1 %v4627_v1 }
0x124a   :  { %v4431_v58 = vpop.eup %4430 }
0x124b   :  { %v2307_v16 = vmul.f32 %v4431_v58, %v4427_v37 }
0x124d   :  { %v2309_v18 = vpack.c.bf16 %v2307_v16, %v2307_v16 }
0x124f   :  { %4081 = vmatmul.mubr.msk.bf16.vlgmr.msra.gmra.mxu1 %vm566_vm3, %v2309_v18 }
0x1250   :  { %4091 = vmatpush3.bf16.xpose.msra.mxu1 %v2464_v19  ;;  %4092 = vmatprep.mubr.msk.bf16.mxu1 %vm4628_vm0, %v4627_v1 }
0x1251   :  { %4102 = vmatprep.subr.bf16.mxu1 %v4627_v1 }
0x1257   :  { %4093 = vmatmul.mubr.msk.bf16.vlgmr.msra.gmra.mxu1 %vm473_vm1, %v2456_v20 }
0x1258   :  { %4104 = vmatprep.mubr.msk.bf16.mxu1 %vm4628_vm0, %v4627_v1 }
0x1301   :  { %v2448_v49 = vpop.f32.mrf.mxu0 }
0x1302   :  { %v2506_v21 = vsel %vm566_vm3, %v2448_v49, -inf }
0x1303   :  { %2507 = vmax.xlane.f32.xlu1 %v2506_v21  ;;  %v4088_v22 = vpop.f32.mrf.mxu0 }
0x1305   :  { %v2451_v23 = vpop.f32.mrf.mxu0 }
0x1307   :  { %v5095_v24 = vpop.f32.mrf.mxu1  ;;  %v4089_v28 = vpop.f32.mrf.mxu0 }
0x1309   :  { %v4076_v29 = vpop.f32.mrf.mxu1 }
0x130b   :  { %v2353_v31 = vpop.f32.mrf.mxu1 }
0x130d   :  { %v4077_v32 = vpop.f32.mrf.mxu1 }
0x130f   :  { %v5097_v35 = vpop.f32.mrf.mxu1 }
0x1311   :  { %v4082_v36 = vpop.f32.mrf.mxu1 }
0x1313   :  { %v2399_v39 = vpop.f32.mrf.mxu1 }
0x1314   :  { %2531 = vrot.lane.b32.xlu1 %v5048_v47, %s4629_s22 }
0x1315   :  { %v4083_v40 = vpop.f32.mrf.mxu1 }
0x1317   :  { %v2500_v41 = vpop.f32.mrf.mxu1 }
0x1318   :  { %2630 = vrot.lane.b32.xlu1 %v5030_v30, %s4616_s21  ;;  %v2509_v44 = vsel %vm566_vm3, %v2500_v41, -inf }
0x1319   :  { %2510 = vmax.xlane.f32.xlu0 %v2509_v44  ;;  %v4094_v45 = vpop.f32.mrf.mxu1 }
0x131b   :  { %v2503_v54 = vpop.f32.mrf.mxu1 }
0x131c   :  { %2680 = vrot.lane.b32.xlu1 %v5037_v33, %s4616_s21 }
0x131d   :  { %v4095_v55 = vpop.f32.mrf.mxu1 }
0x1320   :  { %2628 = vrot.lane.b32.xlu1 %v5039_v53, %s4616_s21 }
0x138c   :  { %v2508_v57 = vpop.xlane.xlu1 %2507 }
0x138d   :  { %v2512_v59 = vsub.f32 %v2448_v49, %v2508_v57 }
0x138f   :  { %v2514_v60 = vmul.f32 1.442695, %v2512_v59 }
0x1390   :  { %v2532_v61 = vpop.permute.xlu1 %2531 }
0x1391   :  { %4432 = vpow2.f32 %v2514_v60  ;;  %v2537_v62 = vsel %vm594_vm2, %v2532_v61, 0 }
0x1392   :  { %4097 = vmatpush3.bf16.msra.mxu0 %v2537_v62 }
0x1393   :  { %4108 = vmatprep.subr.bf16.mxu0 %v4627_v1 }
0x1394   :  { %v2631_v8 = vpop.permute.xlu1 %2630 }
0x1395   :  { %v2636_v37 = vsel %vm473_vm1, %v2631_v8, 0 }
0x1398   :  { %v2681_v46 = vpop.permute.xlu1 %2680 }
0x1399   :  { %v2686_v12 = vsel %vm473_vm1, %v2681_v46, 0 }
0x139c   :  { %v2629_v10 = vpop.permute.xlu1 %2628 }
0x139e   :  { %v4433_v63 = vpop.eup %4432 }
0x139f   :  { %v2518_v2 = vsel %vm566_vm3, %v4433_v63, 0.0 }
0x13a0   :  { %2519 = vadd.xlane.f32.xlu0 %v2518_v2 }
0x13a2   :  { %v2511_v56 = vpop.xlane.xlu0 %2510 }
0x13a3   :  { %v2513_v3 = vsub.f32 %v2500_v41, %v2511_v56 }
0x13a5   :  { %v2516_v4 = vmul.f32 1.442695, %v2513_v3 }
0x13a7   :  { %4434 = vpow2.f32 %v2516_v4 }
0x13b4   :  { %v4435_v42 = vpop.eup %4434 }
0x13b5   :  { %v2521_v5 = vsel %vm566_vm3, %v4435_v42, 0.0 }
0x13b6   :  { %2522 = vadd.xlane.f32.xlu0 %v2521_v5 }
0x13cc   :  { %2580 = vrot.lane.b32.xlu0 %v5078_v11, %s4629_s22 }
0x13d0   :  { %2678 = vrot.lane.b32.xlu0 %v5050_v51, %s4616_s21 }
0x1429   :  { %v2520_v6 = vpop.xlane.xlu0 %2519 }
0x142a   :  { %4436 = vrcp.f32 %v2520_v6 }
0x1437   :  { %v4437_v7 = vpop.eup %4436 }
0x1438   :  { %v2526_v25 = vmul.f32 %v4437_v7, %v4433_v63 }
0x143a   :  { %v2528_v9 = vpack.c.bf16 %v2526_v25, %v2526_v25 }
0x143c   :  { %4099 = vmatmul.mubr.msk.bf16.vlgmr.msra.gmra.mxu0 %vm566_vm3, %v2528_v9 }
0x143d   :  { %4109 = vmatpush3.bf16.xpose.msra.mxu0 %v2636_v37  ;;  %4110 = vmatprep.mubr.msk.bf16.mxu0 %vm4628_vm0, %v4627_v1 }
0x143e   :  { %4120 = vmatprep.subr.bf16.mxu0 %v4627_v1 }
0x143f   :  { %v2523_v50 = vpop.xlane.xlu0 %2522 }
0x1440   :  { %4438 = vrcp.f32 %v2523_v50 }
0x1443   :  { %v2581_v43 = vpop.permute.xlu0 %2580 }
0x1444   :  { %v2586_v26 = vsel %vm594_vm2, %v2581_v43, 0  ;;  %4111 = vmatmul.mubr.msk.bf16.vlgmr.msra.gmra.mxu0 %vm473_vm1, %v2629_v10 }
0x1445   :  { %4103 = vmatpush3.bf16.msra.mxu1 %v2586_v26  ;;  %4122 = vmatprep.mubr.msk.bf16.mxu0 %vm4628_vm0, %v4627_v1 }
0x1446   :  { %4114 = vmatprep.subr.bf16.mxu1 %v4627_v1 }
0x1447   :  { %v2679_v13 = vpop.permute.xlu0 %2678 }
0x144d   :  { %v4439_v48 = vpop.eup %4438 }
0x144e   :  { %v2527_v27 = vmul.f32 %v4439_v48, %v4435_v42 }
0x1450   :  { %v2529_v52 = vpack.c.bf16 %v2527_v27, %v2527_v27 }
0x1452   :  { %4105 = vmatmul.mubr.msk.bf16.vlgmr.msra.gmra.mxu1 %vm566_vm3, %v2529_v52 }
0x1453   :  { %4115 = vmatpush3.bf16.xpose.msra.mxu1 %v2686_v12  ;;  %4116 = vmatprep.mubr.msk.bf16.mxu1 %vm4628_vm0, %v4627_v1 }
0x1454   :  { %4126 = vmatprep.subr.bf16.mxu1 %v4627_v1 }
0x145a   :  { %4117 = vmatmul.mubr.msk.bf16.vlgmr.msra.gmra.mxu1 %vm473_vm1, %v2679_v13 }
0x145b   :  { %4128 = vmatprep.mubr.msk.bf16.mxu1 %vm4628_vm0, %v4627_v1 }
0x14fc   :  { %v5134_v58 = vpop.f32.mrf.mxu0 }
0x14fe   :  { %v4100_v16 = vpop.f32.mrf.mxu0 }
0x1500   :  { %v2576_v17 = vpop.f32.mrf.mxu0 }
0x1502   :  { %v4101_v18 = vpop.f32.mrf.mxu0 }
0x1504   :  { %v2672_v19 = vpop.f32.mrf.mxu0 }
0x1505   :  { %v2728_v20 = vsel %vm566_vm3, %v2672_v19, -inf }
0x1506   :  { %2729 = vmax.xlane.f32.xlu1 %v2728_v20  ;;  %v4112_v49 = vpop.f32.mrf.mxu0 }
0x1508   :  { %v2675_v21 = vpop.f32.mrf.mxu0 }
0x150a   :  { %v4113_v22 = vpop.f32.mrf.mxu0 }
0x1512   :  { %v5137_v23 = vpop.f32.mrf.mxu1 }
0x1513   :  { %v4209_v28 = vpack.i.bf16 %v5137_v23, %v5134_v58 }
0x1514   :  { %v4106_v29 = vpop.f32.mrf.mxu1 }
0x1516   :  { %v2625_v31 = vpop.f32.mrf.mxu1 }
0x1517   :  { %2752 = vrot.lane.b32.xlu1 %v5048_v47, %s4616_s21 }
0x1518   :  { %v4107_v32 = vpop.f32.mrf.mxu1 }
0x151a   :  { %v2722_v36 = vpop.f32.mrf.mxu1 }
0x151b   :  { %2850 = vrot.lane.b32.xlu1 %v5030_v30, %s4630_s15  ;;  %v2731_v39 = vsel %vm566_vm3, %v2722_v36, -inf }
0x151c   :  { %2732 = vmax.xlane.f32.xlu0 %v2731_v39  ;;  %v4118_v40 = vpop.f32.mrf.mxu1 }
0x151e   :  { %v2725_v41 = vpop.f32.mrf.mxu1 }
0x151f   :  { %2900 = vrot.lane.b32.xlu1 %v5037_v33, %s4630_s15 }
0x1520   :  { %v4119_v44 = vpop.f32.mrf.mxu1 }
0x1523   :  { %2848 = vrot.lane.b32.xlu1 %v5039_v53, %s4630_s15 }
0x158f   :  { %v2730_v45 = vpop.xlane.xlu1 %2729 }
0x1590   :  { %v2734_v54 = vsub.f32 %v2672_v19, %v2730_v45 }
0x1592   :  { %v2736_v55 = vmul.f32 1.442695, %v2734_v54 }
0x1593   :  { %v2753_v57 = vpop.permute.xlu1 %2752 }
0x1594   :  { %4440 = vpow2.f32 %v2736_v55  ;;  %v2758_v59 = vsel %vm594_vm2, %v2753_v57, 0 }
0x1595   :  { %4121 = vmatpush3.bf16.msra.mxu0 %v2758_v59 }
0x1596   :  { %4132 = vmatprep.subr.bf16.mxu0 %v4627_v1 }
0x1597   :  { %v2851_v3 = vpop.permute.xlu1 %2850 }
0x1598   :  { %v2856_v5 = vsel %vm473_vm1, %v2851_v3, 0  ;;  %v4337_v3 = vld [vmem:[#allocation8 + $0x70] sm:$0xff]  }
0x159b   :  { %v2901_v6 = vpop.permute.xlu1 %2900 }
0x159c   :  { %v2906_v50 = vsel %vm473_vm1, %v2901_v6, 0  ;;  %v4341_v6 = vld [vmem:[#allocation8 + $0x50] sm:$0xff]  }
0x15a1   :  { %v4441_v30 = vpop.eup %4440 }
0x15a2   :  { %v2740_v60 = vsel %vm566_vm3, %v4441_v30, 0.0 }
0x15a3   :  { %2741 = vadd.xlane.f32.xlu0 %v2740_v60 }
0x15a5   :  { %v2733_v61 = vpop.xlane.xlu0 %2732 }
0x15a6   :  { %v2735_v33 = vsub.f32 %v2722_v36, %v2733_v61 }
0x15a8   :  { %v2738_v62 = vmul.f32 1.442695, %v2735_v33 }
0x15aa   :  { %4442 = vpow2.f32 %v2738_v62 }
0x15b7   :  { %v4443_v63 = vpop.eup %4442 }
0x15b8   :  { %v2743_v53 = vsel %vm566_vm3, %v4443_v63, 0.0 }
0x15b9   :  { %2744 = vadd.xlane.f32.xlu0 %v2743_v53 }
0x15cf   :  { %2800 = vrot.lane.b32.xlu0 %v5078_v11, %s4616_s21 }
0x15d3   :  { %2898 = vrot.lane.b32.xlu0 %v5050_v51, %s4630_s15  ;;  %v2849_v51 = vpop.permute.xlu1 %2848 }
0x162c   :  { %v2742_v2 = vpop.xlane.xlu0 %2741 }
0x162d   :  { %4444 = vrcp.f32 %v2742_v2 }
0x163a   :  { %v4445_v56 = vpop.eup %4444 }
0x163b   :  { %v2748_v4 = vmul.f32 %v4445_v56, %v4441_v30 }
0x163d   :  { %v2750_v42 = vpack.c.bf16 %v2748_v4, %v2748_v4  ;;  %v4338_v4 = vld [vmem:[#allocation8 + $0x68] sm:$0xff]  }
0x163f   :  { %4123 = vmatmul.mubr.msk.bf16.vlgmr.msra.gmra.mxu0 %vm566_vm3, %v2750_v42  ;;  %v4339_v42 = vld [vmem:[#allocation8 + $0x60] sm:$0xff]  }
0x1640   :  { %4133 = vmatpush3.bf16.xpose.msra.mxu0 %v2856_v5  ;;  %4134 = vmatprep.mubr.msk.bf16.mxu0 %vm4628_vm0, %v4627_v1  ;;  %v4340_v5 = vld [vmem:[#allocation8 + $0x58] sm:$0xff]  }
0x1641   :  { %4144 = vmatprep.subr.bf16.mxu0 %v4627_v1 }
0x1642   :  { %v2745_v7 = vpop.xlane.xlu0 %2744 }
0x1643   :  { %4446 = vrcp.f32 %v2745_v7 }
0x1646   :  { %v2801_v8 = vpop.permute.xlu0 %2800 }
0x1647   :  { %v2806_v25 = vsel %vm594_vm2, %v2801_v8, 0  ;;  %4135 = vmatmul.mubr.msk.bf16.vlgmr.msra.gmra.mxu0 %vm473_vm1, %v2849_v51 }
0x1648   :  { %4127 = vmatpush3.bf16.msra.mxu1 %v2806_v25  ;;  %4146 = vmatprep.mubr.msk.bf16.mxu0 %vm4628_vm0, %v4627_v1 }
0x1649   :  { %4138 = vmatprep.subr.bf16.mxu1 %v4627_v1 }
0x164a   :  { %v2899_v10 = vpop.permute.xlu0 %2898 }
0x1650   :  { %v4447_v9 = vpop.eup %4446 }
0x1651   :  { %v2749_v37 = vmul.f32 %v4447_v9, %v4443_v63  ;;  %v4343_v9 = vld [vmem:[#allocation8 + $0x40] sm:$0xff]  }
0x1653   :  { %v2751_v46 = vpack.c.bf16 %v2749_v37, %v2749_v37 }
0x1655   :  { %4129 = vmatmul.mubr.msk.bf16.vlgmr.msra.gmra.mxu1 %vm566_vm3, %v2751_v46 }
0x1656   :  { %4139 = vmatpush3.bf16.xpose.msra.mxu1 %v2906_v50  ;;  %4140 = vmatprep.mubr.msk.bf16.mxu1 %vm4628_vm0, %v4627_v1 }
0x1657   :  { %4150 = vmatprep.subr.bf16.mxu1 %v4627_v1 }
0x165d   :  { %4141 = vmatmul.mubr.msk.bf16.vlgmr.msra.gmra.mxu1 %vm473_vm1, %v2899_v10 }
0x165e   :  { %4152 = vmatprep.mubr.msk.bf16.mxu1 %vm4628_vm0, %v4627_v1 }
0x16ff   :  { %v2794_v43 = vpop.f32.mrf.mxu0 }
0x1701   :  { %v4124_v26 = vpop.f32.mrf.mxu0 }
0x1703   :  { %v2797_v48 = vpop.f32.mrf.mxu0 }
0x1705   :  { %v4125_v27 = vpop.f32.mrf.mxu0 }
0x1707   :  { %v2892_v52 = vpop.f32.mrf.mxu0 }
0x1708   :  { %v2948_v12 = vsel %vm566_vm3, %v2892_v52, -inf }
0x1709   :  { %2949 = vmax.xlane.f32.xlu1 %v2948_v12  ;;  %v4136_v13 = vpop.f32.mrf.mxu0 }
0x170b   :  { %v2895_v16 = vpop.f32.mrf.mxu0 }
0x170d   :  { %v4137_v17 = vpop.f32.mrf.mxu0 }
0x1715   :  { %v2842_v18 = vpop.f32.mrf.mxu1 }
0x1716   :  { %v4214_v31 = vpack.i.bf16 %v2842_v18, %v2794_v43 }
0x1717   :  { %v4130_v19 = vpop.f32.mrf.mxu1 }
0x1719   :  { %v2845_v20 = vpop.f32.mrf.mxu1 }
0x171a   :  { %2972 = vrot.lane.b32.xlu1 %v5048_v47, %s4630_s15 }
0x171b   :  { %v4131_v49 = vpop.f32.mrf.mxu1 }
0x171d   :  { %v2942_v21 = vpop.f32.mrf.mxu1 }
0x171e   :  { %4210 = vrot.lane.b32.xlu1 %v4209_v28, %s4630_s15  ;;  %v2951_v22 = vsel %vm566_vm3, %v2942_v21, -inf }
0x171f   :  { %2952 = vmax.xlane.f32.xlu0 %v2951_v22  ;;  %v4142_v29 = vpop.f32.mrf.mxu1 }
0x1721   :  { %v2945_v32 = vpop.f32.mrf.mxu1 }
0x1722   :  { %4215 = vrot.lane.b32.xlu1 %v4214_v31, %s4616_s21  ;;  %v3714_v31 = vld [vmem:[%s5262_s8 + $0x1] ss:$0 sm:$0xff] }
0x1723   :  { %v4143_v36 = vpop.f32.mrf.mxu1 }
0x1792   :  { %v2950_v39 = vpop.xlane.xlu1 %2949 }
0x1793   :  { %v2954_v40 = vsub.f32 %v2892_v52, %v2950_v39 }
0x1795   :  { %v2956_v41 = vmul.f32 1.442695, %v2954_v40 }
0x1796   :  { %v2973_v47 = vpop.permute.xlu1 %2972 }
0x1797   :  { %4448 = vpow2.f32 %v2956_v41  ;;  %v2978_v44 = vsel %vm594_vm2, %v2973_v47, 0 }
0x1798   :  { %4145 = vmatpush3.bf16.msra.mxu0 %v2978_v44  ;;  %v4344_v44 = vld [vmem:[#allocation10 + $0xf0] ss:$8 sps:$4 sm:$0xff]  }
0x1799   :  { %4156 = vmatprep.subr.bf16.mxu0 %v4627_v1 }
0x179a   :  { %v4211_v26 = vpop.permute.xlu1 %4210 }
0x179b   :  { %v4213_v27 = vunpack.i.h.bf16 %v4211_v26  ;;  %v4212_v52 = vunpack.i.l.bf16 %v4211_v26 }
0x179d   :  { %v3093_v16 = vsel %vm473_vm1, %v5097_v35, %v4213_v27  ;;  %v3092_v17 = vsel %vm473_vm1, %v5095_v24, %v4212_v52 }
0x179e   :  { %v4216_v48 = vpop.permute.xlu1 %4215 }
0x179f   :  { %v4218_v12 = vunpack.i.h.bf16 %v4216_v48  ;;  %v4217_v13 = vunpack.i.l.bf16 %v4216_v48 }
0x17a1   :  { %v3095_v20 = vsel %vm1376_vm4, %v3093_v16, %v4218_v12  ;;  %v3094_v49 = vsel %vm1376_vm4, %v3092_v17, %v4217_v13  ;;  %v3723_v13 = vld [vmem:[%s5263_s9 + $0x1] ss:$0 sm:$0xff] }
0x17a4   :  { %v4449_v58 = vpop.eup %4448 }
0x17a5   :  { %v2960_v23 = vsel %vm566_vm3, %v4449_v58, 0.0 }
0x17a6   :  { %2961 = vadd.xlane.f32.xlu0 %v2960_v23 }
0x17a8   :  { %v2953_v28 = vpop.xlane.xlu0 %2952 }
0x17a9   :  { %v2955_v45 = vsub.f32 %v2942_v21, %v2953_v28 }
0x17ab   :  { %v2958_v54 = vmul.f32 1.442695, %v2955_v45 }
0x17ad   :  { %4450 = vpow2.f32 %v2958_v54 }
0x17ba   :  { %v4451_v55 = vpop.eup %4450 }
0x17bb   :  { %v2963_v57 = vsel %vm566_vm3, %v4451_v55, 0.0 }
0x17bc   :  { %2964 = vadd.xlane.f32.xlu0 %v2963_v57 }
0x17d2   :  { %3020 = vrot.lane.b32.xlu0 %v5078_v11, %s4630_s15  ;;  %v4336_v11 = vld [vmem:[#allocation8 + $0x78] sm:$0xff]  }
0x182f   :  { %v2962_v59 = vpop.xlane.xlu0 %2961 }
0x1830   :  { %4452 = vrcp.f32 %v2962_v59  ;;  %v4349_v59 = vld [vmem:[#allocation10 + $0xe4] ss:$8 sps:$4 sm:$0xff]  }
0x183d   :  { %v4453_v30 = vpop.eup %4452 }
0x183e   :  { %v2968_v60 = vmul.f32 %v4453_v30, %v4449_v58  ;;  %v4346_v58 = vld [vmem:[#allocation10 + $0xf4] ss:$8 sps:$4 sm:$0xff]   ;;  %v4347_v30 = vld [vmem:[#allocation10 + $0xe0] ss:$8 sps:$4 sm:$0xff]  }
0x1840   :  { %v2970_v61 = vpack.c.bf16 %v2968_v60, %v2968_v60  ;;  %v4352_v60 = vld [vmem:[#allocation10 + $0xd4] ss:$8 sps:$4 sm:$0xff]  }
0x1842   :  { %4147 = vmatmul.mubr.msk.bf16.vlgmr.msra.gmra.mxu0 %vm566_vm3, %v2970_v61  ;;  %v4350_v61 = vld [vmem:[#allocation10 + $0xd0] ss:$8 sps:$4 sm:$0xff]  }
0x1843   :  { %4172 = vmatprep.mubr.msk.bf16.mxu0 %vm4628_vm0, %v4627_v1  ;;  %4157 = vmatpush3.bf16.msra.mxu0 %v4336_v11  ;;  %v4364_v11 = vld [vmem:[#allocation10 + $0x94] ss:$8 sps:$4 sm:$0xff]  }
0x1844   :  { %4158 = vmatprep.subr.bf16.mxu0 %v4627_v1 }
0x1845   :  { %v2965_v33 = vpop.xlane.xlu0 %2964 }
0x1846   :  { %4454 = vrcp.f32 %v2965_v33  ;;  %v4353_v33 = vld [vmem:[#allocation10 + $0xc0] ss:$8 sps:$4 sm:$0xff]  }
0x1847   :  { %4159 = vmatpush3.bf16.msra.mxu0 %v4337_v3  ;;  %v4362_v3 = vld [vmem:[#allocation10 + $0x90] ss:$8 sps:$4 sm:$0xff]  }
0x1848   :  { %4160 = vmatprep.subr.bf16.mxu0 %v4627_v1 }
0x1849   :  { %v3021_v62 = vpop.permute.xlu0 %3020 }
0x184a   :  { %v3026_v63 = vsel %vm594_vm2, %v3021_v62, 0  ;;  %v4355_v62 = vld [vmem:[#allocation10 + $0xc4] ss:$8 sps:$4 sm:$0xff]  }
0x184b   :  { %4151 = vmatpush3.bf16.msra.mxu1 %v3026_v63  ;;  %4161 = vmatpush3.bf16.msra.mxu0 %v4338_v4  ;;  %v4358_v63 = vld [vmem:[#allocation10 + $0xb4] ss:$8 sps:$4 sm:$0xff]   ;;  %v4367_v4 = vld [vmem:[#allocation10 + $0x84] ss:$8 sps:$4 sm:$0xff]  }
0x184c   :  { %4162 = vmatprep.subr.bf16.mxu0 %v4627_v1  ;;  %3326 = vmatprep.subr.bf16.mxu1 %v4346_v58 }
0x184f   :  { %4163 = vmatpush3.bf16.msra.mxu0 %v4339_v42  ;;  %v4365_v42 = vld [vmem:[#allocation10 + $0x80] ss:$8 sps:$4 sm:$0xff]  }
0x1850   :  { %4164 = vmatprep.subr.bf16.mxu0 %v4627_v1 }
0x1853   :  { %v4455_v53 = vpop.eup %4454  ;;  %4165 = vmatpush3.bf16.msra.mxu0 %v4340_v5  ;;  %v4368_v5 = vld [vmem:[#allocation11 + $0xf8] sm:$0xff]  }
0x1854   :  { %v2969_v2 = vmul.f32 %v4455_v53, %v4451_v55  ;;  %4166 = vmatprep.subr.bf16.mxu0 %v4627_v1  ;;  %v4356_v53 = vld [vmem:[#allocation10 + $0xb0] ss:$8 sps:$4 sm:$0xff]  }
0x1856   :  { %v2971_v56 = vpack.c.bf16 %v2969_v2, %v2969_v2  ;;  %v4361_v2 = vld [vmem:[#allocation10 + $0xa4] ss:$8 sps:$4 sm:$0xff]  }
0x1857   :  { %4167 = vmatpush3.bf16.msra.mxu0 %v4341_v6  ;;  %v4369_v6 = vld [vmem:[#allocation11 + $0xb8] sm:$0xff]  }
0x1858   :  { %4153 = vmatmul.mubr.msk.bf16.vlgmr.msra.gmra.mxu1 %vm566_vm3, %v2971_v56  ;;  %4168 = vmatprep.subr.bf16.mxu0 %v4627_v1  ;;  %v4359_v56 = vld [vmem:[#allocation10 + $0xa0] ss:$8 sps:$4 sm:$0xff]  }
0x1859   :  { %3358 = vmatprep.mubr.bf16.mxu1 %v4626_v0  ;;  %v4342_v0 = vld [vmem:[#allocation8 + $0x48] sm:$0xff]   ;;  %3327 = vmatpush1.bf16.msra.mxu1 %v4344_v44 }
0x185a   :  { %3328 = vmatprep.subr.bf16.mxu1 %v4349_v59 }
0x185b   :  { %4169 = vmatpush3.bf16.msra.mxu0 %v4342_v0  ;;  %v4370_v0 = vld [vmem:[#allocation11 + $0xf0] sm:$0xff]  }
0x185c   :  { %4170 = vmatprep.subr.bf16.mxu0 %v4627_v1 }
0x185d   :  { %3329 = vmatpush1.bf16.msra.mxu1 %v4347_v30 }
0x185e   :  { %3330 = vmatprep.subr.bf16.mxu1 %v4352_v60 }
0x185f   :  { %4171 = vmatpush3.bf16.msra.mxu0 %v4343_v9  ;;  %v4375_v9 = vld [vmem:[#allocation11 + $0xa0] sm:$0xff]  }
0x1860   :  { %3882 = vmatprep.subr.bf16.mxu0 %v4368_v5 }
0x1861   :  { %3331 = vmatpush1.bf16.msra.mxu1 %v4350_v61 }
0x1862   :  { %3332 = vmatprep.subr.bf16.mxu1 %v4355_v62 }
0x1865   :  { %3333 = vmatpush1.bf16.msra.mxu1 %v4353_v33 }
0x1866   :  { %3334 = vmatprep.subr.bf16.mxu1 %v4358_v63 }
0x1869   :  { %3335 = vmatpush1.bf16.msra.mxu1 %v4356_v53 }
0x186a   :  { %3336 = vmatprep.subr.bf16.mxu1 %v4361_v2 }
0x186d   :  { %3337 = vmatpush1.bf16.msra.mxu1 %v4359_v56 }
0x186e   :  { %3338 = vmatprep.subr.bf16.mxu1 %v4364_v11 }
0x1871   :  { %3339 = vmatpush1.bf16.msra.mxu1 %v4362_v3 }
0x1872   :  { %3340 = vmatprep.subr.bf16.mxu1 %v4367_v4 }
0x1875   :  { %3341 = vmatpush1.bf16.msra.mxu1 %v4365_v42 }
0x1902   :  { %v3014_v7 = vpop.f32.mrf.mxu0 }
0x1904   :  { %v4148_v51 = vpop.f32.mrf.mxu0 }
0x1905   :  { %v4372_v51 = vld [vmem:[#allocation11 + $0xe8] sm:$0xff]  }
0x1906   :  { %v3017_v8 = vpop.f32.mrf.mxu0 }
0x1907   :  { %v4373_v8 = vld [vmem:[#allocation11 + $0xa8] sm:$0xff]  }
0x1908   :  { %v4149_v25 = vpop.f32.mrf.mxu0 }
0x1909   :  { %v4374_v25 = vld [vmem:[#allocation11 + $0xe0] sm:$0xff]  }
0x1918   :  { %v3062_v37 = vpop.f32.mrf.mxu1 }
0x1919   :  { %v4219_v46 = vpack.i.bf16 %v3062_v37, %v3014_v7  ;;  %v4371_v7 = vld [vmem:[#allocation11 + $0xb0] sm:$0xff]   ;;  %v4376_v37 = vld [vmem:[#allocation11 + $0xd8] sm:$0xff]  }
0x191a   :  { %v4154_v50 = vpop.f32.mrf.mxu1 }
0x191b   :  { %4220 = vrot.lane.b32.xlu1 %v4219_v46, %s4629_s22  ;;  %v4377_v46 = vld [vmem:[#allocation11 + $0x98] sm:$0xff]  }
0x191c   :  { %v3065_v10 = vpop.f32.mrf.mxu1 }
0x191e   :  { %v4155_v43 = vpop.f32.mrf.mxu1 }
0x198d   :  { %v4221_v1 = vpop.permute.xlu1 %4220 }
0x198e   :  { %v4223_v18 = vunpack.i.h.bf16 %v4221_v1  ;;  %v4222_v19 = vunpack.i.l.bf16 %v4221_v1 }
0x1990   :  { %v3097_v21 = vsel %vm1379_vm5, %v3095_v20, %v4223_v18  ;;  %v3096_v22 = vsel %vm1379_vm5, %v3094_v49, %v4222_v19  ;;  %v3724_v18 = vld [vmem:[%s5264_s10 + $0x1] ss:$0 sm:$0xff] }
0x1991   :  { %v3098_v29 = vpack.c.bf16 %v3097_v21, %v3096_v22  ;;  %v4378_v22 = vld [vmem:[#allocation11 + $0xd0] sm:$0xff]  }
0x1993   :  { %4173 = vmatmul.mubr.bf16.vlgmr.msra.gmra.mxu0 %v3098_v29  ;;  %v4379_v29 = vld [vmem:[#allocation11 + $0x90] sm:$0xff]  }
0x1994   :  { %3883 = vmatpush3.bf16.msra.mxu0 %v4369_v6 }
0x1995   :  { %3884 = vmatprep.subr.bf16.mxu0 %v4370_v0 }
0x1998   :  { %3885 = vmatpush3.bf16.msra.mxu0 %v4371_v7 }
0x1999   :  { %3886 = vmatprep.subr.bf16.mxu0 %v4372_v51 }
0x199c   :  { %3887 = vmatpush3.bf16.msra.mxu0 %v4373_v8 }
0x199d   :  { %3888 = vmatprep.subr.bf16.mxu0 %v4374_v25 }
0x19a0   :  { %3889 = vmatpush3.bf16.msra.mxu0 %v4375_v9 }
0x19a1   :  { %3890 = vmatprep.subr.bf16.mxu0 %v4376_v37 }
0x19a4   :  { %3891 = vmatpush3.bf16.msra.mxu0 %v4377_v46 }
0x19a5   :  { %3892 = vmatprep.subr.bf16.mxu0 %v4378_v22 }
0x19a8   :  { %3893 = vmatpush3.bf16.msra.mxu0 %v4379_v29 }
0x1a53   :  { %v3187_v35 = vpop.f32.mrf.mxu0 }
0x1a54   :  { %v3188_v32 = vadd.f32 %v3714_v31, %v3187_v35  ;;  %v4381_v35 = vld [vmem:[#allocation11 + $0x88] sm:$0xff]  }
0x1a55   :  { %v4174_v36 = vpop.f32.mrf.mxu0 }
0x1a56   :  { %v3194_v24 = vadd.f32 %v3188_v32, %v5013_v14  ;;  %v4382_v32 = vld [vmem:[#allocation11 + $0xc0] sm:$0xff]  }
0x1a57   :  { %v3190_v39 = vpop.f32.mrf.mxu0  ;;  %v4383_v36 = vld [vmem:[#allocation11 + $0x80] sm:$0xff]  }
0x1a58   :  { %v3191_v40 = vadd.f32 %v3714_v31, %v3190_v39  ;;  %3196 = vadd.xlane.f32.xlu0 %v3194_v24  ;;  %v4380_v31 = vld [vmem:[#allocation11 + $0xc8] sm:$0xff]  }
0x1a59   :  { %v4175_v41 = vpop.f32.mrf.mxu0  ;;  %3894 = vmatprep.subr.bf16.mxu0 %v4380_v31 }
0x1a5a   :  { %v3195_v47 = vadd.f32 %v3191_v40, %v5015_v15  ;;  %3895 = vmatpush3.bf16.msra.mxu0 %v4381_v35 }
0x1a5b   :  { %3896 = vmatprep.subr.bf16.mxu0 %v4382_v32 }
0x1a5c   :  { %3198 = vadd.xlane.f32.xlu1 %v3195_v47 }
0x1a5e   :  { %3897 = vmatpush3.bf16.msra.mxu0 %v4383_v36 }
0x1ae1   :  { %v3197_v23 = vpop.xlane.xlu0 %3196 }
0x1ae2   :  { %v3200_v28 = vmul.f32 0.0078125, %v3197_v23 }
0x1ae4   :  { %v5218_v45 = vsub.f32 %v3194_v24, %v3200_v28  ;;  %v3667_v24 = vld [vmem:[%s5261_s7 + $0x2] sm:$0x3] }
0x1ae5   :  { %v3199_v54 = vpop.xlane.xlu1 %3198  ;;  %v3243_v40 = vrot.slane %v3667_v24, %v4763_v34  ;;  %v3239_v41 = vrot.slane %v3667_v24, %v4770_v38  ;;  %v3741_v34 = vld [vmem:[%s5265_s11 + $0x1] ss:$0 sm:$0xff] }
0x1ae6   :  { %v3201_v55 = vmul.f32 0.0078125, %v3199_v54  ;;  %v3204_v14 = vmul.f32 %v5218_v45, %v5218_v45 }
0x1ae8   :  { %v5222_v57 = vsub.f32 %v3195_v47, %v3201_v55  ;;  %3206 = vadd.xlane.f32.xlu0 %v3204_v14 }
0x1aea   :  { %v3205_v15 = vmul.f32 %v5222_v57, %v5222_v57 }
0x1aec   :  { %3208 = vadd.xlane.f32.xlu0 %v3205_v15 }
0x1b71   :  { %v3207_v50 = vpop.xlane.xlu0 %3206 }
0x1b72   :  { %v3210_v10 = vmul.f32 0.0078125, %v3207_v50 }
0x1b74   :  { %v3212_v43 = vadd.f32 1e-05, %v3210_v10 }
0x1b75   :  { %v3209_v26 = vpop.xlane.xlu0 %3208 }
0x1b76   :  { %4456 = vrsqrt.f32 %v3212_v43  ;;  %v3211_v48 = vmul.f32 0.0078125, %v3209_v26  ;;  %v3758_v43 = vld [vmem:[%s5266_s12 + $0x1] ss:$0 sm:$0xff] }
0x1b78   :  { %v3213_v27 = vadd.f32 1e-05, %v3211_v48  ;;  %v3759_v48 = vld [vmem:[%s5267_s13 + $0x1] ss:$0 sm:$0xff] }
0x1b7a   :  { %4458 = vrsqrt.f32 %v3213_v27 }
0x1b83   :  { %v4457_v52 = vpop.eup %4456 }
0x1b84   :  { %v3216_v12 = vmul.f32 %v4457_v52, %v5218_v45 }
0x1b86   :  { %v3224_v17 = vmul.f32 %v3723_v13, %v3216_v12 }
0x1b87   :  { %v4459_v1 = vpop.eup %4458 }
0x1b88   :  { %v3217_v16 = vmul.f32 %v4459_v1, %v5222_v57  ;;  %v3232_v20 = vadd.f32 %v3724_v18, %v3224_v17 }
0x1b8a   :  { %v3225_v19 = vmul.f32 %v3723_v13, %v3217_v16 }
0x1b8c   :  { %v3233_v49 = vadd.f32 %v3724_v18, %v3225_v19 }
0x1b8e   :  { %v3234_v21 = vpack.c.bf16 %v3233_v49, %v3232_v20 }
0x1b90   :  { %3359 = vmatmul.mubr.bf16.vlgmr.msra.gmra.mxu1 %v3234_v21 }
0x1c50   :  { %v3360_v39 = vpop.f32.mrf.mxu1 }
0x1c51   :  { %v3361_v28 = vadd.f32 %v3360_v39, %v3239_v41 }
0x1c52   :  { %v3362_v47 = vpop.f32.mrf.mxu1 }
0x1c53   :  { %v3363_v58 = vadd.f32 %v3362_v47, %v3243_v40  ;;  %v3369_v15 = vmax.f32 %v3361_v28, 0.0 }
0x1c54   :  { %v3364_v44 = vpop.f32.mrf.mxu1 }
0x1c55   :  { %v3365_v23 = vadd.f32 %v3364_v44, %v3239_v41  ;;  %v3370_v14 = vmax.f32 %v3363_v58, 0.0 }
0x1c56   :  { %v3366_v45 = vpop.f32.mrf.mxu1 }
0x1c57   :  { %v3367_v54 = vadd.f32 %v3366_v45, %v3243_v40  ;;  %v3371_v55 = vmax.f32 %v3365_v23, 0.0 }
0x1c59   :  { %v3372_v57 = vmax.f32 %v3367_v54, 0.0  ;;  %v3373_v30 = vpack.c.bf16 %v3371_v55, %v3369_v15 }
0x1c5b   :  { %v3374_v59 = vpack.c.bf16 %v3372_v57, %v3370_v14 }
0x1c5d   :  { %3509 = vmatprep.mubr.bf16.mxu0 %v3374_v59 }
0x1c5e   :  { %3510 = vmatmul.mubr.bf16.vlgmr.msra.gmra.mxu0 %v3373_v30 }
0x1d1e   :  { %v3898_v60 = vpop.f32.mrf.mxu0 }
0x1d20   :  { %v3899_v38 = vpop.f32.mrf.mxu0 }
0x1d21   :  { %v3900_v61 = vadd.f32 %v3899_v38, %v3898_v60 }
0x1d22   :  { %v3901_v33 = vpop.f32.mrf.mxu0 }
0x1d23   :  { %v3512_v62 = vadd.f32 %v3900_v61, %v3741_v34 }
0x1d24   :  { %v3902_v63 = vpop.f32.mrf.mxu0 }
0x1d25   :  { %v3903_v53 = vadd.f32 %v3902_v63, %v3901_v33  ;;  %v3518_v2 = vadd.f32 %v3512_v62, %v3232_v20 }
0x1d27   :  { %v3515_v56 = vadd.f32 %v3903_v53, %v3741_v34  ;;  %3520 = vadd.xlane.f32.xlu0 %v3518_v2 }
0x1d29   :  { %v3519_v11 = vadd.f32 %v3515_v56, %v3233_v49 }
0x1d2b   :  { %3522 = vadd.xlane.f32.xlu1 %v3519_v11 }
0x1db0   :  { %v3521_v3 = vpop.xlane.xlu0 %3520 }
0x1db1   :  { %v3524_v4 = vmul.f32 0.0078125, %v3521_v3 }
0x1db3   :  { %v3526_v42 = vsub.f32 %v3518_v2, %v3524_v4 }
0x1db4   :  { %v3523_v5 = vpop.xlane.xlu1 %3522 }
0x1db5   :  { %v3525_v6 = vmul.f32 0.0078125, %v3523_v5  ;;  %v3528_v0 = vmul.f32 %v3526_v42, %v3526_v42 }
0x1db7   :  { %v3527_v7 = vsub.f32 %v3519_v11, %v3525_v6  ;;  %3530 = vadd.xlane.f32.xlu0 %v3528_v0 }
0x1db9   :  { %v3529_v51 = vmul.f32 %v3527_v7, %v3527_v7 }
0x1dbb   :  { %3532 = vadd.xlane.f32.xlu1 %v3529_v51 }
0x1e40   :  { %v3531_v8 = vpop.xlane.xlu0 %3530 }
0x1e41   :  { %v3534_v25 = vmul.f32 0.0078125, %v3531_v8 }
0x1e43   :  { %v3536_v9 = vadd.f32 1e-05, %v3534_v25 }
0x1e44   :  { %v3533_v37 = vpop.xlane.xlu1 %3532 }
0x1e45   :  { %4460 = vrsqrt.f32 %v3536_v9  ;;  %v3535_v46 = vmul.f32 0.0078125, %v3533_v37 }
0x1e47   :  { %v3537_v50 = vadd.f32 1e-05, %v3535_v46 }
0x1e49   :  { %4462 = vrsqrt.f32 %v3537_v50 }
0x1e52   :  { %v4461_v10 = vpop.eup %4460 }
0x1e53   :  { %v3540_v26 = vmul.f32 %v4461_v10, %v3526_v42 }
0x1e55   :  { %v3548_v27 = vmul.f32 %v3758_v43, %v3540_v26 }
0x1e56   :  { %v4463_v52 = vpop.eup %4462 }
0x1e57   :  { %v3541_v12 = vmul.f32 %v4463_v52, %v3527_v7  ;;  %v3556_v13 = vadd.f32 %v3759_v48, %v3548_v27 }
0x1e59   :  { %v3549_v1 = vmul.f32 %v3758_v43, %v3541_v12  ;;  %3558 = vst [vmem:[#allocation13] sm:$0xff] %v3556_v13 }
0x1e5b   :  { %v3557_v16 = vadd.f32 %v3759_v48, %v3549_v1 }
0x1e5d   :  { %3559 = vst [vmem:[#allocation13 + $0x8] sm:$0xff] %v3557_v16 }
0x1e5e   :  { %4595 = shalt.err (!%p4592_p6)
}
0x1e5f   :  { %3571 = dma.vmem_to_hbm [thread:$0]  %s3566_s23, 256, %s5268_s14, [#allocation4], %s4619_s27, %s4619_s27, %s4620_s28  }
0x1e60   :  { %4612 = dma.done.wait [#allocation4], 256  }
0x1e61   :  { %4613 = vsyncadd [#allocation4], 4294967040 }
0x1e62   :  { %3575 = vsyncpa [#allocation3], 1 }
0x1e63   :  { %3576 = vsyncpa [#allocation6], 1 }
0x1e64   :  { %3577 = vsyncpa [#allocation9], 1 }
0x1e65   :  { %3578 = vsyncpa [#allocation12], 1 }
0x1e66   :  { %3579 = vsyncpa [#allocation4], 1 }

</bundles_post_ra>
